<compile_context>
chip_gen: v7x
topology: tpu7x:2x2x1
jax: 0.10.0
libtpu: 0.0.40
codegen_flags: <defaults>
</compile_context>

<pallas_src>
import math

import jax
import jax.numpy as jnp
from jax import lax
from jax.experimental import pallas as pl
from jax.experimental.pallas import tpu as pltpu


def _largest_divisor_leq(n: int, cap: int) -> int:
    cap = max(1, min(n, cap))
    for d in range(cap, 0, -1):
        if n % d == 0:
            return d
    return 1


def _make_rnn_kernel(tt: int, nonlinearity: str):
    if nonlinearity == "tanh":
        act = jnp.tanh
    elif nonlinearity == "relu":
        act = lambda z: jnp.maximum(z, 0.0)
    else:
        raise ValueError("Unknown nonlinearity. Supported: 'tanh', 'relu'")

    def kernel(x_ref, wih_ref, whh_ref, b_ref, h0_ref, y_ref, hn_ref, h_state):
        t_idx = pl.program_id(1)

        # First time-chunk of each batch tile: load the initial hidden state.
        @pl.when(t_idx == 0)
        def _():
            h_state[...] = h0_ref[...].astype(jnp.float32)

        wih = wih_ref[...]     # (I, H)  = W_ih.T
        whh = whh_ref[...]     # (H, H)  = W_hh.T
        bias = b_ref[...]      # (1, H)  = b_ih + b_hh

        def step(i, h):
            x_t = x_ref[i]                                                 # (bm, I)
            z = (jnp.dot(x_t, wih, preferred_element_type=jnp.float32)
                 + jnp.dot(h, whh, preferred_element_type=jnp.float32)
                 + bias)
            h_new = act(z)
            y_ref[i] = h_new.astype(y_ref.dtype)
            return h_new

        h = lax.fori_loop(0, tt, step, h_state[...], unroll=True)
        h_state[...] = h
        hn_ref[...] = h.astype(hn_ref.dtype)   # resident per-batch-tile block; last write wins

    return kernel


def simple_rnn_forward(x, weight_ih, weight_hh, bias_ih=None, bias_hh=None, hx=None,
                       *, nonlinearity="relu", batch_first=False, time_chunk=32):
    """x: (seq_len, batch, input) f32 (or (batch, seq_len, input) if batch_first).
    weight_ih: (H, I), weight_hh: (H, H), biases: (H,). Returns (output, h_n)."""
    if batch_first:
        x = jnp.transpose(x, (1, 0, 2))  # demo path uses batch_first=False (no transpose)

    T, B, I = x.shape
    H = weight_ih.shape[0]

    if hx is None:
        hx = jnp.zeros((B, H), dtype=jnp.float32)

    bias = jnp.zeros((1, H), dtype=jnp.float32)
    if bias_ih is not None:
        bias = bias + bias_ih.reshape(1, H).astype(jnp.float32)
    if bias_hh is not None:
        bias = bias + bias_hh.reshape(1, H).astype(jnp.float32)

    wih_t = weight_ih.T  # (I, H) one-time tiny transpose (parameters, not activations)
    whh_t = weight_hh.T  # (H, H)

    tt = _largest_divisor_leq(T, time_chunk)
    bm = 8 if (B > 8 and B % 8 == 0) else B
    nb, nt = B // bm, T // tt

    # Rough VMEM budget: double-buffered x / y slabs + resident weights, bias, states.
    est = 4 * (2 * tt * bm * I + 2 * tt * bm * H
               + I * H + H * H + H + 3 * bm * H)
    vmem_limit = int(min(max(est, 32 << 20), 48 << 20))  # safe on v5e/v6e/v7x

    kernel = _make_rnn_kernel(tt, nonlinearity)

    y, h_n = pl.pallas_call(
        kernel,
        out_shape=(
            jax.ShapeDtypeStruct((T, B, H), x.dtype),
            jax.ShapeDtypeStruct((B, H), jnp.float32),
        ),
        grid_spec=pltpu.PrefetchScalarGridSpec(
            num_scalar_prefetch=0,
            grid=(nb, nt),
            in_specs=[
                pl.BlockSpec((tt, bm, I), lambda b, t: (t, b, 0)),   # x time-chunk
                pl.BlockSpec((I, H), lambda b, t: (0, 0)),           # W_ih^T (resident)
                pl.BlockSpec((H, H), lambda b, t: (0, 0)),           # W_hh^T (resident)
                pl.BlockSpec((1, H), lambda b, t: (0, 0)),           # fused bias
                pl.BlockSpec((bm, H), lambda b, t: (b, 0)),          # initial hidden
            ],
            out_specs=[
                pl.BlockSpec((tt, bm, H), lambda b, t: (t, b, 0)),   # stacked outputs
                pl.BlockSpec((bm, H), lambda b, t: (b, 0)),          # final hidden
            ],
            scratch_shapes=[pltpu.VMEM((bm, H), jnp.float32)],       # recurrent state
        ),
        compiler_params=pltpu.CompilerParams(
            dimension_semantics=("parallel", "arbitrary"),  # batch parallel, time sequential
            vmem_limit_bytes=vmem_limit,
        ),
    )(x, wih_t, whh_t, bias, hx)

    if batch_first:
        y = jnp.transpose(y, (1, 0, 2))
    return y, h_n


def _reference(x, weight_ih, weight_hh, bias_ih, bias_hh, hx=None, nonlinearity="relu"):
    T, B, _ = x.shape
    H = weight_ih.shape[0]
    act = jnp.tanh if nonlinearity == "tanh" else (lambda z: jnp.maximum(z, 0.0))
    h = jnp.zeros((B, H), dtype=jnp.float32) if hx is None else hx
    ys = []
    for t in range(T):
        h = act(x[t] @ weight_ih.T + bias_ih + h @ weight_hh.T + bias_hh)
        ys.append(h)
    return jnp.stack(ys, axis=0), h


if __name__ == "__main__":
    # Full f32 matmul precision so the XLA reference matches the in-kernel MXU math.
    jax.config.update("jax_default_matmul_precision", "highest")

    key = jax.random.PRNGKey(0)
    T, B, I, H = 16, 8, 32, 128  # seq_len, batch, input_size, hidden_size (lane-aligned)
    kx, k1, k2, k3, k4 = jax.random.split(key, 5)

    stdv = 1.0 / math.sqrt(H)
    x = jax.random.normal(kx, (T, B, I), dtype=jnp.float32)
    weight_ih = jax.random.uniform(k1, (H, I), jnp.float32, -stdv, stdv)
    weight_hh = jax.random.uniform(k2, (H, H), jnp.float32, -stdv, stdv)
    bias_ih = jax.random.uniform(k3, (H,), jnp.float32, -stdv, stdv)
    bias_hh = jax.random.uniform(k4, (H,), jnp.float32, -stdv, stdv)

    for nonlin in ("relu", "tanh"):
        y, h_n = simple_rnn_forward(x, weight_ih, weight_hh, bias_ih, bias_hh,
                                    nonlinearity=nonlin, time_chunk=8)
        jax.block_until_ready((y, h_n))

        y_ref, h_ref = _reference(x, weight_ih, weight_hh, bias_ih, bias_hh,
                                  nonlinearity=nonlin)
        assert y.shape == (T, B, H)
        assert h_n.shape == (B, H)
        assert jnp.allclose(y, y_ref, atol=1e-3, rtol=1e-3), (
            nonlin, float(jnp.max(jnp.abs(y - y_ref))))
        assert jnp.allclose(h_n, h_ref, atol=1e-3, rtol=1e-3), (
            nonlin, float(jnp.max(jnp.abs(h_n - h_ref))))

    print("KERNEL_OK")
</pallas_src>

<mosaic_0001>
module attributes {stable_mosaic.version = 11 : i64} {
  func.func @kernel(%arg0: i32, %arg1: i32, %arg2: memref<8x8x32xf32, #tpu.memory_space<vmem>>, %arg3: memref<32x128xf32, #tpu.memory_space<vmem>>, %arg4: memref<128x128xf32, #tpu.memory_space<vmem>>, %arg5: memref<1x128xf32, #tpu.memory_space<vmem>>, %arg6: memref<8x128xf32, #tpu.memory_space<vmem>>, %arg7: memref<8x8x128xf32, #tpu.memory_space<vmem>>, %arg8: memref<8x128xf32, #tpu.memory_space<vmem>>, %arg9: memref<8x128xf32, #tpu.memory_space<vmem>>) attributes {dimension_semantics = [#tpu.dimension_semantics<parallel>, #tpu.dimension_semantics<arbitrary>], iteration_bounds = array<i64: 1, 2>, scalar_prefetch = 0 : i64, scratch_operands = 1 : i64, tpu.core_type = #tpu.core_type<tc>, window_params = [{transform_indices = @transform_0, window_bounds = array<i64: 8, 8, 32>}, {pipeline_mode = #tpu.pipeline_mode<synchronous>, transform_indices = @transform_1, window_bounds = array<i64: 32, 128>}, {pipeline_mode = #tpu.pipeline_mode<synchronous>, transform_indices = @transform_2, window_bounds = array<i64: 128, 128>}, {pipeline_mode = #tpu.pipeline_mode<synchronous>, transform_indices = @transform_3, window_bounds = array<i64: 1, 128>}, {transform_indices = @transform_4, window_bounds = array<i64: 8, 128>}, {transform_indices = @transform_5, window_bounds = array<i64: 8, 8, 128>}, {transform_indices = @transform_6, window_bounds = array<i64: 8, 128>}]} {
    %c0_i32 = arith.constant 0 : i32
    %0 = arith.cmpi eq, %arg1, %c0_i32 : i32
    %1 = arith.extui %0 : i1 to i32
    %c0_i32_0 = arith.constant 0 : i32
    %2 = arith.cmpi ne, %1, %c0_i32_0 : i32
    scf.if %2 {
      %c0_68 = arith.constant 0 : index
      %c0_69 = arith.constant 0 : index
      %121 = vector.load %arg6[%c0_68, %c0_69] : memref<8x128xf32, #tpu.memory_space<vmem>>, vector<8x128xf32>
      %c0_70 = arith.constant 0 : index
      %c0_71 = arith.constant 0 : index
      %122 = vector.load %arg9[%c0_70, %c0_71] : memref<8x128xf32, #tpu.memory_space<vmem>>, vector<8x128xf32>
      tpu.vector_store %arg9[%c0_70, %c0_71], %121 {strides = array<i32>} : memref<8x128xf32, #tpu.memory_space<vmem>>, vector<8x128xf32>,
    } else {
    }
    %c0 = arith.constant 0 : index
    %c0_1 = arith.constant 0 : index
    %3 = vector.load %arg3[%c0, %c0_1] : memref<32x128xf32, #tpu.memory_space<vmem>>, vector<32x128xf32>
    %c0_2 = arith.constant 0 : index
    %c0_3 = arith.constant 0 : index
    %4 = vector.load %arg4[%c0_2, %c0_3] : memref<128x128xf32, #tpu.memory_space<vmem>>, vector<128x128xf32>
    %c0_4 = arith.constant 0 : index
    %c0_5 = arith.constant 0 : index
    %5 = vector.load %arg5[%c0_4, %c0_5] : memref<1x128xf32, #tpu.memory_space<vmem>>, vector<1x128xf32>
    %c0_6 = arith.constant 0 : index
    %c0_7 = arith.constant 0 : index
    %6 = vector.load %arg9[%c0_6, %c0_7] : memref<8x128xf32, #tpu.memory_space<vmem>>, vector<8x128xf32>
    %c0_i32_8 = arith.constant 0 : i32
    %7 = arith.index_cast %c0_i32_8 : i32 to index
    %c0_9 = arith.constant 0 : index
    %c0_10 = arith.constant 0 : index
    %8 = vector.load %arg2[%7, %c0_9, %c0_10] : memref<8x8x32xf32, #tpu.memory_space<vmem>>, vector<1x8x32xf32>
    %9 = vector.shape_cast %8 : vector<1x8x32xf32> to vector<8x32xf32>
    %cst = arith.constant dense<0.000000e+00> : vector<8x128xf32>
    %10 = tpu.matmul %9, %3, %cst {dimension_numbers = #tpu.dot_dimension_numbers<[1], [0], [0], [1], [0, 0, 1, 1], [], []>, precision = #tpu.contract_precision<fp32>} : vector<8x32xf32>, vector<32x128xf32>, vector<8x128xf32> -> vector<8x128xf32>
    %cst_11 = arith.constant dense<0.000000e+00> : vector<8x128xf32>
    %11 = tpu.matmul %6, %4, %cst_11 {dimension_numbers = #tpu.dot_dimension_numbers<[1], [0], [0], [1], [0, 0, 1, 1], [], []>, precision = #tpu.contract_precision<fp32>} : vector<8x128xf32>, vector<128x128xf32>, vector<8x128xf32> -> vector<8x128xf32>
    %12 = arith.addf %10, %11 : vector<8x128xf32>
    %13 = vector.broadcast %5 : vector<1x128xf32> to vector<8x128xf32>
    %14 = arith.addf %12, %13 : vector<8x128xf32>
    %cst_12 = arith.constant 0.000000e+00 : f32
    %15 = vector.broadcast %cst_12 : f32 to vector<8x128xf32>
    %16 = arith.maximumf %14, %15 : vector<8x128xf32>
    %17 = arith.index_cast %c0_i32_8 : i32 to index
    %c0_13 = arith.constant 0 : index
    %c0_14 = arith.constant 0 : index
    %18 = vector.load %arg7[%17, %c0_13, %c0_14] : memref<8x8x128xf32, #tpu.memory_space<vmem>>, vector<1x8x128xf32>
    %19 = vector.shape_cast %18 : vector<1x8x128xf32> to vector<8x128xf32>
    %20 = vector.shape_cast %16 : vector<8x128xf32> to vector<1x8x128xf32>
    tpu.vector_store %arg7[%17, %c0_13, %c0_14], %20 {strides = array<i32>} : memref<8x8x128xf32, #tpu.memory_space<vmem>>, vector<1x8x128xf32>,
    %c1_i32 = arith.constant 1 : i32
    %21 = arith.index_cast %c1_i32 : i32 to index
    %c0_15 = arith.constant 0 : index
    %c0_16 = arith.constant 0 : index
    %22 = vector.load %arg2[%21, %c0_15, %c0_16] : memref<8x8x32xf32, #tpu.memory_space<vmem>>, vector<1x8x32xf32>
    %23 = vector.shape_cast %22 : vector<1x8x32xf32> to vector<8x32xf32>
    %cst_17 = arith.constant dense<0.000000e+00> : vector<8x128xf32>
    %24 = tpu.matmul %23, %3, %cst_17 {dimension_numbers = #tpu.dot_dimension_numbers<[1], [0], [0], [1], [0, 0, 1, 1], [], []>, precision = #tpu.contract_precision<fp32>} : vector<8x32xf32>, vector<32x128xf32>, vector<8x128xf32> -> vector<8x128xf32>
    %cst_18 = arith.constant dense<0.000000e+00> : vector<8x128xf32>
    %25 = tpu.matmul %16, %4, %cst_18 {dimension_numbers = #tpu.dot_dimension_numbers<[1], [0], [0], [1], [0, 0, 1, 1], [], []>, precision = #tpu.contract_precision<fp32>} : vector<8x128xf32>, vector<128x128xf32>, vector<8x128xf32> -> vector<8x128xf32>
    %26 = arith.addf %24, %25 : vector<8x128xf32>
    %27 = vector.broadcast %5 : vector<1x128xf32> to vector<8x128xf32>
    %28 = arith.addf %26, %27 : vector<8x128xf32>
    %cst_19 = arith.constant 0.000000e+00 : f32
    %29 = vector.broadcast %cst_19 : f32 to vector<8x128xf32>
    %30 = arith.maximumf %28, %29 : vector<8x128xf32>
    %31 = arith.index_cast %c1_i32 : i32 to index
    %c0_20 = arith.constant 0 : index
    %c0_21 = arith.constant 0 : index
    %32 = vector.load %arg7[%31, %c0_20, %c0_21] : memref<8x8x128xf32, #tpu.memory_space<vmem>>, vector<1x8x128xf32>
    %33 = vector.shape_cast %32 : vector<1x8x128xf32> to vector<8x128xf32>
    %34 = vector.shape_cast %30 : vector<8x128xf32> to vector<1x8x128xf32>
    tpu.vector_store %arg7[%31, %c0_20, %c0_21], %34 {strides = array<i32>} : memref<8x8x128xf32, #tpu.memory_space<vmem>>, vector<1x8x128xf32>,
    %c2_i32 = arith.constant 2 : i32
    %35 = arith.index_cast %c2_i32 : i32 to index
    %c0_22 = arith.constant 0 : index
    %c0_23 = arith.constant 0 : index
    %36 = vector.load %arg2[%35, %c0_22, %c0_23] : memref<8x8x32xf32, #tpu.memory_space<vmem>>, vector<1x8x32xf32>
    %37 = vector.shape_cast %36 : vector<1x8x32xf32> to vector<8x32xf32>
    %cst_24 = arith.constant dense<0.000000e+00> : vector<8x128xf32>
    %38 = tpu.matmul %37, %3, %cst_24 {dimension_numbers = #tpu.dot_dimension_numbers<[1], [0], [0], [1], [0, 0, 1, 1], [], []>, precision = #tpu.contract_precision<fp32>} : vector<8x32xf32>, vector<32x128xf32>, vector<8x128xf32> -> vector<8x128xf32>
    %cst_25 = arith.constant dense<0.000000e+00> : vector<8x128xf32>
    %39 = tpu.matmul %30, %4, %cst_25 {dimension_numbers = #tpu.dot_dimension_numbers<[1], [0], [0], [1], [0, 0, 1, 1], [], []>, precision = #tpu.contract_precision<fp32>} : vector<8x128xf32>, vector<128x128xf32>, vector<8x128xf32> -> vector<8x128xf32>
    %40 = arith.addf %38, %39 : vector<8x128xf32>
    %41 = vector.broadcast %5 : vector<1x128xf32> to vector<8x128xf32>
    %42 = arith.addf %40, %41 : vector<8x128xf32>
    %cst_26 = arith.constant 0.000000e+00 : f32
    %43 = vector.broadcast %cst_26 : f32 to vector<8x128xf32>
    %44 = arith.maximumf %42, %43 : vector<8x128xf32>
    %45 = arith.index_cast %c2_i32 : i32 to index
    %c0_27 = arith.constant 0 : index
    %c0_28 = arith.constant 0 : index
    %46 = vector.load %arg7[%45, %c0_27, %c0_28] : memref<8x8x128xf32, #tpu.memory_space<vmem>>, vector<1x8x128xf32>
    %47 = vector.shape_cast %46 : vector<1x8x128xf32> to vector<8x128xf32>
    %48 = vector.shape_cast %44 : vector<8x128xf32> to vector<1x8x128xf32>
    tpu.vector_store %arg7[%45, %c0_27, %c0_28], %48 {strides = array<i32>} : memref<8x8x128xf32, #tpu.memory_space<vmem>>, vector<1x8x128xf32>,
    %c3_i32 = arith.constant 3 : i32
    %49 = arith.index_cast %c3_i32 : i32 to index
    %c0_29 = arith.constant 0 : index
    %c0_30 = arith.constant 0 : index
    %50 = vector.load %arg2[%49, %c0_29, %c0_30] : memref<8x8x32xf32, #tpu.memory_space<vmem>>, vector<1x8x32xf32>
    %51 = vector.shape_cast %50 : vector<1x8x32xf32> to vector<8x32xf32>
    %cst_31 = arith.constant dense<0.000000e+00> : vector<8x128xf32>
    %52 = tpu.matmul %51, %3, %cst_31 {dimension_numbers = #tpu.dot_dimension_numbers<[1], [0], [0], [1], [0, 0, 1, 1], [], []>, precision = #tpu.contract_precision<fp32>} : vector<8x32xf32>, vector<32x128xf32>, vector<8x128xf32> -> vector<8x128xf32>
    %cst_32 = arith.constant dense<0.000000e+00> : vector<8x128xf32>
    %53 = tpu.matmul %44, %4, %cst_32 {dimension_numbers = #tpu.dot_dimension_numbers<[1], [0], [0], [1], [0, 0, 1, 1], [], []>, precision = #tpu.contract_precision<fp32>} : vector<8x128xf32>, vector<128x128xf32>, vector<8x128xf32> -> vector<8x128xf32>
    %54 = arith.addf %52, %53 : vector<8x128xf32>
    %55 = vector.broadcast %5 : vector<1x128xf32> to vector<8x128xf32>
    %56 = arith.addf %54, %55 : vector<8x128xf32>
    %cst_33 = arith.constant 0.000000e+00 : f32
    %57 = vector.broadcast %cst_33 : f32 to vector<8x128xf32>
    %58 = arith.maximumf %56, %57 : vector<8x128xf32>
    %59 = arith.index_cast %c3_i32 : i32 to index
    %c0_34 = arith.constant 0 : index
    %c0_35 = arith.constant 0 : index
    %60 = vector.load %arg7[%59, %c0_34, %c0_35] : memref<8x8x128xf32, #tpu.memory_space<vmem>>, vector<1x8x128xf32>
    %61 = vector.shape_cast %60 : vector<1x8x128xf32> to vector<8x128xf32>
    %62 = vector.shape_cast %58 : vector<8x128xf32> to vector<1x8x128xf32>
    tpu.vector_store %arg7[%59, %c0_34, %c0_35], %62 {strides = array<i32>} : memref<8x8x128xf32, #tpu.memory_space<vmem>>, vector<1x8x128xf32>,
    %c4_i32 = arith.constant 4 : i32
    %63 = arith.index_cast %c4_i32 : i32 to index
    %c0_36 = arith.constant 0 : index
    %c0_37 = arith.constant 0 : index
    %64 = vector.load %arg2[%63, %c0_36, %c0_37] : memref<8x8x32xf32, #tpu.memory_space<vmem>>, vector<1x8x32xf32>
    %65 = vector.shape_cast %64 : vector<1x8x32xf32> to vector<8x32xf32>
    %cst_38 = arith.constant dense<0.000000e+00> : vector<8x128xf32>
    %66 = tpu.matmul %65, %3, %cst_38 {dimension_numbers = #tpu.dot_dimension_numbers<[1], [0], [0], [1], [0, 0, 1, 1], [], []>, precision = #tpu.contract_precision<fp32>} : vector<8x32xf32>, vector<32x128xf32>, vector<8x128xf32> -> vector<8x128xf32>
    %cst_39 = arith.constant dense<0.000000e+00> : vector<8x128xf32>
    %67 = tpu.matmul %58, %4, %cst_39 {dimension_numbers = #tpu.dot_dimension_numbers<[1], [0], [0], [1], [0, 0, 1, 1], [], []>, precision = #tpu.contract_precision<fp32>} : vector<8x128xf32>, vector<128x128xf32>, vector<8x128xf32> -> vector<8x128xf32>
    %68 = arith.addf %66, %67 : vector<8x128xf32>
    %69 = vector.broadcast %5 : vector<1x128xf32> to vector<8x128xf32>
    %70 = arith.addf %68, %69 : vector<8x128xf32>
    %cst_40 = arith.constant 0.000000e+00 : f32
    %71 = vector.broadcast %cst_40 : f32 to vector<8x128xf32>
    %72 = arith.maximumf %70, %71 : vector<8x128xf32>
    %73 = arith.index_cast %c4_i32 : i32 to index
    %c0_41 = arith.constant 0 : index
    %c0_42 = arith.constant 0 : index
    %74 = vector.load %arg7[%73, %c0_41, %c0_42] : memref<8x8x128xf32, #tpu.memory_space<vmem>>, vector<1x8x128xf32>
    %75 = vector.shape_cast %74 : vector<1x8x128xf32> to vector<8x128xf32>
    %76 = vector.shape_cast %72 : vector<8x128xf32> to vector<1x8x128xf32>
    tpu.vector_store %arg7[%73, %c0_41, %c0_42], %76 {strides = array<i32>} : memref<8x8x128xf32, #tpu.memory_space<vmem>>, vector<1x8x128xf32>,
    %c5_i32 = arith.constant 5 : i32
    %77 = arith.index_cast %c5_i32 : i32 to index
    %c0_43 = arith.constant 0 : index
    %c0_44 = arith.constant 0 : index
    %78 = vector.load %arg2[%77, %c0_43, %c0_44] : memref<8x8x32xf32, #tpu.memory_space<vmem>>, vector<1x8x32xf32>
    %79 = vector.shape_cast %78 : vector<1x8x32xf32> to vector<8x32xf32>
    %cst_45 = arith.constant dense<0.000000e+00> : vector<8x128xf32>
    %80 = tpu.matmul %79, %3, %cst_45 {dimension_numbers = #tpu.dot_dimension_numbers<[1], [0], [0], [1], [0, 0, 1, 1], [], []>, precision = #tpu.contract_precision<fp32>} : vector<8x32xf32>, vector<32x128xf32>, vector<8x128xf32> -> vector<8x128xf32>
    %cst_46 = arith.constant dense<0.000000e+00> : vector<8x128xf32>
    %81 = tpu.matmul %72, %4, %cst_46 {dimension_numbers = #tpu.dot_dimension_numbers<[1], [0], [0], [1], [0, 0, 1, 1], [], []>, precision = #tpu.contract_precision<fp32>} : vector<8x128xf32>, vector<128x128xf32>, vector<8x128xf32> -> vector<8x128xf32>
    %82 = arith.addf %80, %81 : vector<8x128xf32>
    %83 = vector.broadcast %5 : vector<1x128xf32> to vector<8x128xf32>
    %84 = arith.addf %82, %83 : vector<8x128xf32>
    %cst_47 = arith.constant 0.000000e+00 : f32
    %85 = vector.broadcast %cst_47 : f32 to vector<8x128xf32>
    %86 = arith.maximumf %84, %85 : vector<8x128xf32>
    %87 = arith.index_cast %c5_i32 : i32 to index
    %c0_48 = arith.constant 0 : index
    %c0_49 = arith.constant 0 : index
    %88 = vector.load %arg7[%87, %c0_48, %c0_49] : memref<8x8x128xf32, #tpu.memory_space<vmem>>, vector<1x8x128xf32>
    %89 = vector.shape_cast %88 : vector<1x8x128xf32> to vector<8x128xf32>
    %90 = vector.shape_cast %86 : vector<8x128xf32> to vector<1x8x128xf32>
    tpu.vector_store %arg7[%87, %c0_48, %c0_49], %90 {strides = array<i32>} : memref<8x8x128xf32, #tpu.memory_space<vmem>>, vector<1x8x128xf32>,
    %c6_i32 = arith.constant 6 : i32
    %91 = arith.index_cast %c6_i32 : i32 to index
    %c0_50 = arith.constant 0 : index
    %c0_51 = arith.constant 0 : index
    %92 = vector.load %arg2[%91, %c0_50, %c0_51] : memref<8x8x32xf32, #tpu.memory_space<vmem>>, vector<1x8x32xf32>
    %93 = vector.shape_cast %92 : vector<1x8x32xf32> to vector<8x32xf32>
    %cst_52 = arith.constant dense<0.000000e+00> : vector<8x128xf32>
    %94 = tpu.matmul %93, %3, %cst_52 {dimension_numbers = #tpu.dot_dimension_numbers<[1], [0], [0], [1], [0, 0, 1, 1], [], []>, precision = #tpu.contract_precision<fp32>} : vector<8x32xf32>, vector<32x128xf32>, vector<8x128xf32> -> vector<8x128xf32>
    %cst_53 = arith.constant dense<0.000000e+00> : vector<8x128xf32>
    %95 = tpu.matmul %86, %4, %cst_53 {dimension_numbers = #tpu.dot_dimension_numbers<[1], [0], [0], [1], [0, 0, 1, 1], [], []>, precision = #tpu.contract_precision<fp32>} : vector<8x128xf32>, vector<128x128xf32>, vector<8x128xf32> -> vector<8x128xf32>
    %96 = arith.addf %94, %95 : vector<8x128xf32>
    %97 = vector.broadcast %5 : vector<1x128xf32> to vector<8x128xf32>
    %98 = arith.addf %96, %97 : vector<8x128xf32>
    %cst_54 = arith.constant 0.000000e+00 : f32
    %99 = vector.broadcast %cst_54 : f32 to vector<8x128xf32>
    %100 = arith.maximumf %98, %99 : vector<8x128xf32>
    %101 = arith.index_cast %c6_i32 : i32 to index
    %c0_55 = arith.constant 0 : index
    %c0_56 = arith.constant 0 : index
    %102 = vector.load %arg7[%101, %c0_55, %c0_56] : memref<8x8x128xf32, #tpu.memory_space<vmem>>, vector<1x8x128xf32>
    %103 = vector.shape_cast %102 : vector<1x8x128xf32> to vector<8x128xf32>
    %104 = vector.shape_cast %100 : vector<8x128xf32> to vector<1x8x128xf32>
    tpu.vector_store %arg7[%101, %c0_55, %c0_56], %104 {strides = array<i32>} : memref<8x8x128xf32, #tpu.memory_space<vmem>>, vector<1x8x128xf32>,
    %c7_i32 = arith.constant 7 : i32
    %105 = arith.index_cast %c7_i32 : i32 to index
    %c0_57 = arith.constant 0 : index
    %c0_58 = arith.constant 0 : index
    %106 = vector.load %arg2[%105, %c0_57, %c0_58] : memref<8x8x32xf32, #tpu.memory_space<vmem>>, vector<1x8x32xf32>
    %107 = vector.shape_cast %106 : vector<1x8x32xf32> to vector<8x32xf32>
    %cst_59 = arith.constant dense<0.000000e+00> : vector<8x128xf32>
    %108 = tpu.matmul %107, %3, %cst_59 {dimension_numbers = #tpu.dot_dimension_numbers<[1], [0], [0], [1], [0, 0, 1, 1], [], []>, precision = #tpu.contract_precision<fp32>} : vector<8x32xf32>, vector<32x128xf32>, vector<8x128xf32> -> vector<8x128xf32>
    %cst_60 = arith.constant dense<0.000000e+00> : vector<8x128xf32>
    %109 = tpu.matmul %100, %4, %cst_60 {dimension_numbers = #tpu.dot_dimension_numbers<[1], [0], [0], [1], [0, 0, 1, 1], [], []>, precision = #tpu.contract_precision<fp32>} : vector<8x128xf32>, vector<128x128xf32>, vector<8x128xf32> -> vector<8x128xf32>
    %110 = arith.addf %108, %109 : vector<8x128xf32>
    %111 = vector.broadcast %5 : vector<1x128xf32> to vector<8x128xf32>
    %112 = arith.addf %110, %111 : vector<8x128xf32>
    %cst_61 = arith.constant 0.000000e+00 : f32
    %113 = vector.broadcast %cst_61 : f32 to vector<8x128xf32>
    %114 = arith.maximumf %112, %113 : vector<8x128xf32>
    %115 = arith.index_cast %c7_i32 : i32 to index
    %c0_62 = arith.constant 0 : index
    %c0_63 = arith.constant 0 : index
    %116 = vector.load %arg7[%115, %c0_62, %c0_63] : memref<8x8x128xf32, #tpu.memory_space<vmem>>, vector<1x8x128xf32>
    %117 = vector.shape_cast %116 : vector<1x8x128xf32> to vector<8x128xf32>
    %118 = vector.shape_cast %114 : vector<8x128xf32> to vector<1x8x128xf32>
    tpu.vector_store %arg7[%115, %c0_62, %c0_63], %118 {strides = array<i32>} : memref<8x8x128xf32, #tpu.memory_space<vmem>>, vector<1x8x128xf32>,
    %c8_i32 = arith.constant 8 : i32
    %c0_64 = arith.constant 0 : index
    %c0_65 = arith.constant 0 : index
    %119 = vector.load %arg9[%c0_64, %c0_65] : memref<8x128xf32, #tpu.memory_space<vmem>>, vector<8x128xf32>
    tpu.vector_store %arg9[%c0_64, %c0_65], %114 {strides = array<i32>} : memref<8x128xf32, #tpu.memory_space<vmem>>, vector<8x128xf32>,
    %c0_66 = arith.constant 0 : index
    %c0_67 = arith.constant 0 : index
    %120 = vector.load %arg8[%c0_66, %c0_67] : memref<8x128xf32, #tpu.memory_space<vmem>>, vector<8x128xf32>
    tpu.vector_store %arg8[%c0_66, %c0_67], %114 {strides = array<i32>} : memref<8x128xf32, #tpu.memory_space<vmem>>, vector<8x128xf32>,
    return
  }
  func.func @transform_0(%arg0: i32, %arg1: i32) -> (i32, i32, i32) {
    %c0_i32 = arith.constant 0 : i32
    %c0_i32_0 = arith.constant 0 : i32
    return %arg1, %arg0, %c0_i32 : i32, i32, i32
  }
  func.func @transform_1(%arg0: i32, %arg1: i32) -> (i32, i32) {
    %c0_i32 = arith.constant 0 : i32
    %c0_i32_0 = arith.constant 0 : i32
    %c0_i32_1 = arith.constant 0 : i32
    return %c0_i32, %c0_i32_0 : i32, i32
  }
  func.func @transform_2(%arg0: i32, %arg1: i32) -> (i32, i32) {
    %c0_i32 = arith.constant 0 : i32
    %c0_i32_0 = arith.constant 0 : i32
    %c0_i32_1 = arith.constant 0 : i32
    return %c0_i32, %c0_i32_0 : i32, i32
  }
  func.func @transform_3(%arg0: i32, %arg1: i32) -> (i32, i32) {
    %c0_i32 = arith.constant 0 : i32
    %c0_i32_0 = arith.constant 0 : i32
    %c0_i32_1 = arith.constant 0 : i32
    return %c0_i32, %c0_i32_0 : i32, i32
  }
  func.func @transform_4(%arg0: i32, %arg1: i32) -> (i32, i32) {
    %c0_i32 = arith.constant 0 : i32
    %c0_i32_0 = arith.constant 0 : i32
    return %arg0, %c0_i32 : i32, i32
  }
  func.func @transform_5(%arg0: i32, %arg1: i32) -> (i32, i32, i32) {
    %c0_i32 = arith.constant 0 : i32
    %c0_i32_0 = arith.constant 0 : i32
    return %arg1, %arg0, %c0_i32 : i32, i32, i32
  }
  func.func @transform_6(%arg0: i32, %arg1: i32) -> (i32, i32) {
    %c0_i32 = arith.constant 0 : i32
    %c0_i32_0 = arith.constant 0 : i32
    return %arg0, %c0_i32 : i32, i32
  }
}

</mosaic_0001>

<bundles_post_ra>
// kernel: tpu_custom_call.1
= control target key start
LH: loop header
LB: loop body
LE: loop exit
PB: predicated region body
PF: predicated region fallthrough
CT: control target
= control target key end

     0   :  { %12 = vsyncpa [#allocation4], 0  ;;  %s16509_s0 = inlined_call_operand.hbm [shape: f32[16,8,32], index: 0, kind: input, shape index: {}]   ;;  %s16510_s1 = inlined_call_operand.hbm [shape: f32[32,128], index: 1, kind: input, shape index: {}]   ;;  %s16511_s2 = inlined_call_operand.hbm [shape: f32[128,128], index: 2, kind: input, shape index: {}]   ;;  %s16512_s3 = inlined_call_operand.vmem [shape: f32[1,128], index: 3, kind: input, shape index: {}]   ;;  %s16513_s4 = inlined_call_operand.vmem [shape: f32[8,128], index: 4, kind: input, shape index: {}]   ;;  %s16514_s5 = inlined_call_operand.hbm [shape: f32[16,8,128], index: 5, kind: output, shape index: {0}]   ;;  %s16515_s6 = inlined_call_operand.hbm [shape: f32[8,128], index: 6, kind: output, shape index: {1}]  }
   0x1   :  { %14 = vsyncpa [#allocation4 + $0x1], 0 }
   0x2   :  { %15 = vsyncpa [#allocation7], 0 }
   0x3   :  { %16 = vsyncpa [#allocation5], 0 }
   0x4   :  { %18 = vsyncpa [#allocation5 + $0x1], 0 }
   0x5   :  { %19 = vsyncpa [#allocation11], 0  ;;  %s14708_s21 = smov 0   ;;  %s14710_s22 = smov 0  }
   0x6   :  { %s14712_s23 = smov 0   ;;  %s14714_s24 = smov 0  }
   0x7   :  { %s14716_s25 = smov 0   ;;  %s14718_s26 = smov 0  }
   0x8 LB: > { %s9614_s27 = sadd.s32 4294967295, %s14659_s26   ;;  %s9615_s28 = sadd.s32 4294967294, %s14659_s26   ;;  %s14659_s26 = sphi %s14718_s26, %s25_s26   ;;  %s14655_s25 = sphi %s14716_s25, %s16567_s25   ;;  %s14651_s24 = sphi %s14714_s24, %s16566_s24   ;;  %s14647_s23 = sphi %s14712_s23, %s16565_s23   ;;  %s14643_s22 = sphi %s14710_s22, %s16564_s22   ;;  %s14639_s21 = sphi %s14708_s21, %s16563_s21  }
   0x9   : > { %p59_p0 = scmp.ne.s32.totalorder %s14643_s22, %s14639_s21  ;;  %p14742_p1 = scmp.eq.s32.totalorder %s9614_s27, 0 }
   0xa   : > { %p14746_p2 = scmp.eq.s32.totalorder %s9614_s27, 1  ;;  %p180_p3 = scmp.eq.s32.totalorder %s9615_s28, 1 }
   0xb   : > { %s16534_s29 = scalar_select %p14742_p1, 1, 0 }
   0xc   : > { %s16535_s30 = scalar_select %p14746_p2, 1, 0 }
   0xd   : > { %p14752_p4 = por %p14742_p1, %p59_p0  ;;  %p9616_p5 = scmp.ge.s32.totalorder %s14659_s26, 1 }
   0xe   : > { %p14757_p6 = por %p180_p3, %p59_p0  ;;  %p213_p7 = scmp.lt.s32.totalorder %s14659_s26, 3 }
   0xf   : > { %s16536_s7 = scalar_select %p14752_p4, 1, 0 }
  0x10   : > { %s16537_s8 = scalar_select %p14757_p6, 1, 0 }
  0x11   : > { %p14762_p8 = pnand %p9616_p5, %p213_p7  ;;  %s14661_s10 = smov [#allocation6]  }
  0x12   : > { %16538 = sst [smem:[#allocation16_spill]] %s16537_s8  ;;  %s225_s11 = sshll.u32 %s14661_s10, 4  ;;  %s14766_s11 = int_to_ptr.vmem [resolvable:$true] %s225_s11 }
  0x13   : > { %p14374_p9 = pneg %p14762_p8  ;;  %s14662_s13 = smov [#allocation8]  }
  0x14   : > { %s238_s14 = sshll.u32 %s14662_s13, 4  ;;  %s14457_s17 = scalar_lea.hbm %s16510_s1, 512  ;;  %s14777_s14 = int_to_ptr.vmem [resolvable:$true] %s238_s14 }
  0x15   : > { %p14773_p11 = pnand %p14374_p9, %p14742_p1  ;;  %p14458_p12 = scmp.ne.s32.totalorder %s16510_s1, %s14457_s17 }
  0x16   : > { %p14464_p5 = scmp.lt.u32.totalorder %s14457_s17, %s16510_s1 }
  0x17   : > { %p14459_p13 = pneg %p14773_p11 }
  0x19   : > { %p14460_p0 = pnand %p14459_p13, %p14458_p12 }
  0x1b   : > { %p14461_p3 = pneg %p14460_p0 }
  0x1d   : > { %p14466_p7 = pnand %p14464_p5, %p14461_p3 }
  0x1f   : > { %14469 = shalt.err (!%p14466_p7)
}
  0x20   : > { %s14470_s28 = scalar_lea.vmem %s14766_s11, 512  ;;  %p14478_p1 = scmp.lt.s32.totalorder %s14766_s11, %s14766_s11 }
  0x21   : > { %p14471_p9 = scmp.ne.s32.totalorder %s14766_s11, %s14470_s28  ;;  %p14479_p12 = scmp.lt.s32.totalorder %s14470_s28, %s14470_s28 }
  0x23   : > { %p14473_p10 = pnand %p14471_p9, %p14459_p13  ;;  %p14480_p0 = por %p14479_p12, %p14478_p1 }
  0x25   : > { %p14474_p6 = pneg %p14473_p10 }
  0x27   : > { %p14481_p4 = pnand %p14480_p0, %p14474_p6 }
  0x29   : > { %14484 = shalt.err (!%p14481_p4)
}
  0x2a   : > { %s16520_s10 = smov 128   ;;  %s16521_s13 = smov 8  }
  0x2b   : > { %14377 = dma.hbm_to_vmem [thread:$0]  (!%p14773_p11), %s16510_s1, 512, %s14766_s11, [#allocation7], %s16520_s10, %s16520_s10, %s16521_s13  }
  0x2c   : > { %s14485_s19 = scalar_lea.hbm %s16511_s2, 2048 }
  0x2d   : > { %p14486_p1 = scmp.ne.s32.totalorder %s16511_s2, %s14485_s19  ;;  %p14492_p10 = scmp.lt.u32.totalorder %s14485_s19, %s16511_s2 }
  0x2f   : > { %p14488_p4 = pnand %p14486_p1, %p14459_p13 }
  0x31   : > { %p14489_p6 = pneg %p14488_p4 }
  0x33   : > { %p14494_p3 = pnand %p14492_p10, %p14489_p6 }
  0x35   : > { %14497 = shalt.err (!%p14494_p3)
}
  0x36   : > { %s14498_s11 = scalar_lea.vmem %s14777_s14, 2048  ;;  %p14506_p12 = scmp.lt.s32.totalorder %s14777_s14, %s14777_s14 }
  0x37   : > { %p14499_p5 = scmp.ne.s32.totalorder %s14777_s14, %s14498_s11  ;;  %p14507_p0 = scmp.lt.s32.totalorder %s14498_s11, %s14498_s11 }
  0x39   : > { %p14501_p7 = pnand %p14499_p5, %p14459_p13  ;;  %p14508_p1 = por %p14507_p0, %p14506_p12 }
  0x3b   : > { %p14502_p9 = pneg %p14501_p7 }
  0x3d   : > { %p14509_p4 = pnand %p14508_p1, %p14502_p9 }
  0x3f   : > { %14512 = shalt.err (!%p14509_p4)
}
  0x40   : > { %14380 = dma.hbm_to_vmem [thread:$0]  (!%p14773_p11), %s16511_s2, 2048, %s14777_s14, [#allocation7], %s16520_s10, %s16520_s10, %s16521_s13  }
  0x41   : > { %s34_s12 = sadd.s32 1, %s14655_s25  ;;  %s46_s16 = sadd.s32 1, %s14647_s23 }
  0x42   : > { %p35_p13 = scmp.ge.s32.totalorder %s34_s12, 2  ;;  %p53_p6 = scmp.ne.s32.totalorder %s14647_s23, %s14643_s22 }
  0x43   : > { %p54_p10 = scmp.eq.s32.totalorder %s14659_s26, 0  ;;  %p14391_p3 = scmp.lt.s32.totalorder %s14659_s26, 2 }
  0x44   : > { %s16569_s12 = smov (%p35_p13, %s34_s12), 0  ;;  %p14847_p7 = por %p14746_p2, %p53_p6 }
  0x45   : > { %p55_p5 = por %p54_p10, %p53_p6  ;;  %s41_s18 = ssub.s32 %s14655_s25, %s16569_s12 }
  0x46   : > { %s16541_s17 = scalar_select %p14847_p7, 1, 0 }
  0x47   : > { %s262_s19 = sand.u32 1, %s14647_s23   ;;  %p44_p9 = scmp.eq.s32.totalorder %s41_s18, 0 }
  0x48   : > { %s9621_s14 = sshll.u32 %s262_s19, 6  ;;  %s9652_s20 = sshll.u32 %s14655_s25, 10 }
  0x49   : > { %s14856_s27 = scalar_select %p44_p9, %s14647_s23, %s46_s16  }
  0x4a   : > { %s14861_s8 = scalar_lea.hbm %s16509_s0, %s9652_s20  ;;  %s266_s15 = scalar_lea.vmem [#allocation3], %s9621_s14 }
  0x4b   : > { %s274_s10 = sshll.u32 %s266_s15, 4  ;;  %p14865_p11 = pnand %p14391_p3, %p55_p5  ;;  %s14869_s10 = int_to_ptr.vmem [resolvable:$true] %s274_s10 }
  0x4c   : > { %s14871_s16 = scalar_lea.sflag [#allocation4], %s262_s19  ;;  %s14513_s18 = scalar_lea.hbm %s14861_s8, 1024 }
  0x4d   : > { %p14514_p12 = scmp.ne.s32.totalorder %s14861_s8, %s14513_s18  ;;  %p14515_p0 = pneg %p14865_p11 }
  0x4e   : > { %s14518_s28 = scalar_lea.hbm %s16509_s0, 2048  ;;  %p14519_p13 = scmp.lt.u32.totalorder %s14861_s8, %s16509_s0 }
  0x4f   : > { %p14516_p1 = pnand %p14515_p0, %p14514_p12  ;;  %p14520_p6 = scmp.lt.u32.totalorder %s14518_s28, %s14513_s18 }
  0x50   : > { %p14522_p3 = scmp.lt.u32.totalorder %s14513_s18, %s14861_s8 }
  0x51   : > { %p14517_p4 = pneg %p14516_p1  ;;  %p14521_p10 = por %p14520_p6, %p14519_p13 }
  0x53   : > { %p14523_p5 = por %p14522_p3, %p14521_p10 }
  0x55   : > { %p14524_p9 = pnand %p14523_p5, %p14517_p4 }
  0x57   : > { %14527 = shalt.err (!%p14524_p9)
}
  0x58   : > { %s14528_s19 = scalar_lea.vmem %s14869_s10, 1024  ;;  %s14665_s14 = smov [#allocation3]  }
  0x59   : > { %p14529_p12 = scmp.ne.s32.totalorder %s14869_s10, %s14528_s19  ;;  %s14533_s20 = sshll.u32 %s14665_s14, 4  ;;  %s14534_s20 = int_to_ptr.vmem [resolvable:$false] %s14533_s20 }
  0x5a   : > { %s14535_s11 = scalar_lea.vmem %s14534_s20, 2048  ;;  %p14536_p7 = scmp.lt.s32.totalorder %s14869_s10, %s14534_s20 }
  0x5b   : > { %p14531_p1 = pnand %p14529_p12, %p14515_p0  ;;  %p14537_p13 = scmp.lt.s32.totalorder %s14535_s11, %s14528_s19 }
  0x5d   : > { %p14532_p2 = pneg %p14531_p1  ;;  %p14538_p6 = por %p14537_p13, %p14536_p7 }
  0x5f   : > { %p14539_p10 = pnand %p14538_p6, %p14532_p2 }
  0x61   : > { %14542 = shalt.err (!%p14539_p10)
}
  0x62   : > { %s16543_s18 = smov 8   ;;  %s16544_s28 = smov 128  }
  0x63   : > { %14384 = dma.hbm_to_vmem [thread:$0]  (!%p14865_p11), %s14861_s8, 1024, %s14869_s10, %s14871_s16, %s16544_s28, %s16544_s28, %s16543_s18  }
  0x64   : > { %286 = sbr.rel (%p14762_p8) target bundleno = 2738 (0xab2), region = 40 }
  0x6b   : > { %s14905_s15 = sand.u32 1, %s14643_s22   ;;  %p16545_p2 = scmp.ne.s32.totalorder %s16536_s7, 0 }
  0x6c   : > { %s9625_s19 = sshll.u32 %s14905_s15, 6  ;;  %s289_s14 = scalar_lea.sflag [#allocation4], %s14905_s15 }
  0x6d   : > { %s14909_s20 = scalar_lea.vmem [#allocation3], %s9625_s19 }
  0x6e   : > { %14622 = dma.done.wait (%p16545_p2), %s289_s14, 1024  }
  0x6f   : > { %14624 = vsyncadd (%p16545_p2), %s289_s14, 4294966272  ;;  %p16546_p7 = scmp.ne.s32.totalorder %s16534_s29, 0 }
  0x71   : > { %14626 = dma.done.wait (%p16546_p7), [#allocation7], 2560  }
  0x72   : > { %14628 = vsyncadd (%p16546_p7), [#allocation7], 4294964736  ;;  %s14919_s9 = scalar_lea.vmem [#allocation9], %s9625_s19  ;;  %p9629_p8 = scmp.ne.s32.totalorder %s14651_s24, 0 }
  0x73   : > { %v343_v0 = vld [vmem:[%s16513_s4] sm:$0xff] (!%p9629_p8) }
  0x74   : > { %342 = sbr.rel (%p9629_p8) target bundleno = 123 (0x7b), region = 56  ;;  %344 = vst [vmem:[#allocation2] sm:$0xff] (!%p9629_p8), %v343_v0 }
  0x7b PF: > { %v349_v1 = vld [vmem:[#allocation8] sm:$0xff]  ;;  %v350_v2 = vld [vmem:[#allocation8 + $0x8] sm:$0xff]  ;;  %v351_v3 = vld [vmem:[#allocation8 + $0x10] sm:$0xff]  ;;  %v16525_v4 = vmov 0.0|0.0   ;;  %vm14667_vm0 = vmmov 0   ;;  %v16527_v13 = vmov 0.0  }
  0x7c   : > { %12918 = vmatprep.subr.bf16.mxu0 %v16525_v4  ;;  %v369_v5 = vand.u32 4294901760, %v349_v1  ;;  %v372_v6 = vand.u32 4294901760, %v350_v2  ;;  %v352_v7 = vld [vmem:[#allocation8 + $0x18] sm:$0xff]  ;;  %v375_v8 = vand.u32 4294901760, %v351_v3  ;;  %12942 = vmatprep.subr.bf16.mxu1 %v16525_v4  ;;  %v353_v9 = vld [vmem:[#allocation8 + $0x20] sm:$0xff]  ;;  %v354_v10 = vld [vmem:[#allocation8 + $0x28] sm:$0xff] }
  0x7d   : > { %v378_v11 = vand.u32 4294901760, %v352_v7  ;;  %v381_v12 = vand.u32 4294901760, %v353_v9  ;;  %10742 = vmatprep.mubr.msk.f32.mxu0 %vm14667_vm0, %v16527_v13  ;;  %10777 = vmatprep.mubr.msk.f32.mxu1 %vm14667_vm0, %v16527_v13  ;;  %v384_v15 = vand.u32 4294901760, %v354_v10  ;;  %v355_v18 = vld [vmem:[#allocation8 + $0x30] sm:$0xff]  ;;  %v356_v19 = vld [vmem:[#allocation8 + $0x38] sm:$0xff]  ;;  %v357_v25 = vld [vmem:[#allocation8 + $0x40] sm:$0xff] }
  0x7e   : > { %v14931_v14 = vpack.c.bf16 %v372_v6, %v369_v5  ;;  %v14933_v16 = vsub.f32 %v349_v1, %v369_v5  ;;  %v14935_v17 = vsub.f32 %v350_v2, %v372_v6  ;;  %v14937_v20 = vsub.f32 %v351_v3, %v375_v8  ;;  %v358_v33 = vld [vmem:[#allocation8 + $0x48] sm:$0xff]  ;;  %v14970_v43 = vld [vmem:[#allocation8 + $0x50] sm:$0xff]  ;;  %v360_v47 = vld [vmem:[#allocation8 + $0x58] sm:$0xff]  ;;  %s9653_s28 = sshll.u32 %s14651_s24, 10  ;;  %s9469_s19 = sshll.u32 %s14919_s9, 4  ;;  %s16430_s19 = int_to_ptr.vmem [resolvable:$true] %s9469_s19 }
  0x7f   : > { %v14940_v21 = vpack.c.bf16 %v378_v11, %v375_v8  ;;  %v14944_v24 = vsub.f32 %v352_v7, %v378_v11  ;;  %v387_v26 = vand.u32 4294901760, %v355_v18  ;;  %v390_v27 = vand.u32 4294901760, %v356_v19  ;;  %v361_v53 = vld [vmem:[#allocation8 + $0x60] sm:$0xff]  ;;  %v362_v58 = vld [vmem:[#allocation8 + $0x68] sm:$0xff]  ;;  %v14989_v59 = vld [vmem:[#allocation8 + $0x70] sm:$0xff]  ;;  %s14669_s14 = smov [#allocation10]   ;;  %s16428_s29 = scalar_lea.hbm %s16514_s5, %s9653_s28 }
  0x80   : > { %12920 = vmatpush3.bf16.msra.mxu0 %v14931_v14  ;;  %v462_v22 = vand.u32 4294901760, %v14933_v16  ;;  %v469_v23 = vand.u32 4294901760, %v14935_v17  ;;  %v476_v28 = vand.u32 4294901760, %v14937_v20  ;;  %v14948_v29 = vsub.f32 %v353_v9, %v381_v12  ;;  %v366_v5 = vld [vmem:[#allocation2] sm:$0xff]  ;;  %s9455_s24 = scalar_lea.sflag [#allocation5], %s14905_s15  ;;  %s14543_s7 = scalar_lea.vmem %s16430_s19, 1024 }
  0x81   : > { %12921 = vmatprep.subr.bf16.mxu0 %v16525_v4  ;;  %v483_v32 = vand.u32 4294901760, %v14944_v24  ;;  %v14957_v34 = vsub.f32 %v354_v10, %v384_v15  ;;  %v14959_v35 = vpack.c.bf16 %v384_v15, %v381_v12  ;;  %v393_v37 = vand.u32 4294901760, %v357_v25  ;;  %v364_v15 = vld [vmem:[#allocation8 + $0x78] sm:$0xff]  ;;  %p14544_p11 = scmp.ne.s32.totalorder %s16430_s19, %s14543_s7  ;;  %p16558_p0 = scmp.ne.s32.totalorder %s16541_s17, 0 }
  0x82   : > { %v463_v30 = vsub.f32 %v14933_v16, %v462_v22  ;;  %v470_v31 = vsub.f32 %v14935_v17, %v469_v23  ;;  %v477_v36 = vsub.f32 %v14937_v20, %v476_v28  ;;  %v490_v38 = vand.u32 4294901760, %v14948_v29  ;;  %s14670_s8 = smov [#allocation9]  }
  0x83   : > { %v484_v41 = vsub.f32 %v14944_v24, %v483_v32  ;;  %v497_v42 = vand.u32 4294901760, %v14957_v34  ;;  %v396_v45 = vand.u32 4294901760, %v358_v33  ;;  %v14976_v48 = vsub.f32 %v355_v18, %v387_v26  ;;  %p14545_p4 = pnand %p14544_p11, %p16558_p0  ;;  %s14547_s16 = sshll.u32 %s14670_s8, 4  ;;  %s14548_s16 = int_to_ptr.vmem [resolvable:$false] %s14547_s16 }
  0x84   : > { %12923 = vmatpush3.bf16.msra.mxu0 %v14940_v21  ;;  %v464_v39 = vand.u32 4294901760, %v463_v30  ;;  %v471_v40 = vand.u32 4294901760, %v470_v31  ;;  %v478_v44 = vand.u32 4294901760, %v477_v36  ;;  %v491_v46 = vsub.f32 %v14948_v29, %v490_v38  ;;  %s14549_s11 = scalar_lea.vmem %s14548_s16, 2048  ;;  %p14550_p5 = scmp.lt.s32.totalorder %s16430_s19, %s14548_s16 }
  0x85   : > { %12924 = vmatprep.subr.bf16.mxu0 %v16525_v4  ;;  %v485_v50 = vand.u32 4294901760, %v484_v41  ;;  %v498_v51 = vsub.f32 %v14957_v34, %v497_v42  ;;  %v14983_v52 = vsub.f32 %v356_v19, %v390_v27  ;;  %v14985_v54 = vpack.c.bf16 %v390_v27, %v387_v26  ;;  %p14546_p3 = pneg %p14545_p4  ;;  %p14551_p9 = scmp.lt.s32.totalorder %s14549_s11, %s14543_s7 }
  0x86   : > { %v14978_v49 = vpack.c.bf16 %v471_v40, %v464_v39  ;;  %v492_v55 = vand.u32 4294901760, %v491_v46  ;;  %v399_v56 = vand.u32 4294901760, %v14970_v43  ;;  %v504_v57 = vand.u32 4294901760, %v14976_v48 }
  0x87   : > { %v14993_v60 = vpack.c.bf16 %v485_v50, %v478_v44  ;;  %v499_v61 = vand.u32 4294901760, %v498_v51  ;;  %v402_v62 = vand.u32 4294901760, %v360_v47  ;;  %v511_v63 = vand.u32 4294901760, %v14983_v52  ;;  %p14552_p12 = por %p14551_p9, %p14550_p5 }
  0x88   : > { %12926 = vmatpush3.bf16.msra.mxu0 %v14959_v35  ;;  %12944 = vmatpush3.bf16.msra.mxu1 %v14978_v49  ;;  %v505_v0 = vsub.f32 %v14976_v48, %v504_v57  ;;  %v405_v1 = vand.u32 4294901760, %v361_v53  ;;  %v15001_v2 = vsub.f32 %v357_v25, %v393_v37  ;;  %v15003_v3 = vsub.f32 %v358_v33, %v396_v45 }
  0x89   : > { %12927 = vmatprep.subr.bf16.mxu0 %v16525_v4  ;;  %12945 = vmatprep.subr.bf16.mxu1 %v16525_v4  ;;  %v15005_v6 = vpack.c.bf16 %v396_v45, %v393_v37  ;;  %v512_v7 = vsub.f32 %v14983_v52, %v511_v63  ;;  %v408_v8 = vand.u32 4294901760, %v362_v58  ;;  %v411_v9 = vand.u32 4294901760, %v14989_v59  ;;  %p14553_p1 = pnand %p14552_p12, %p14546_p3 }
  0x8a   : > { %v15011_v10 = vpack.c.bf16 %v499_v61, %v492_v55  ;;  %v518_v11 = vand.u32 4294901760, %v15001_v2  ;;  %v525_v12 = vand.u32 4294901760, %v15003_v3  ;;  %v15016_v18 = vsub.f32 %v14970_v43, %v399_v56 }
  0x8b   : > { %v506_v19 = vand.u32 4294901760, %v505_v0  ;;  %v513_v25 = vand.u32 4294901760, %v512_v7  ;;  %v15020_v26 = vsub.f32 %v360_v47, %v402_v62  ;;  %v15022_v27 = vand.u32 4294901760, %v366_v5 }
  0x8c   : > { %12929 = vmatpush3.bf16.msra.mxu0 %v14985_v54  ;;  %12947 = vmatpush3.bf16.msra.mxu1 %v14993_v60  ;;  %v519_v30 = vsub.f32 %v15001_v2, %v518_v11  ;;  %v526_v31 = vsub.f32 %v15003_v3, %v525_v12  ;;  %v532_v33 = vand.u32 4294901760, %v15016_v18  ;;  %v15033_v36 = vsub.f32 %v361_v53, %v405_v1 }
  0x8d   : > { %12930 = vmatprep.subr.bf16.mxu0 %v16525_v4  ;;  %12948 = vmatprep.subr.bf16.mxu1 %v16525_v4  ;;  %v414_v37 = vand.u32 4294901760, %v364_v15  ;;  %v539_v39 = vand.u32 4294901760, %v15020_v26  ;;  %v15037_v40 = vsub.f32 %v366_v5, %v15022_v27  ;;  %v15039_v41 = vsub.f32 %v362_v58, %v408_v8 }
  0x8e   : > { %v520_v43 = vand.u32 4294901760, %v519_v30  ;;  %v527_v44 = vand.u32 4294901760, %v526_v31  ;;  %v533_v45 = vsub.f32 %v15016_v18, %v532_v33  ;;  %v546_v46 = vand.u32 4294901760, %v15033_v36 }
  0x8f   : > { %v15047_v47 = vpack.c.bf16 %v402_v62, %v399_v56  ;;  %v15049_v50 = vpack.c.bf16 %v513_v25, %v506_v19  ;;  %v540_v51 = vsub.f32 %v15020_v26, %v539_v39  ;;  %v553_v53 = vand.u32 4294901760, %v15039_v41 }
  0x90   : > { %12932 = vmatpush3.bf16.msra.mxu0 %v15005_v6  ;;  %12950 = vmatpush3.bf16.msra.mxu1 %v15011_v10  ;;  %v15058_v55 = vsub.f32 %v14989_v59, %v411_v9  ;;  %v15060_v58 = vpack.c.bf16 %v408_v8, %v405_v1  ;;  %v15062_v61 = vsub.f32 %v364_v15, %v414_v37  ;;  %v534_v62 = vand.u32 4294901760, %v533_v45 }
  0x91   : > { %12933 = vmatprep.subr.bf16.mxu0 %v16525_v4  ;;  %12951 = vmatprep.subr.bf16.mxu1 %v16525_v4  ;;  %v15064_v56 = vpack.c.bf16 %v527_v44, %v520_v43  ;;  %v451_v0 = vand.u32 4294901760, %v15037_v40  ;;  %v547_v5 = vsub.f32 %v15033_v36, %v546_v46  ;;  %v541_v7 = vand.u32 4294901760, %v540_v51 }
  0x92   : > { %v554_v59 = vsub.f32 %v15039_v41, %v553_v53  ;;  %v560_v1 = vand.u32 4294901760, %v15058_v55  ;;  %v567_v8 = vand.u32 4294901760, %v15062_v61  ;;  %v15079_v15 = vpack.c.bf16 %v414_v37, %v411_v9 }
  0x93   : > { %v452_v19 = vsub.f32 %v15037_v40, %v451_v0  ;;  %v548_v25 = vand.u32 4294901760, %v547_v5  ;;  %v15086_v30 = vpack.c.bf16 %v541_v7, %v534_v62  ;;  %v15102_v45 = vpack.c.bf16 %v14935_v17, %v14933_v16 }
  0x94   : > { %12935 = vmatpush3.bf16.msra.mxu0 %v15047_v47  ;;  %12953 = vmatpush3.bf16.msra.mxu1 %v15049_v50  ;;  %v555_v31 = vand.u32 4294901760, %v554_v59  ;;  %v561_v43 = vsub.f32 %v15058_v55, %v560_v1  ;;  %v568_v9 = vsub.f32 %v15062_v61, %v567_v8  ;;  %v15112_v7 = vpack.c.bf16 %v14944_v24, %v14937_v20  ;;  %v367_v24 = vld [vmem:[%s14909_s20] sm:$0xff] }
  0x95   : > { %12936 = vmatprep.subr.bf16.mxu0 %v16525_v4  ;;  %12954 = vmatprep.subr.bf16.mxu1 %v16525_v4  ;;  %v453_v37 = vand.u32 4294901760, %v452_v19  ;;  %v15122_v59 = vpack.c.bf16 %v14957_v34, %v14948_v29  ;;  %v15131_v19 = vpack.c.bf16 %v14983_v52, %v14976_v48  ;;  %v15198_v16 = vpack.c.bf16 %v497_v42, %v490_v38  ;;  %v347_v38 = vld [vmem:[#allocation6 + $0x10] sm:$0xff]  ;;  %v348_v42 = vld [vmem:[#allocation6 + $0x18] sm:$0xff] }
  0x96   : > { %v15098_v44 = vpack.c.bf16 %v555_v31, %v548_v25  ;;  %v562_v51 = vand.u32 4294901760, %v561_v43  ;;  %v569_v62 = vand.u32 4294901760, %v568_v9  ;;  %v15141_v25 = vpack.c.bf16 %v15003_v3, %v15001_v2 }
  0x97   : > { %v15149_v31 = vpack.c.bf16 %v15020_v26, %v15016_v18  ;;  %v15157_v43 = vpack.c.bf16 %v15039_v41, %v15033_v36  ;;  %v15165_v9 = vpack.c.bf16 %v15062_v61, %v15058_v55  ;;  %v15210_v17 = vpack.c.bf16 %v511_v63, %v504_v57 }
  0x98   : > { %12938 = vmatpush3.bf16.msra.mxu0 %v15060_v58  ;;  %12956 = vmatpush3.bf16.msra.mxu1 %v15064_v56  ;;  %16547 = vst [vmem:[#allocation17_spill] sm:$0xff] %v15098_v44  ;;  %v15108_v5 = vpack.c.bf16 %v569_v62, %v562_v51  ;;  %v15186_v51 = vpack.c.bf16 %v483_v32, %v476_v28  ;;  %vm1009_vm1 = vcmask 261120   ;;  %v1020_v57 = vand.u32 4294901760, %v347_v38 }
  0x99   : > { %12939 = vmatprep.subr.bf16.mxu0 %v16525_v4  ;;  %12957 = vmatprep.subr.bf16.mxu1 %v16525_v4  ;;  %v15222_v20 = vpack.c.bf16 %v525_v12, %v518_v11  ;;  %v15233_v28 = vpack.c.bf16 %v539_v39, %v532_v33  ;;  %v1011_v34 = vsel %vm1009_vm1, %v367_v24, 0  ;;  %v15242_v48 = vpack.c.bf16 %v553_v53, %v546_v46 }
  0x9a   : > { %16548 = vst [vmem:[#allocation18_spill] sm:$0xff] %v15108_v5  ;;  %v15244_v52 = vand.u32 4294901760, %v1011_v34  ;;  %v1023_v63 = vand.u32 4294901760, %v348_v42  ;;  %v15254_v11 = vpack.c.bf16 %v567_v8, %v560_v1  ;;  %v1108_v33 = vsub.f32 %v347_v38, %v1020_v57 }
  0x9c   : > { %12941 = vmatpush3.bf16.msra.mxu0 %v15079_v15  ;;  %12959 = vmatpush3.bf16.msra.mxu1 %v15086_v30  ;;  %v15257_v12 = vsub.f32 %v1011_v34, %v15244_v52  ;;  %v1115_v36 = vsub.f32 %v348_v42, %v1023_v63  ;;  %v1109_v53 = vand.u32 4294901760, %v1108_v33  ;;  %v15271_v61 = vpack.c.bf16 %v1023_v63, %v1020_v57 }
  0x9d   : > { %12960 = vmatprep.subr.bf16.mxu1 %v16525_v4  ;;  %12966 = vmatprep.subr.bf16.mxu0 %v16525_v4 }
  0x9e   : > { %v1116_v55 = vand.u32 4294901760, %v1115_v36  ;;  %v1110_v62 = vsub.f32 %v1108_v33, %v1109_v53  ;;  %v15293_v42 = vpack.c.bf16 %v1115_v36, %v1108_v33 }
  0x9f   : > { %10743 = vmatmul.mubr.f32.vlgmr.msra.gmra.mrb[0].mxu0 %v453_v37  ;;  %v15175_v37 = vpack.c.bf16 %v469_v23, %v462_v22  ;;  %v345_v22 = vld [vmem:[#allocation6] sm:$0xff]  ;;  %v346_v23 = vld [vmem:[#allocation6 + $0x8] sm:$0xff] }
  0xa0   : > { %12962 = vmatpush3.bf16.msra.mxu1 %v15098_v44  ;;  %12968 = vmatpush3.bf16.msra.mxu0 %v15102_v45  ;;  %v1014_v29 = vand.u32 4294901760, %v345_v22  ;;  %v1017_v32 = vand.u32 4294901760, %v346_v23  ;;  %v15311_v57 = vpack.c.bf16 %v1116_v55, %v1109_v53 }
  0xa1   : > { %12963 = vmatprep.subr.bf16.mxu1 %v16525_v4  ;;  %12969 = vmatprep.subr.bf16.mxu0 %v16525_v4 }
  0xa2   : > { %10812 = vmatprep.mubr.msk.f32.mxu0 %vm14667_vm0, %v16527_v13  ;;  %v1094_v2 = vsub.f32 %v345_v22, %v1014_v29  ;;  %v1101_v3 = vsub.f32 %v346_v23, %v1017_v32  ;;  %v15263_v39 = vpack.c.bf16 %v1017_v32, %v1014_v29  ;;  %v1117_v22 = vsub.f32 %v1115_v36, %v1116_v55 }
  0xa3   : > { %v1111_v32 = vand.u32 4294901760, %v1110_v62 }
  0xa4   : > { %12965 = vmatpush3.bf16.msra.mxu1 %v15108_v5  ;;  %12971 = vmatpush3.bf16.msra.mxu0 %v15112_v7  ;;  %v1095_v18 = vand.u32 4294901760, %v1094_v2  ;;  %v1102_v26 = vand.u32 4294901760, %v1101_v3  ;;  %v15284_v29 = vpack.c.bf16 %v1101_v3, %v1094_v2  ;;  %v1118_v34 = vand.u32 4294901760, %v1117_v22 }
  0xa5   : > { %12972 = vmatprep.subr.bf16.mxu0 %v16525_v4  ;;  %12990 = vmatprep.subr.bf16.mxu1 %v16525_v4 }
  0xa6   : > { %v1096_v41 = vsub.f32 %v1094_v2, %v1095_v18  ;;  %v1103_v46 = vsub.f32 %v1101_v3, %v1102_v26  ;;  %v15291_v38 = vpack.c.bf16 %v1118_v34, %v1111_v32 }
  0xa7   : > { %10778 = vmatmul.mubr.f32.vlgmr.msra.gmra.mrb[0].mxu1 %v15022_v27 }
  0xa8   : > { %12974 = vmatpush3.bf16.msra.mxu0 %v15122_v59  ;;  %12992 = vmatpush3.bf16.msra.mxu1 %v14931_v14  ;;  %v1097_v1 = vand.u32 4294901760, %v1096_v41  ;;  %v1104_v8 = vand.u32 4294901760, %v1103_v46 }
  0xa9   : > { %12975 = vmatprep.subr.bf16.mxu0 %v16525_v4  ;;  %12993 = vmatprep.subr.bf16.mxu1 %v16525_v4 }
  0xaa   : > { %10847 = vmatprep.mubr.msk.f32.mxu1 %vm14667_vm0, %v16527_v13  ;;  %v15282_v24 = vpack.c.bf16 %v1104_v8, %v1097_v1 }
  0xac   : > { %12977 = vmatpush3.bf16.msra.mxu0 %v15131_v19  ;;  %12995 = vmatpush3.bf16.msra.mxu1 %v14940_v21 }
  0xad   : > { %12978 = vmatprep.subr.bf16.mxu0 %v16525_v4  ;;  %12996 = vmatprep.subr.bf16.mxu1 %v16525_v4 }
  0xb0   : > { %12980 = vmatpush3.bf16.msra.mxu0 %v15141_v25  ;;  %12998 = vmatpush3.bf16.msra.mxu1 %v14959_v35 }
  0xb1   : > { %12981 = vmatprep.subr.bf16.mxu0 %v16525_v4  ;;  %12999 = vmatprep.subr.bf16.mxu1 %v16525_v4 }
  0xb4   : > { %12983 = vmatpush3.bf16.msra.mxu0 %v15149_v31  ;;  %13001 = vmatpush3.bf16.msra.mxu1 %v14985_v54 }
  0xb5   : > { %12984 = vmatprep.subr.bf16.mxu0 %v16525_v4  ;;  %13002 = vmatprep.subr.bf16.mxu1 %v16525_v4 }
  0xb8   : > { %12986 = vmatpush3.bf16.msra.mxu0 %v15157_v43  ;;  %13004 = vmatpush3.bf16.msra.mxu1 %v15005_v6 }
  0xb9   : > { %12987 = vmatprep.subr.bf16.mxu0 %v16525_v4  ;;  %13005 = vmatprep.subr.bf16.mxu1 %v16525_v4 }
  0xbc   : > { %12989 = vmatpush3.bf16.msra.mxu0 %v15165_v9  ;;  %13007 = vmatpush3.bf16.msra.mxu1 %v15047_v47 }
  0xbd   : > { %13008 = vmatprep.subr.bf16.mxu1 %v16525_v4  ;;  %13014 = vmatprep.subr.bf16.mxu0 %v16525_v4 }
  0xbf   : > { %10813 = vmatmul.mubr.f32.vlgmr.msra.gmra.mrb[2].mxu0 %v15037_v40  ;;  %v1084_v40 = vand.u32 4294901760, %v15257_v12 }
  0xc0   : > { %13010 = vmatpush3.bf16.msra.mxu1 %v15060_v58  ;;  %13016 = vmatpush3.bf16.msra.mxu0 %v15175_v37 }
  0xc1   : > { %13011 = vmatprep.subr.bf16.mxu1 %v16525_v4  ;;  %13017 = vmatprep.subr.bf16.mxu0 %v16525_v4 }
  0xc2   : > { %10882 = vmatprep.mubr.msk.f32.mxu0 %vm14667_vm0, %v16527_v13 }
  0xc4   : > { %13013 = vmatpush3.bf16.msra.mxu1 %v15079_v15  ;;  %13019 = vmatpush3.bf16.msra.mxu0 %v15186_v51 }
  0xc5   : > { %13020 = vmatprep.subr.bf16.mxu0 %v16525_v4  ;;  %13038 = vmatprep.subr.bf16.mxu1 %v16525_v4 }
  0xc7   : > { %10848 = vmatmul.mubr.f32.vlgmr.msra.gmra.mrb[2].mxu1 %v451_v0  ;;  %v1085_v0 = vsub.f32 %v15257_v12, %v1084_v40 }
  0xc8   : > { %13022 = vmatpush3.bf16.msra.mxu0 %v15198_v16  ;;  %13040 = vmatpush3.bf16.msra.mxu1 %v14931_v14 }
  0xc9   : > { %13023 = vmatprep.subr.bf16.mxu0 %v16525_v4  ;;  %13041 = vmatprep.subr.bf16.mxu1 %v16525_v4  ;;  %v1086_v23 = vand.u32 4294901760, %v1085_v0 }
  0xca   : > { %10917 = vmatprep.mubr.msk.f32.mxu1 %vm14667_vm0, %v16527_v13 }
  0xcc   : > { %13025 = vmatpush3.bf16.msra.mxu0 %v15210_v17  ;;  %13043 = vmatpush3.bf16.msra.mxu1 %v14940_v21 }
  0xcd   : > { %13026 = vmatprep.subr.bf16.mxu0 %v16525_v4  ;;  %13044 = vmatprep.subr.bf16.mxu1 %v16525_v4 }
  0xd0   : > { %13028 = vmatpush3.bf16.msra.mxu0 %v15222_v20  ;;  %13046 = vmatpush3.bf16.msra.mxu1 %v14959_v35 }
  0xd1   : > { %13029 = vmatprep.subr.bf16.mxu0 %v16525_v4  ;;  %13047 = vmatprep.subr.bf16.mxu1 %v16525_v4 }
  0xd4   : > { %13031 = vmatpush3.bf16.msra.mxu0 %v15233_v28  ;;  %13049 = vmatpush3.bf16.msra.mxu1 %v14985_v54 }
  0xd5   : > { %13032 = vmatprep.subr.bf16.mxu0 %v16525_v4  ;;  %13050 = vmatprep.subr.bf16.mxu1 %v16525_v4 }
  0xd8   : > { %13034 = vmatpush3.bf16.msra.mxu0 %v15242_v48  ;;  %13052 = vmatpush3.bf16.msra.mxu1 %v15005_v6 }
  0xd9   : > { %13035 = vmatprep.subr.bf16.mxu0 %v16525_v4  ;;  %13053 = vmatprep.subr.bf16.mxu1 %v16525_v4 }
  0xdc   : > { %13037 = vmatpush3.bf16.msra.mxu0 %v15254_v11  ;;  %13055 = vmatpush3.bf16.msra.mxu1 %v15047_v47 }
  0xdd   : > { %13056 = vmatprep.subr.bf16.mxu1 %v16525_v4  ;;  %13062 = vmatprep.subr.bf16.mxu0 %v16525_v4 }
  0xdf   : > { %10883 = vmatmul.mubr.f32.vlgmr.msra.gmra.mrb[4].mxu0 %v15022_v27 }
  0xe0   : > { %13058 = vmatpush3.bf16.msra.mxu1 %v15060_v58  ;;  %13064 = vmatpush3.bf16.msra.mxu0 %v15263_v39 }
  0xe1   : > { %13059 = vmatprep.subr.bf16.mxu1 %v16525_v4  ;;  %13065 = vmatprep.subr.bf16.mxu0 %v16525_v4 }
  0xe2   : > { %10928 = vmatprep.mubr.msk.f32.mxu0 %vm14667_vm0, %v16527_v13 }
  0xe4   : > { %13061 = vmatpush3.bf16.msra.mxu1 %v15079_v15  ;;  %13067 = vmatpush3.bf16.msra.mxu0 %v15271_v61 }
  0xe5   : > { %13068 = vmatprep.subr.bf16.mxu1 %v16525_v4  ;;  %13074 = vmatprep.subr.bf16.mxu0 %v16525_v4 }
  0xe7   : > { %10918 = vmatmul.mubr.f32.vlgmr.msra.gmra.mrb[4].mxu1 %v15022_v27  ;;  %10929 = vmatmul.mubr.f32.vlgmr.msra.gmra.mrb[6].mxu0 %v1086_v23  ;;  %v15303_v27 = vpack.c.bf16 %v1102_v26, %v1095_v18 }
  0xe8   : > { %13070 = vmatpush3.bf16.msra.mxu1 %v15282_v24  ;;  %13076 = vmatpush3.bf16.msra.mxu0 %v15284_v29 }
  0xe9   : > { %13071 = vmatprep.subr.bf16.mxu1 %v16525_v4  ;;  %13077 = vmatprep.subr.bf16.mxu0 %v16525_v4 }
  0xea   : > { %10939 = vmatprep.mubr.msk.f32.mxu1 %vm14667_vm0, %v16527_v13  ;;  %10950 = vmatprep.mubr.msk.f32.mxu0 %vm14667_vm0, %v16527_v13 }
  0xec   : > { %13073 = vmatpush3.bf16.msra.mxu1 %v15291_v38  ;;  %13079 = vmatpush3.bf16.msra.mxu0 %v15293_v42 }
  0xed   : > { %13080 = vmatprep.subr.bf16.mxu1 %v16525_v4  ;;  %13086 = vmatprep.subr.bf16.mxu0 %v16525_v4 }
  0xef   : > { %10940 = vmatmul.mubr.f32.vlgmr.msra.gmra.mrb[6].mxu1 %v15244_v52  ;;  %10951 = vmatmul.mubr.f32.vlgmr.msra.gmra.mrb[8].mxu0 %v15257_v12 }
  0xf0   : > { %13082 = vmatpush3.bf16.msra.mxu1 %v15263_v39  ;;  %13088 = vmatpush3.bf16.msra.mxu0 %v15303_v27 }
  0xf1   : > { %13083 = vmatprep.subr.bf16.mxu1 %v16525_v4  ;;  %13089 = vmatprep.subr.bf16.mxu0 %v16525_v4 }
  0xf2   : > { %10961 = vmatprep.mubr.msk.f32.mxu1 %vm14667_vm0, %v16527_v13  ;;  %10972 = vmatprep.mubr.msk.f32.mxu0 %vm14667_vm0, %v16527_v13 }
  0xf4   : > { %13085 = vmatpush3.bf16.msra.mxu1 %v15271_v61  ;;  %13091 = vmatpush3.bf16.msra.mxu0 %v15311_v57 }
  0xf5   : > { %13092 = vmatprep.subr.bf16.mxu1 %v16525_v4  ;;  %13098 = vmatprep.subr.bf16.mxu0 %v16525_v4 }
  0xf7   : > { %10962 = vmatmul.mubr.f32.vlgmr.msra.gmra.mrb[8].mxu1 %v1084_v40  ;;  %10973 = vmatmul.mubr.f32.vlgmr.msra.gmra.mrb[10].mxu0 %v15244_v52 }
  0xf8   : > { %13094 = vmatpush3.bf16.msra.mxu1 %v15263_v39  ;;  %10983 = vmatprep.mubr.msk.f32.mxu1 %vm14667_vm0, %v16527_v13 }
  0xf9   : > { %13095 = vmatprep.subr.bf16.mxu1 %v16525_v4  ;;  %13100 = vmatpush3.bf16.msra.mxu0 %v14931_v14 }
  0xfa   : > { %13101 = vmatprep.subr.bf16.mxu0 %v16525_v4  ;;  %11018 = vmatprep.mubr.msk.f32.mxu0 %vm14667_vm0, %v16527_v13 }
  0xfc   : > { %13097 = vmatpush3.bf16.msra.mxu1 %v15271_v61 }
  0xfd   : > { %13122 = vmatprep.subr.bf16.mxu1 %v16525_v4  ;;  %13103 = vmatpush3.bf16.msra.mxu0 %v14940_v21 }
  0xfe   : > { %13104 = vmatprep.subr.bf16.mxu0 %v16525_v4 }
  0xff   : > { %10984 = vmatmul.mubr.f32.vlgmr.msra.gmra.mrb[10].mxu1 %v15244_v52 }
 0x100   : > { %13124 = vmatpush3.bf16.msra.mxu1 %v14978_v49  ;;  %11053 = vmatprep.mubr.msk.f32.mxu1 %vm14667_vm0, %v16527_v13 }
 0x101   : > { %13125 = vmatprep.subr.bf16.mxu1 %v16525_v4  ;;  %13106 = vmatpush3.bf16.msra.mxu0 %v14959_v35 }
 0x102   : > { %13107 = vmatprep.subr.bf16.mxu0 %v16525_v4 }
 0x104   : > { %13127 = vmatpush3.bf16.msra.mxu1 %v14993_v60 }
 0x105   : > { %13128 = vmatprep.subr.bf16.mxu1 %v16525_v4  ;;  %13109 = vmatpush3.bf16.msra.mxu0 %v14985_v54 }
 0x106   : > { %13110 = vmatprep.subr.bf16.mxu0 %v16525_v4 }
 0x108   : > { %13130 = vmatpush3.bf16.msra.mxu1 %v15011_v10 }
 0x109   : > { %13131 = vmatprep.subr.bf16.mxu1 %v16525_v4  ;;  %13112 = vmatpush3.bf16.msra.mxu0 %v15005_v6 }
 0x10a   : > { %13113 = vmatprep.subr.bf16.mxu0 %v16525_v4 }
 0x10c   : > { %13133 = vmatpush3.bf16.msra.mxu1 %v15049_v50 }
 0x10d   : > { %13134 = vmatprep.subr.bf16.mxu1 %v16525_v4  ;;  %13115 = vmatpush3.bf16.msra.mxu0 %v15047_v47 }
 0x10e   : > { %13116 = vmatprep.subr.bf16.mxu0 %v16525_v4 }
 0x110   : > { %13136 = vmatpush3.bf16.msra.mxu1 %v15064_v56 }
 0x111   : > { %13137 = vmatprep.subr.bf16.mxu1 %v16525_v4  ;;  %13118 = vmatpush3.bf16.msra.mxu0 %v15060_v58 }
 0x112   : > { %13119 = vmatprep.subr.bf16.mxu0 %v16525_v4 }
 0x114   : > { %13139 = vmatpush3.bf16.msra.mxu1 %v15086_v30 }
 0x115   : > { %13140 = vmatprep.subr.bf16.mxu1 %v16525_v4  ;;  %13121 = vmatpush3.bf16.msra.mxu0 %v15079_v15 }
 0x116   : > { %13146 = vmatprep.subr.bf16.mxu0 %v16525_v4 }
 0x118   : > { %13142 = vmatpush3.bf16.msra.mxu1 %v15098_v44 }
 0x119   : > { %13143 = vmatprep.subr.bf16.mxu1 %v16525_v4 }
 0x11c   : > { %13145 = vmatpush3.bf16.msra.mxu1 %v15108_v5 }
 0x11d   : > { %13170 = vmatprep.subr.bf16.mxu1 %v16525_v4 }
 0x172   : > { %v455_v52 = vpop.f32.mrb[0].mxu0 }
 0x173   : > { %v10744_v63 = vpop.f32.mrb[1].mxu0 }
 0x17a   : > { %v606_v2 = vpop.f32.mrb[0].mxu1 }
 0x17b   : > { %v607_v3 = vadd.f32 %v606_v2, %v455_v52  ;;  %v10779_v12 = vpop.f32.mrb[1].mxu1 }
 0x192   : > { %v710_v18 = vpop.f32.mrb[2].mxu0 }
 0x193   : > { %v711_v26 = vadd.f32 %v710_v18, %v607_v3  ;;  %v10814_v33 = vpop.f32.mrb[3].mxu0 }
 0x19a   : > { %v799_v36 = vpop.f32.mrb[2].mxu1 }
 0x19b   : > { %v800_v40 = vadd.f32 %v799_v36, %v711_v26  ;;  %v10849_v41 = vpop.f32.mrb[3].mxu1 }
 0x19c   : > { %v15370_v41 = vld [vmem:[%s16512_s3] ss:$0 sm:$0xff] }
 0x1b2   : > { %v918_v46 = vpop.f32.mrb[4].mxu0 }
 0x1b3   : > { %v919_v53 = vadd.f32 %v918_v46, %v800_v40  ;;  %v10884_v55 = vpop.f32.mrb[5].mxu0 }
 0x1ba   : > { %v1005_v0 = vpop.f32.mrb[4].mxu1  ;;  %v1088_v1 = vpop.f32.mrb[6].mxu0 }
 0x1bb   : > { %v1006_v8 = vadd.f32 %v1005_v0, %v919_v53  ;;  %v10919_v62 = vpop.f32.mrb[5].mxu1  ;;  %v10930_v22 = vpop.f32.mrb[7].mxu0 }
 0x1bd   : > { %v1089_v23 = vadd.f32 %v1088_v1, %v1006_v8 }
 0x1c2   : > { %v1179_v32 = vpop.f32.mrb[6].mxu1  ;;  %v1259_v34 = vpop.f32.mrb[8].mxu0 }
 0x1c3   : > { %v1180_v63 = vadd.f32 %v1179_v32, %v1089_v23  ;;  %v10941_v52 = vpop.f32.mrb[7].mxu1  ;;  %v10952_v2 = vpop.f32.mrb[9].mxu0 }
 0x1c5   : > { %v1260_v3 = vadd.f32 %v1259_v34, %v1180_v63  ;;  %v9631_v34 = vld [vmem:[%s14909_s20 + $0x8] sm:$0xff] }
 0x1c6   : > { %v2151_v63 = vsel %vm1009_vm1, %v9631_v34, 0 }
 0x1c7   : > { %v2222_v52 = vand.u32 4294901760, %v2151_v63 }
 0x1c9   : > { %v2223_v2 = vsub.f32 %v2151_v63, %v2222_v52 }
 0x1ca   : > { %v1336_v12 = vpop.f32.mrb[8].mxu1  ;;  %v1419_v18 = vpop.f32.mrb[10].mxu0 }
 0x1cb   : > { %v1337_v26 = vadd.f32 %v1336_v12, %v1260_v3  ;;  %v10963_v33 = vpop.f32.mrb[9].mxu1  ;;  %v10974_v36 = vpop.f32.mrb[11].mxu0  ;;  %v2224_v3 = vand.u32 4294901760, %v2223_v2 }
 0x1cd   : > { %v1420_v40 = vadd.f32 %v1419_v18, %v1337_v26  ;;  %v2225_v12 = vsub.f32 %v2223_v2, %v2224_v3 }
 0x1cf   : > { %v2226_v18 = vand.u32 4294901760, %v2225_v12 }
 0x1d2   : > { %v1494_v46 = vpop.f32.mrb[10].mxu1 }
 0x1d3   : > { %v1495_v53 = vadd.f32 %v1494_v46, %v1420_v40  ;;  %v10985_v55 = vpop.f32.mrb[11].mxu1 }
 0x1d5   : > { %v1504_v0 = vadd.f32 %v15370_v41, %v1495_v53 }
 0x1d7   : > { %v1505_v1 = vmax.f32 %v1504_v0, 0.0 }
 0x1d9   : > { %1506 = vst [vmem:[%s14919_s9] sm:$0xff] %v1505_v1  ;;  %v15374_v8 = vand.u32 4294901760, %v1505_v1 }
 0x1db   : > { %v1591_v62 = vsub.f32 %v1505_v1, %v15374_v8  ;;  %11054 = vmatmul.mubr.f32.vlgmr.msra.gmra.mrb[12].mxu1 %v15374_v8 }
 0x1dc   : > { %13172 = vmatpush3.bf16.msra.mxu1 %v14931_v14  ;;  %11123 = vmatprep.mubr.msk.f32.mxu1 %vm14667_vm0, %v16527_v13 }
 0x1dd   : > { %13173 = vmatprep.subr.bf16.mxu1 %v16525_v4  ;;  %v1592_v22 = vand.u32 4294901760, %v1591_v62 }
 0x1df   : > { %v1593_v23 = vsub.f32 %v1591_v62, %v1592_v22 }
 0x1e0   : > { %13175 = vmatpush3.bf16.msra.mxu1 %v14940_v21 }
 0x1e1   : > { %13176 = vmatprep.subr.bf16.mxu1 %v16525_v4  ;;  %v1594_v32 = vand.u32 4294901760, %v1593_v23 }
 0x1e3   : > { %11019 = vmatmul.mubr.f32.vlgmr.msra.gmra.mrb[12].mxu0 %v1594_v32 }
 0x1e4   : > { %13148 = vmatpush3.bf16.msra.mxu0 %v15102_v45  ;;  %13178 = vmatpush3.bf16.msra.mxu1 %v14959_v35 }
 0x1e5   : > { %13149 = vmatprep.subr.bf16.mxu0 %v16525_v4  ;;  %13179 = vmatprep.subr.bf16.mxu1 %v16525_v4 }
 0x1e6   : > { %11088 = vmatprep.mubr.msk.f32.mxu0 %vm14667_vm0, %v16527_v13 }
 0x1e8   : > { %13151 = vmatpush3.bf16.msra.mxu0 %v15112_v7  ;;  %13181 = vmatpush3.bf16.msra.mxu1 %v14985_v54 }
 0x1e9   : > { %13152 = vmatprep.subr.bf16.mxu0 %v16525_v4  ;;  %13182 = vmatprep.subr.bf16.mxu1 %v16525_v4 }
 0x1ec   : > { %13154 = vmatpush3.bf16.msra.mxu0 %v15122_v59  ;;  %13184 = vmatpush3.bf16.msra.mxu1 %v15005_v6 }
 0x1ed   : > { %13155 = vmatprep.subr.bf16.mxu0 %v16525_v4  ;;  %13185 = vmatprep.subr.bf16.mxu1 %v16525_v4 }
 0x1f0   : > { %13157 = vmatpush3.bf16.msra.mxu0 %v15131_v19  ;;  %13187 = vmatpush3.bf16.msra.mxu1 %v15047_v47 }
 0x1f1   : > { %13158 = vmatprep.subr.bf16.mxu0 %v16525_v4  ;;  %13188 = vmatprep.subr.bf16.mxu1 %v16525_v4 }
 0x1f4   : > { %13160 = vmatpush3.bf16.msra.mxu0 %v15141_v25  ;;  %13190 = vmatpush3.bf16.msra.mxu1 %v15060_v58 }
 0x1f5   : > { %13161 = vmatprep.subr.bf16.mxu0 %v16525_v4  ;;  %13191 = vmatprep.subr.bf16.mxu1 %v16525_v4 }
 0x1f8   : > { %13163 = vmatpush3.bf16.msra.mxu0 %v15149_v31  ;;  %13193 = vmatpush3.bf16.msra.mxu1 %v15079_v15 }
 0x1f9   : > { %13164 = vmatprep.subr.bf16.mxu0 %v16525_v4  ;;  %13218 = vmatprep.subr.bf16.mxu1 %v16525_v4 }
 0x1fb   : > { %11124 = vmatmul.mubr.f32.vlgmr.msra.gmra.mrb[14].mxu1 %v1592_v22 }
 0x1fc   : > { %13166 = vmatpush3.bf16.msra.mxu0 %v15157_v43  ;;  %13220 = vmatpush3.bf16.msra.mxu1 %v14931_v14 }
 0x1fd   : > { %13167 = vmatprep.subr.bf16.mxu0 %v16525_v4  ;;  %13221 = vmatprep.subr.bf16.mxu1 %v16525_v4 }
 0x1fe   : > { %11193 = vmatprep.mubr.msk.f32.mxu1 %vm14667_vm0, %v16527_v13 }
 0x200   : > { %13169 = vmatpush3.bf16.msra.mxu0 %v15165_v9  ;;  %13223 = vmatpush3.bf16.msra.mxu1 %v14940_v21 }
 0x201   : > { %13194 = vmatprep.subr.bf16.mxu0 %v16525_v4  ;;  %13224 = vmatprep.subr.bf16.mxu1 %v16525_v4 }
 0x203   : > { %11089 = vmatmul.mubr.f32.vlgmr.msra.gmra.mrb[14].mxu0 %v1591_v62 }
 0x204   : > { %13196 = vmatpush3.bf16.msra.mxu0 %v15175_v37  ;;  %13226 = vmatpush3.bf16.msra.mxu1 %v14959_v35 }
 0x205   : > { %13197 = vmatprep.subr.bf16.mxu0 %v16525_v4  ;;  %13227 = vmatprep.subr.bf16.mxu1 %v16525_v4 }
 0x206   : > { %11158 = vmatprep.mubr.msk.f32.mxu0 %vm14667_vm0, %v16527_v13 }
 0x208   : > { %13199 = vmatpush3.bf16.msra.mxu0 %v15186_v51  ;;  %13229 = vmatpush3.bf16.msra.mxu1 %v14985_v54 }
 0x209   : > { %13200 = vmatprep.subr.bf16.mxu0 %v16525_v4  ;;  %13230 = vmatprep.subr.bf16.mxu1 %v16525_v4 }
 0x20c   : > { %13202 = vmatpush3.bf16.msra.mxu0 %v15198_v16  ;;  %13232 = vmatpush3.bf16.msra.mxu1 %v15005_v6 }
 0x20d   : > { %13203 = vmatprep.subr.bf16.mxu0 %v16525_v4  ;;  %13233 = vmatprep.subr.bf16.mxu1 %v16525_v4 }
 0x210   : > { %13205 = vmatpush3.bf16.msra.mxu0 %v15210_v17  ;;  %13235 = vmatpush3.bf16.msra.mxu1 %v15047_v47 }
 0x211   : > { %13206 = vmatprep.subr.bf16.mxu0 %v16525_v4  ;;  %13236 = vmatprep.subr.bf16.mxu1 %v16525_v4 }
 0x214   : > { %13208 = vmatpush3.bf16.msra.mxu0 %v15222_v20  ;;  %13238 = vmatpush3.bf16.msra.mxu1 %v15060_v58 }
 0x215   : > { %13209 = vmatprep.subr.bf16.mxu0 %v16525_v4  ;;  %13239 = vmatprep.subr.bf16.mxu1 %v16525_v4 }
 0x218   : > { %13211 = vmatpush3.bf16.msra.mxu0 %v15233_v28  ;;  %13241 = vmatpush3.bf16.msra.mxu1 %v15079_v15 }
 0x219   : > { %13212 = vmatprep.subr.bf16.mxu0 %v16525_v4  ;;  %13248 = vmatprep.subr.bf16.mxu1 %v16525_v4 }
 0x21b   : > { %11194 = vmatmul.mubr.f32.vlgmr.msra.gmra.mrb[16].mxu1 %v15374_v8 }
 0x21c   : > { %13214 = vmatpush3.bf16.msra.mxu0 %v15242_v48  ;;  %13250 = vmatpush3.bf16.msra.mxu1 %v15282_v24 }
 0x21d   : > { %13215 = vmatprep.subr.bf16.mxu0 %v16525_v4  ;;  %13251 = vmatprep.subr.bf16.mxu1 %v16525_v4 }
 0x21e   : > { %11215 = vmatprep.mubr.msk.f32.mxu1 %vm14667_vm0, %v16527_v13 }
 0x220   : > { %13217 = vmatpush3.bf16.msra.mxu0 %v15254_v11  ;;  %13253 = vmatpush3.bf16.msra.mxu1 %v15291_v38 }
 0x221   : > { %13242 = vmatprep.subr.bf16.mxu0 %v16525_v4  ;;  %13260 = vmatprep.subr.bf16.mxu1 %v16525_v4 }
 0x223   : > { %11159 = vmatmul.mubr.f32.vlgmr.msra.gmra.mrb[16].mxu0 %v15374_v8  ;;  %11216 = vmatmul.mubr.f32.vlgmr.msra.gmra.mrb[18].mxu1 %v2222_v52 }
 0x224   : > { %13244 = vmatpush3.bf16.msra.mxu0 %v15263_v39  ;;  %11204 = vmatprep.mubr.msk.f32.mxu0 %vm14667_vm0, %v16527_v13 }
 0x225   : > { %13245 = vmatprep.subr.bf16.mxu0 %v16525_v4  ;;  %13262 = vmatpush3.bf16.msra.mxu1 %v15263_v39 }
 0x226   : > { %13263 = vmatprep.subr.bf16.mxu1 %v16525_v4  ;;  %11237 = vmatprep.mubr.msk.f32.mxu1 %vm14667_vm0, %v16527_v13 }
 0x228   : > { %13247 = vmatpush3.bf16.msra.mxu0 %v15271_v61 }
 0x229   : > { %13254 = vmatprep.subr.bf16.mxu0 %v16525_v4  ;;  %13265 = vmatpush3.bf16.msra.mxu1 %v15271_v61 }
 0x22a   : > { %13272 = vmatprep.subr.bf16.mxu1 %v16525_v4 }
 0x22b   : > { %11205 = vmatmul.mubr.f32.vlgmr.msra.gmra.mrb[18].mxu0 %v2226_v18 }
 0x22c   : > { %13256 = vmatpush3.bf16.msra.mxu0 %v15284_v29  ;;  %11226 = vmatprep.mubr.msk.f32.mxu0 %vm14667_vm0, %v16527_v13 }
 0x22d   : > { %13257 = vmatprep.subr.bf16.mxu0 %v16525_v4  ;;  %11238 = vmatmul.mubr.f32.vlgmr.msra.gmra.mrb[20].mxu1 %v2224_v3 }
 0x22e   : > { %13274 = vmatpush3.bf16.msra.mxu1 %v15263_v39  ;;  %11259 = vmatprep.mubr.msk.f32.mxu1 %vm14667_vm0, %v16527_v13 }
 0x22f   : > { %13275 = vmatprep.subr.bf16.mxu1 %v16525_v4 }
 0x230   : > { %13259 = vmatpush3.bf16.msra.mxu0 %v15293_v42 }
 0x231   : > { %13266 = vmatprep.subr.bf16.mxu0 %v16525_v4 }
 0x232   : > { %13277 = vmatpush3.bf16.msra.mxu1 %v15271_v61 }
 0x233   : > { %11227 = vmatmul.mubr.f32.vlgmr.msra.gmra.mrb[20].mxu0 %v2223_v2  ;;  %13302 = vmatprep.subr.bf16.mxu1 %v16525_v4 }
 0x234   : > { %13268 = vmatpush3.bf16.msra.mxu0 %v15303_v27  ;;  %11248 = vmatprep.mubr.msk.f32.mxu0 %vm14667_vm0, %v16527_v13 }
 0x235   : > { %13269 = vmatprep.subr.bf16.mxu0 %v16525_v4  ;;  %11260 = vmatmul.mubr.f32.vlgmr.msra.gmra.mrb[22].mxu1 %v2222_v52 }
 0x236   : > { %13304 = vmatpush3.bf16.msra.mxu1 %v14978_v49  ;;  %11329 = vmatprep.mubr.msk.f32.mxu1 %vm14667_vm0, %v16527_v13 }
 0x237   : > { %13305 = vmatprep.subr.bf16.mxu1 %v16525_v4 }
 0x238   : > { %13271 = vmatpush3.bf16.msra.mxu0 %v15311_v57 }
 0x239   : > { %13278 = vmatprep.subr.bf16.mxu0 %v16525_v4 }
 0x23a   : > { %13307 = vmatpush3.bf16.msra.mxu1 %v14993_v60 }
 0x23b   : > { %11249 = vmatmul.mubr.f32.vlgmr.msra.gmra.mrb[22].mxu0 %v2222_v52  ;;  %13308 = vmatprep.subr.bf16.mxu1 %v16525_v4 }
 0x23c   : > { %13280 = vmatpush3.bf16.msra.mxu0 %v14931_v14  ;;  %11294 = vmatprep.mubr.msk.f32.mxu0 %vm14667_vm0, %v16527_v13 }
 0x23d   : > { %13281 = vmatprep.subr.bf16.mxu0 %v16525_v4 }
 0x23e   : > { %13310 = vmatpush3.bf16.msra.mxu1 %v15011_v10 }
 0x23f   : > { %13311 = vmatprep.subr.bf16.mxu1 %v16525_v4 }
 0x240   : > { %13283 = vmatpush3.bf16.msra.mxu0 %v14940_v21 }
 0x241   : > { %13284 = vmatprep.subr.bf16.mxu0 %v16525_v4 }
 0x242   : > { %13313 = vmatpush3.bf16.msra.mxu1 %v15049_v50 }
 0x243   : > { %13314 = vmatprep.subr.bf16.mxu1 %v16525_v4 }
 0x244   : > { %13286 = vmatpush3.bf16.msra.mxu0 %v14959_v35 }
 0x245   : > { %13287 = vmatprep.subr.bf16.mxu0 %v16525_v4 }
 0x246   : > { %13316 = vmatpush3.bf16.msra.mxu1 %v15064_v56 }
 0x247   : > { %13317 = vmatprep.subr.bf16.mxu1 %v16525_v4 }
 0x248   : > { %13289 = vmatpush3.bf16.msra.mxu0 %v14985_v54 }
 0x249   : > { %13290 = vmatprep.subr.bf16.mxu0 %v16525_v4 }
 0x24a   : > { %13319 = vmatpush3.bf16.msra.mxu1 %v15086_v30 }
 0x24b   : > { %13320 = vmatprep.subr.bf16.mxu1 %v16525_v4 }
 0x24c   : > { %13292 = vmatpush3.bf16.msra.mxu0 %v15005_v6 }
 0x24d   : > { %13293 = vmatprep.subr.bf16.mxu0 %v16525_v4 }
 0x24e   : > { %13322 = vmatpush3.bf16.msra.mxu1 %v15098_v44 }
 0x24f   : > { %13323 = vmatprep.subr.bf16.mxu1 %v16525_v4 }
 0x250   : > { %13295 = vmatpush3.bf16.msra.mxu0 %v15047_v47 }
 0x251   : > { %13296 = vmatprep.subr.bf16.mxu0 %v16525_v4 }
 0x252   : > { %13325 = vmatpush3.bf16.msra.mxu1 %v15108_v5 }
 0x253   : > { %13350 = vmatprep.subr.bf16.mxu1 %v16525_v4 }
 0x254   : > { %13298 = vmatpush3.bf16.msra.mxu0 %v15060_v58 }
 0x255   : > { %13299 = vmatprep.subr.bf16.mxu0 %v16525_v4 }
 0x258   : > { %13301 = vmatpush3.bf16.msra.mxu0 %v15079_v15 }
 0x259   : > { %13326 = vmatprep.subr.bf16.mxu0 %v16525_v4 }
 0x2ae   : > { %v1747_v26 = vpop.f32.mrb[12].mxu1 }
 0x2af   : > { %v11055_v33 = vpop.f32.mrb[13].mxu1 }
 0x2b6   : > { %v1596_v36 = vpop.f32.mrb[12].mxu0 }
 0x2b7   : > { %v1748_v40 = vadd.f32 %v1747_v26, %v1596_v36  ;;  %v11020_v46 = vpop.f32.mrb[13].mxu0 }
 0x2ce   : > { %v1940_v53 = vpop.f32.mrb[14].mxu1 }
 0x2cf   : > { %v11125_v55 = vpop.f32.mrb[15].mxu1 }
 0x2d6   : > { %v1851_v0 = vpop.f32.mrb[14].mxu0 }
 0x2d7   : > { %v1852_v1 = vadd.f32 %v1851_v0, %v1748_v40  ;;  %v11090_v8 = vpop.f32.mrb[15].mxu0 }
 0x2d9   : > { %v1941_v62 = vadd.f32 %v1940_v53, %v1852_v1 }
 0x2ee   : > { %v2146_v22 = vpop.f32.mrb[16].mxu1 }
 0x2ef   : > { %v11195_v23 = vpop.f32.mrb[17].mxu1 }
 0x2f6   : > { %v2059_v32 = vpop.f32.mrb[16].mxu0  ;;  %v2319_v34 = vpop.f32.mrb[18].mxu1 }
 0x2f7   : > { %v2060_v63 = vadd.f32 %v2059_v32, %v1941_v62  ;;  %v11160_v52 = vpop.f32.mrb[17].mxu0  ;;  %v11217_v2 = vpop.f32.mrb[19].mxu1 }
 0x2f9   : > { %v2147_v3 = vadd.f32 %v2146_v22, %v2060_v63 }
 0x2fe   : > { %v2228_v12 = vpop.f32.mrb[18].mxu0 }
 0x2ff   : > { %v2229_v18 = vadd.f32 %v2228_v12, %v2147_v3  ;;  %v11206_v33 = vpop.f32.mrb[19].mxu0  ;;  %v9633_v12 = vld [vmem:[%s14909_s20 + $0x10] sm:$0xff] }
 0x300   : > { %v2476_v26 = vpop.f32.mrb[20].mxu1 }
 0x301   : > { %v2320_v36 = vadd.f32 %v2319_v34, %v2229_v18  ;;  %v11239_v46 = vpop.f32.mrb[21].mxu1  ;;  %v16549_v34 = vmov 0.0   ;;  %v3286_v18 = vsel %vm1009_vm1, %v9633_v12, 0 }
 0x302   : > { %v3357_v33 = vand.u32 4294901760, %v3286_v18 }
 0x306   : > { %v2399_v55 = vpop.f32.mrb[20].mxu0 }
 0x307   : > { %v2400_v4 = vadd.f32 %v2399_v55, %v2320_v36  ;;  %v11228_v40 = vpop.f32.mrb[21].mxu0 }
 0x308   : > { %v2634_v0 = vpop.f32.mrb[22].mxu1 }
 0x309   : > { %v2477_v53 = vadd.f32 %v2476_v26, %v2400_v4  ;;  %v11261_v1 = vpop.f32.mrb[23].mxu1  ;;  %v16550_v4 = vmov 0.0|0.0   ;;  %v3358_v26 = vsub.f32 %v3286_v18, %v3357_v33 }
 0x30b   : > { %v3359_v36 = vand.u32 4294901760, %v3358_v26 }
 0x30d   : > { %v3360_v46 = vsub.f32 %v3358_v26, %v3359_v36 }
 0x30e   : > { %v2559_v8 = vpop.f32.mrb[22].mxu0 }
 0x30f   : > { %v2560_v23 = vadd.f32 %v2559_v8, %v2477_v53  ;;  %v11250_v13 = vpop.f32.mrb[23].mxu0  ;;  %v3361_v55 = vand.u32 4294901760, %v3360_v46 }
 0x311   : > { %v2635_v62 = vadd.f32 %v2634_v0, %v2560_v23 }
 0x313   : > { %v2638_v32 = vadd.f32 %v15370_v41, %v2635_v62 }
 0x315   : > { %v2639_v22 = vmax.f32 %v2638_v32, 0.0 }
 0x317   : > { %9632 = vst [vmem:[%s14919_s9 + $0x8] sm:$0xff] %v2639_v22  ;;  %v15528_v63 = vand.u32 4294901760, %v2639_v22 }
 0x319   : > { %v2726_v52 = vsub.f32 %v2639_v22, %v15528_v63  ;;  %11330 = vmatmul.mubr.f32.vlgmr.msra.gmra.mrb[24].mxu1 %v15528_v63 }
 0x31a   : > { %13352 = vmatpush3.bf16.msra.mxu1 %v14931_v14  ;;  %11399 = vmatprep.mubr.msk.f32.mxu1 %vm14667_vm0, %v16549_v34 }
 0x31b   : > { %13353 = vmatprep.subr.bf16.mxu1 %v16550_v4  ;;  %v2727_v2 = vand.u32 4294901760, %v2726_v52 }
 0x31d   : > { %v2728_v13 = vsub.f32 %v2726_v52, %v2727_v2 }
 0x31e   : > { %13355 = vmatpush3.bf16.msra.mxu1 %v14940_v21 }
 0x31f   : > { %13356 = vmatprep.subr.bf16.mxu1 %v16550_v4  ;;  %v2729_v3 = vand.u32 4294901760, %v2728_v13 }
 0x321   : > { %11295 = vmatmul.mubr.f32.vlgmr.msra.gmra.mrb[24].mxu0 %v2729_v3 }
 0x322   : > { %13328 = vmatpush3.bf16.msra.mxu0 %v15102_v45  ;;  %13358 = vmatpush3.bf16.msra.mxu1 %v14959_v35 }
 0x323   : > { %13329 = vmatprep.subr.bf16.mxu0 %v16550_v4  ;;  %13359 = vmatprep.subr.bf16.mxu1 %v16550_v4 }
 0x324   : > { %11364 = vmatprep.mubr.msk.f32.mxu0 %vm14667_vm0, %v16549_v34 }
 0x326   : > { %13331 = vmatpush3.bf16.msra.mxu0 %v15112_v7  ;;  %13361 = vmatpush3.bf16.msra.mxu1 %v14985_v54 }
 0x327   : > { %13332 = vmatprep.subr.bf16.mxu0 %v16550_v4  ;;  %13362 = vmatprep.subr.bf16.mxu1 %v16550_v4 }
 0x32a   : > { %13334 = vmatpush3.bf16.msra.mxu0 %v15122_v59  ;;  %13364 = vmatpush3.bf16.msra.mxu1 %v15005_v6 }
 0x32b   : > { %13335 = vmatprep.subr.bf16.mxu0 %v16550_v4  ;;  %13365 = vmatprep.subr.bf16.mxu1 %v16550_v4 }
 0x32e   : > { %13337 = vmatpush3.bf16.msra.mxu0 %v15131_v19  ;;  %13367 = vmatpush3.bf16.msra.mxu1 %v15047_v47 }
 0x32f   : > { %13338 = vmatprep.subr.bf16.mxu0 %v16550_v4  ;;  %13368 = vmatprep.subr.bf16.mxu1 %v16550_v4 }
 0x332   : > { %13340 = vmatpush3.bf16.msra.mxu0 %v15141_v25  ;;  %13370 = vmatpush3.bf16.msra.mxu1 %v15060_v58 }
 0x333   : > { %13341 = vmatprep.subr.bf16.mxu0 %v16550_v4  ;;  %13371 = vmatprep.subr.bf16.mxu1 %v16550_v4 }
 0x336   : > { %13343 = vmatpush3.bf16.msra.mxu0 %v15149_v31  ;;  %13373 = vmatpush3.bf16.msra.mxu1 %v15079_v15 }
 0x337   : > { %13344 = vmatprep.subr.bf16.mxu0 %v16550_v4  ;;  %13398 = vmatprep.subr.bf16.mxu1 %v16550_v4 }
 0x339   : > { %11400 = vmatmul.mubr.f32.vlgmr.msra.gmra.mrb[26].mxu1 %v2727_v2 }
 0x33a   : > { %13346 = vmatpush3.bf16.msra.mxu0 %v15157_v43  ;;  %13400 = vmatpush3.bf16.msra.mxu1 %v14931_v14 }
 0x33b   : > { %13347 = vmatprep.subr.bf16.mxu0 %v16550_v4  ;;  %13401 = vmatprep.subr.bf16.mxu1 %v16550_v4 }
 0x33c   : > { %11469 = vmatprep.mubr.msk.f32.mxu1 %vm14667_vm0, %v16549_v34 }
 0x33e   : > { %13349 = vmatpush3.bf16.msra.mxu0 %v15165_v9  ;;  %13403 = vmatpush3.bf16.msra.mxu1 %v14940_v21 }
 0x33f   : > { %13374 = vmatprep.subr.bf16.mxu0 %v16550_v4  ;;  %13404 = vmatprep.subr.bf16.mxu1 %v16550_v4 }
 0x341   : > { %11365 = vmatmul.mubr.f32.vlgmr.msra.gmra.mrb[26].mxu0 %v2726_v52 }
 0x342   : > { %13376 = vmatpush3.bf16.msra.mxu0 %v15175_v37  ;;  %13406 = vmatpush3.bf16.msra.mxu1 %v14959_v35 }
 0x343   : > { %13377 = vmatprep.subr.bf16.mxu0 %v16550_v4  ;;  %13407 = vmatprep.subr.bf16.mxu1 %v16550_v4 }
 0x344   : > { %11434 = vmatprep.mubr.msk.f32.mxu0 %vm14667_vm0, %v16549_v34 }
 0x346   : > { %13379 = vmatpush3.bf16.msra.mxu0 %v15186_v51  ;;  %13409 = vmatpush3.bf16.msra.mxu1 %v14985_v54 }
 0x347   : > { %13380 = vmatprep.subr.bf16.mxu0 %v16550_v4  ;;  %13410 = vmatprep.subr.bf16.mxu1 %v16550_v4 }
 0x34a   : > { %13382 = vmatpush3.bf16.msra.mxu0 %v15198_v16  ;;  %13412 = vmatpush3.bf16.msra.mxu1 %v15005_v6 }
 0x34b   : > { %13383 = vmatprep.subr.bf16.mxu0 %v16550_v4  ;;  %13413 = vmatprep.subr.bf16.mxu1 %v16550_v4 }
 0x34e   : > { %13385 = vmatpush3.bf16.msra.mxu0 %v15210_v17  ;;  %13415 = vmatpush3.bf16.msra.mxu1 %v15047_v47 }
 0x34f   : > { %13386 = vmatprep.subr.bf16.mxu0 %v16550_v4  ;;  %13416 = vmatprep.subr.bf16.mxu1 %v16550_v4 }
 0x352   : > { %13388 = vmatpush3.bf16.msra.mxu0 %v15222_v20  ;;  %13418 = vmatpush3.bf16.msra.mxu1 %v15060_v58 }
 0x353   : > { %13389 = vmatprep.subr.bf16.mxu0 %v16550_v4  ;;  %13419 = vmatprep.subr.bf16.mxu1 %v16550_v4 }
 0x356   : > { %13391 = vmatpush3.bf16.msra.mxu0 %v15233_v28  ;;  %13421 = vmatpush3.bf16.msra.mxu1 %v15079_v15 }
 0x357   : > { %13392 = vmatprep.subr.bf16.mxu0 %v16550_v4  ;;  %13428 = vmatprep.subr.bf16.mxu1 %v16550_v4 }
 0x359   : > { %11470 = vmatmul.mubr.f32.vlgmr.msra.gmra.mrb[28].mxu1 %v15528_v63 }
 0x35a   : > { %13394 = vmatpush3.bf16.msra.mxu0 %v15242_v48  ;;  %13430 = vmatpush3.bf16.msra.mxu1 %v15282_v24 }
 0x35b   : > { %13395 = vmatprep.subr.bf16.mxu0 %v16550_v4  ;;  %13431 = vmatprep.subr.bf16.mxu1 %v16550_v4 }
 0x35c   : > { %11491 = vmatprep.mubr.msk.f32.mxu1 %vm14667_vm0, %v16549_v34 }
 0x35e   : > { %13397 = vmatpush3.bf16.msra.mxu0 %v15254_v11  ;;  %13433 = vmatpush3.bf16.msra.mxu1 %v15291_v38 }
 0x35f   : > { %13422 = vmatprep.subr.bf16.mxu0 %v16550_v4  ;;  %13440 = vmatprep.subr.bf16.mxu1 %v16550_v4 }
 0x361   : > { %11435 = vmatmul.mubr.f32.vlgmr.msra.gmra.mrb[28].mxu0 %v15528_v63  ;;  %11492 = vmatmul.mubr.f32.vlgmr.msra.gmra.mrb[30].mxu1 %v3357_v33 }
 0x362   : > { %13424 = vmatpush3.bf16.msra.mxu0 %v15263_v39  ;;  %11480 = vmatprep.mubr.msk.f32.mxu0 %vm14667_vm0, %v16549_v34 }
 0x363   : > { %13425 = vmatprep.subr.bf16.mxu0 %v16550_v4  ;;  %13442 = vmatpush3.bf16.msra.mxu1 %v15263_v39 }
 0x364   : > { %13443 = vmatprep.subr.bf16.mxu1 %v16550_v4  ;;  %11513 = vmatprep.mubr.msk.f32.mxu1 %vm14667_vm0, %v16549_v34 }
 0x366   : > { %13427 = vmatpush3.bf16.msra.mxu0 %v15271_v61 }
 0x367   : > { %13434 = vmatprep.subr.bf16.mxu0 %v16550_v4  ;;  %13445 = vmatpush3.bf16.msra.mxu1 %v15271_v61 }
 0x368   : > { %13452 = vmatprep.subr.bf16.mxu1 %v16550_v4 }
 0x369   : > { %11481 = vmatmul.mubr.f32.vlgmr.msra.gmra.mrb[30].mxu0 %v3361_v55 }
 0x36a   : > { %13436 = vmatpush3.bf16.msra.mxu0 %v15284_v29  ;;  %11502 = vmatprep.mubr.msk.f32.mxu0 %vm14667_vm0, %v16549_v34 }
 0x36b   : > { %13437 = vmatprep.subr.bf16.mxu0 %v16550_v4  ;;  %11514 = vmatmul.mubr.f32.vlgmr.msra.gmra.mrb[32].mxu1 %v3359_v36 }
 0x36c   : > { %13454 = vmatpush3.bf16.msra.mxu1 %v15263_v39  ;;  %11535 = vmatprep.mubr.msk.f32.mxu1 %vm14667_vm0, %v16549_v34 }
 0x36d   : > { %13455 = vmatprep.subr.bf16.mxu1 %v16550_v4 }
 0x36e   : > { %13439 = vmatpush3.bf16.msra.mxu0 %v15293_v42 }
 0x36f   : > { %13446 = vmatprep.subr.bf16.mxu0 %v16550_v4 }
 0x370   : > { %13457 = vmatpush3.bf16.msra.mxu1 %v15271_v61 }
 0x371   : > { %11503 = vmatmul.mubr.f32.vlgmr.msra.gmra.mrb[32].mxu0 %v3358_v26  ;;  %13482 = vmatprep.subr.bf16.mxu1 %v16550_v4 }
 0x372   : > { %13448 = vmatpush3.bf16.msra.mxu0 %v15303_v27  ;;  %11524 = vmatprep.mubr.msk.f32.mxu0 %vm14667_vm0, %v16549_v34 }
 0x373   : > { %13449 = vmatprep.subr.bf16.mxu0 %v16550_v4  ;;  %11536 = vmatmul.mubr.f32.vlgmr.msra.gmra.mrb[34].mxu1 %v3357_v33 }
 0x374   : > { %13484 = vmatpush3.bf16.msra.mxu1 %v14978_v49  ;;  %11605 = vmatprep.mubr.msk.f32.mxu1 %vm14667_vm0, %v16549_v34 }
 0x375   : > { %13485 = vmatprep.subr.bf16.mxu1 %v16550_v4 }
 0x376   : > { %13451 = vmatpush3.bf16.msra.mxu0 %v15311_v57 }
 0x377   : > { %13458 = vmatprep.subr.bf16.mxu0 %v16550_v4 }
 0x378   : > { %13487 = vmatpush3.bf16.msra.mxu1 %v14993_v60 }
 0x379   : > { %11525 = vmatmul.mubr.f32.vlgmr.msra.gmra.mrb[34].mxu0 %v3357_v33  ;;  %13488 = vmatprep.subr.bf16.mxu1 %v16550_v4 }
 0x37a   : > { %13460 = vmatpush3.bf16.msra.mxu0 %v14931_v14  ;;  %11570 = vmatprep.mubr.msk.f32.mxu0 %vm14667_vm0, %v16549_v34 }
 0x37b   : > { %13461 = vmatprep.subr.bf16.mxu0 %v16550_v4 }
 0x37c   : > { %13490 = vmatpush3.bf16.msra.mxu1 %v15011_v10 }
 0x37d   : > { %13491 = vmatprep.subr.bf16.mxu1 %v16550_v4 }
 0x37e   : > { %13463 = vmatpush3.bf16.msra.mxu0 %v14940_v21 }
 0x37f   : > { %13464 = vmatprep.subr.bf16.mxu0 %v16550_v4 }
 0x380   : > { %13493 = vmatpush3.bf16.msra.mxu1 %v15049_v50 }
 0x381   : > { %13494 = vmatprep.subr.bf16.mxu1 %v16550_v4 }
 0x382   : > { %13466 = vmatpush3.bf16.msra.mxu0 %v14959_v35 }
 0x383   : > { %13467 = vmatprep.subr.bf16.mxu0 %v16550_v4 }
 0x384   : > { %13496 = vmatpush3.bf16.msra.mxu1 %v15064_v56 }
 0x385   : > { %13497 = vmatprep.subr.bf16.mxu1 %v16550_v4 }
 0x386   : > { %13469 = vmatpush3.bf16.msra.mxu0 %v14985_v54 }
 0x387   : > { %13470 = vmatprep.subr.bf16.mxu0 %v16550_v4 }
 0x388   : > { %13499 = vmatpush3.bf16.msra.mxu1 %v15086_v30 }
 0x389   : > { %13500 = vmatprep.subr.bf16.mxu1 %v16550_v4 }
 0x38a   : > { %13472 = vmatpush3.bf16.msra.mxu0 %v15005_v6 }
 0x38b   : > { %13473 = vmatprep.subr.bf16.mxu0 %v16550_v4 }
 0x38c   : > { %13502 = vmatpush3.bf16.msra.mxu1 %v15098_v44 }
 0x38d   : > { %13503 = vmatprep.subr.bf16.mxu1 %v16550_v4 }
 0x38e   : > { %13475 = vmatpush3.bf16.msra.mxu0 %v15047_v47 }
 0x38f   : > { %13476 = vmatprep.subr.bf16.mxu0 %v16550_v4 }
 0x390   : > { %13505 = vmatpush3.bf16.msra.mxu1 %v15108_v5 }
 0x391   : > { %13530 = vmatprep.subr.bf16.mxu1 %v16550_v4 }
 0x392   : > { %13478 = vmatpush3.bf16.msra.mxu0 %v15060_v58 }
 0x393   : > { %13479 = vmatprep.subr.bf16.mxu0 %v16550_v4 }
 0x396   : > { %13481 = vmatpush3.bf16.msra.mxu0 %v15079_v15 }
 0x397   : > { %13506 = vmatprep.subr.bf16.mxu0 %v16550_v4 }
 0x3ec   : > { %v2882_v40 = vpop.f32.mrb[24].mxu1 }
 0x3ed   : > { %v11331_v0 = vpop.f32.mrb[25].mxu1 }
 0x3f4   : > { %v2731_v53 = vpop.f32.mrb[24].mxu0 }
 0x3f5   : > { %v2883_v1 = vadd.f32 %v2882_v40, %v2731_v53  ;;  %v11296_v8 = vpop.f32.mrb[25].mxu0 }
 0x40c   : > { %v3075_v23 = vpop.f32.mrb[26].mxu1 }
 0x40d   : > { %v11401_v62 = vpop.f32.mrb[27].mxu1 }
 0x414   : > { %v2986_v32 = vpop.f32.mrb[26].mxu0 }
 0x415   : > { %v2987_v22 = vadd.f32 %v2986_v32, %v2883_v1  ;;  %v11366_v63 = vpop.f32.mrb[27].mxu0 }
 0x417   : > { %v3076_v52 = vadd.f32 %v3075_v23, %v2987_v22 }
 0x42c   : > { %v3281_v2 = vpop.f32.mrb[28].mxu1 }
 0x42d   : > { %v11471_v13 = vpop.f32.mrb[29].mxu1 }
 0x434   : > { %v3194_v3 = vpop.f32.mrb[28].mxu0  ;;  %v3454_v12 = vpop.f32.mrb[30].mxu1 }
 0x435   : > { %v3195_v18 = vadd.f32 %v3194_v3, %v3076_v52  ;;  %v11436_v33 = vpop.f32.mrb[29].mxu0  ;;  %v11493_v26 = vpop.f32.mrb[31].mxu1 }
 0x437   : > { %v3282_v36 = vadd.f32 %v3281_v2, %v3195_v18 }
 0x43c   : > { %v3363_v46 = vpop.f32.mrb[30].mxu0 }
 0x43d   : > { %v3364_v55 = vadd.f32 %v3363_v46, %v3282_v36  ;;  %v11482_v0 = vpop.f32.mrb[31].mxu0 }
 0x43e   : > { %v3611_v40 = vpop.f32.mrb[32].mxu1 }
 0x43f   : > { %v3455_v53 = vadd.f32 %v3454_v12, %v3364_v55  ;;  %v11515_v8 = vpop.f32.mrb[33].mxu1  ;;  %v9635_v12 = vld [vmem:[%s14909_s20 + $0x18] sm:$0xff] }
 0x440   : > { %v4421_v26 = vsel %vm1009_vm1, %v9635_v12, 0  ;;  %v16552_v8 = vld [vmem:[#allocation18_spill] sm:$0xff] }
 0x441   : > { %v4492_v36 = vand.u32 4294901760, %v4421_v26 }
 0x443   : > { %v4493_v46 = vsub.f32 %v4421_v26, %v4492_v36 }
 0x444   : > { %v3534_v62 = vpop.f32.mrb[32].mxu0 }
 0x445   : > { %v3535_v5 = vadd.f32 %v3534_v62, %v3455_v53  ;;  %v11504_v1 = vpop.f32.mrb[33].mxu0  ;;  %v4494_v55 = vand.u32 4294901760, %v4493_v46  ;;  %v16551_v53 = vld [vmem:[#allocation17_spill] sm:$0xff] }
 0x446   : > { %v3769_v32 = vpop.f32.mrb[34].mxu1 }
 0x447   : > { %v3612_v23 = vadd.f32 %v3611_v40, %v3535_v5  ;;  %v11537_v22 = vpop.f32.mrb[35].mxu1  ;;  %v4495_v0 = vsub.f32 %v4493_v46, %v4494_v55 }
 0x449   : > { %v4496_v40 = vand.u32 4294901760, %v4495_v0 }
 0x44c   : > { %v3694_v63 = vpop.f32.mrb[34].mxu0 }
 0x44d   : > { %v3695_v13 = vadd.f32 %v3694_v63, %v3612_v23  ;;  %v11526_v44 = vpop.f32.mrb[35].mxu0 }
 0x44f   : > { %v3770_v52 = vadd.f32 %v3769_v32, %v3695_v13 }
 0x451   : > { %v3773_v3 = vadd.f32 %v15370_v41, %v3770_v52 }
 0x453   : > { %v3774_v2 = vmax.f32 %v3773_v3, 0.0 }
 0x455   : > { %9634 = vst [vmem:[%s14919_s9 + $0x10] sm:$0xff] %v3774_v2  ;;  %v15682_v18 = vand.u32 4294901760, %v3774_v2 }
 0x457   : > { %v3861_v33 = vsub.f32 %v3774_v2, %v15682_v18  ;;  %11606 = vmatmul.mubr.f32.vlgmr.msra.gmra.mrb[36].mxu1 %v15682_v18 }
 0x458   : > { %13532 = vmatpush3.bf16.msra.mxu1 %v14931_v14  ;;  %11675 = vmatprep.mubr.msk.f32.mxu1 %vm14667_vm0, %v16549_v34 }
 0x459   : > { %13533 = vmatprep.subr.bf16.mxu1 %v16550_v4  ;;  %v3862_v5 = vand.u32 4294901760, %v3861_v33 }
 0x45b   : > { %v3863_v44 = vsub.f32 %v3861_v33, %v3862_v5 }
 0x45c   : > { %13535 = vmatpush3.bf16.msra.mxu1 %v14940_v21 }
 0x45d   : > { %13536 = vmatprep.subr.bf16.mxu1 %v16550_v4  ;;  %v3864_v41 = vand.u32 4294901760, %v3863_v44 }
 0x45f   : > { %11571 = vmatmul.mubr.f32.vlgmr.msra.gmra.mrb[36].mxu0 %v3864_v41 }
 0x460   : > { %13508 = vmatpush3.bf16.msra.mxu0 %v15102_v45  ;;  %13538 = vmatpush3.bf16.msra.mxu1 %v14959_v35 }
 0x461   : > { %13509 = vmatprep.subr.bf16.mxu0 %v16550_v4  ;;  %13539 = vmatprep.subr.bf16.mxu1 %v16550_v4 }
 0x462   : > { %11640 = vmatprep.mubr.msk.f32.mxu0 %vm14667_vm0, %v16549_v34 }
 0x464   : > { %13511 = vmatpush3.bf16.msra.mxu0 %v15112_v7  ;;  %13541 = vmatpush3.bf16.msra.mxu1 %v14985_v54 }
 0x465   : > { %13512 = vmatprep.subr.bf16.mxu0 %v16550_v4  ;;  %13542 = vmatprep.subr.bf16.mxu1 %v16550_v4 }
 0x468   : > { %13514 = vmatpush3.bf16.msra.mxu0 %v15122_v59  ;;  %13544 = vmatpush3.bf16.msra.mxu1 %v15005_v6 }
 0x469   : > { %13515 = vmatprep.subr.bf16.mxu0 %v16550_v4  ;;  %13545 = vmatprep.subr.bf16.mxu1 %v16550_v4 }
 0x46c   : > { %13517 = vmatpush3.bf16.msra.mxu0 %v15131_v19  ;;  %13547 = vmatpush3.bf16.msra.mxu1 %v15047_v47 }
 0x46d   : > { %13518 = vmatprep.subr.bf16.mxu0 %v16550_v4  ;;  %13548 = vmatprep.subr.bf16.mxu1 %v16550_v4 }
 0x470   : > { %13520 = vmatpush3.bf16.msra.mxu0 %v15141_v25  ;;  %13550 = vmatpush3.bf16.msra.mxu1 %v15060_v58 }
 0x471   : > { %13521 = vmatprep.subr.bf16.mxu0 %v16550_v4  ;;  %13551 = vmatprep.subr.bf16.mxu1 %v16550_v4 }
 0x474   : > { %13523 = vmatpush3.bf16.msra.mxu0 %v15149_v31  ;;  %13553 = vmatpush3.bf16.msra.mxu1 %v15079_v15 }
 0x475   : > { %13524 = vmatprep.subr.bf16.mxu0 %v16550_v4  ;;  %13578 = vmatprep.subr.bf16.mxu1 %v16550_v4 }
 0x477   : > { %11676 = vmatmul.mubr.f32.vlgmr.msra.gmra.mrb[38].mxu1 %v3862_v5 }
 0x478   : > { %13526 = vmatpush3.bf16.msra.mxu0 %v15157_v43  ;;  %13580 = vmatpush3.bf16.msra.mxu1 %v14931_v14 }
 0x479   : > { %13527 = vmatprep.subr.bf16.mxu0 %v16550_v4  ;;  %13581 = vmatprep.subr.bf16.mxu1 %v16550_v4 }
 0x47a   : > { %11745 = vmatprep.mubr.msk.f32.mxu1 %vm14667_vm0, %v16549_v34 }
 0x47c   : > { %13529 = vmatpush3.bf16.msra.mxu0 %v15165_v9  ;;  %13583 = vmatpush3.bf16.msra.mxu1 %v14940_v21 }
 0x47d   : > { %13554 = vmatprep.subr.bf16.mxu0 %v16550_v4  ;;  %13584 = vmatprep.subr.bf16.mxu1 %v16550_v4 }
 0x47f   : > { %11641 = vmatmul.mubr.f32.vlgmr.msra.gmra.mrb[38].mxu0 %v3861_v33 }
 0x480   : > { %13556 = vmatpush3.bf16.msra.mxu0 %v15175_v37  ;;  %13586 = vmatpush3.bf16.msra.mxu1 %v14959_v35 }
 0x481   : > { %13557 = vmatprep.subr.bf16.mxu0 %v16550_v4  ;;  %13587 = vmatprep.subr.bf16.mxu1 %v16550_v4 }
 0x482   : > { %11710 = vmatprep.mubr.msk.f32.mxu0 %vm14667_vm0, %v16549_v34 }
 0x484   : > { %13559 = vmatpush3.bf16.msra.mxu0 %v15186_v51  ;;  %13589 = vmatpush3.bf16.msra.mxu1 %v14985_v54 }
 0x485   : > { %13560 = vmatprep.subr.bf16.mxu0 %v16550_v4  ;;  %13590 = vmatprep.subr.bf16.mxu1 %v16550_v4 }
 0x488   : > { %13562 = vmatpush3.bf16.msra.mxu0 %v15198_v16  ;;  %13592 = vmatpush3.bf16.msra.mxu1 %v15005_v6 }
 0x489   : > { %13563 = vmatprep.subr.bf16.mxu0 %v16550_v4  ;;  %13593 = vmatprep.subr.bf16.mxu1 %v16550_v4 }
 0x48c   : > { %13565 = vmatpush3.bf16.msra.mxu0 %v15210_v17  ;;  %13595 = vmatpush3.bf16.msra.mxu1 %v15047_v47 }
 0x48d   : > { %13566 = vmatprep.subr.bf16.mxu0 %v16550_v4  ;;  %13596 = vmatprep.subr.bf16.mxu1 %v16550_v4 }
 0x490   : > { %13568 = vmatpush3.bf16.msra.mxu0 %v15222_v20  ;;  %13598 = vmatpush3.bf16.msra.mxu1 %v15060_v58 }
 0x491   : > { %13569 = vmatprep.subr.bf16.mxu0 %v16550_v4  ;;  %13599 = vmatprep.subr.bf16.mxu1 %v16550_v4 }
 0x494   : > { %13571 = vmatpush3.bf16.msra.mxu0 %v15233_v28  ;;  %13601 = vmatpush3.bf16.msra.mxu1 %v15079_v15 }
 0x495   : > { %13572 = vmatprep.subr.bf16.mxu0 %v16550_v4  ;;  %13608 = vmatprep.subr.bf16.mxu1 %v16550_v4 }
 0x497   : > { %11746 = vmatmul.mubr.f32.vlgmr.msra.gmra.mrb[40].mxu1 %v15682_v18 }
 0x498   : > { %13574 = vmatpush3.bf16.msra.mxu0 %v15242_v48  ;;  %13610 = vmatpush3.bf16.msra.mxu1 %v15282_v24 }
 0x499   : > { %13575 = vmatprep.subr.bf16.mxu0 %v16550_v4  ;;  %13611 = vmatprep.subr.bf16.mxu1 %v16550_v4 }
 0x49a   : > { %11767 = vmatprep.mubr.msk.f32.mxu1 %vm14667_vm0, %v16549_v34 }
 0x49c   : > { %13577 = vmatpush3.bf16.msra.mxu0 %v15254_v11  ;;  %13613 = vmatpush3.bf16.msra.mxu1 %v15291_v38 }
 0x49d   : > { %13602 = vmatprep.subr.bf16.mxu0 %v16550_v4  ;;  %13620 = vmatprep.subr.bf16.mxu1 %v16550_v4 }
 0x49f   : > { %11711 = vmatmul.mubr.f32.vlgmr.msra.gmra.mrb[40].mxu0 %v15682_v18  ;;  %11768 = vmatmul.mubr.f32.vlgmr.msra.gmra.mrb[42].mxu1 %v4492_v36 }
 0x4a0   : > { %13604 = vmatpush3.bf16.msra.mxu0 %v15263_v39  ;;  %11756 = vmatprep.mubr.msk.f32.mxu0 %vm14667_vm0, %v16549_v34 }
 0x4a1   : > { %13605 = vmatprep.subr.bf16.mxu0 %v16550_v4  ;;  %13622 = vmatpush3.bf16.msra.mxu1 %v15263_v39 }
 0x4a2   : > { %13623 = vmatprep.subr.bf16.mxu1 %v16550_v4  ;;  %11789 = vmatprep.mubr.msk.f32.mxu1 %vm14667_vm0, %v16549_v34 }
 0x4a4   : > { %13607 = vmatpush3.bf16.msra.mxu0 %v15271_v61 }
 0x4a5   : > { %13614 = vmatprep.subr.bf16.mxu0 %v16550_v4  ;;  %13625 = vmatpush3.bf16.msra.mxu1 %v15271_v61 }
 0x4a6   : > { %13632 = vmatprep.subr.bf16.mxu1 %v16550_v4 }
 0x4a7   : > { %11757 = vmatmul.mubr.f32.vlgmr.msra.gmra.mrb[42].mxu0 %v4496_v40 }
 0x4a8   : > { %13616 = vmatpush3.bf16.msra.mxu0 %v15284_v29  ;;  %11778 = vmatprep.mubr.msk.f32.mxu0 %vm14667_vm0, %v16549_v34 }
 0x4a9   : > { %13617 = vmatprep.subr.bf16.mxu0 %v16550_v4  ;;  %11790 = vmatmul.mubr.f32.vlgmr.msra.gmra.mrb[44].mxu1 %v4494_v55 }
 0x4aa   : > { %13634 = vmatpush3.bf16.msra.mxu1 %v15263_v39  ;;  %11811 = vmatprep.mubr.msk.f32.mxu1 %vm14667_vm0, %v16549_v34 }
 0x4ab   : > { %13635 = vmatprep.subr.bf16.mxu1 %v16550_v4 }
 0x4ac   : > { %13619 = vmatpush3.bf16.msra.mxu0 %v15293_v42 }
 0x4ad   : > { %13626 = vmatprep.subr.bf16.mxu0 %v16550_v4 }
 0x4ae   : > { %13637 = vmatpush3.bf16.msra.mxu1 %v15271_v61 }
 0x4af   : > { %11779 = vmatmul.mubr.f32.vlgmr.msra.gmra.mrb[44].mxu0 %v4493_v46  ;;  %13662 = vmatprep.subr.bf16.mxu1 %v16550_v4 }
 0x4b0   : > { %13628 = vmatpush3.bf16.msra.mxu0 %v15303_v27  ;;  %11800 = vmatprep.mubr.msk.f32.mxu0 %vm14667_vm0, %v16549_v34 }
 0x4b1   : > { %13629 = vmatprep.subr.bf16.mxu0 %v16550_v4  ;;  %11812 = vmatmul.mubr.f32.vlgmr.msra.gmra.mrb[46].mxu1 %v4492_v36 }
 0x4b2   : > { %13664 = vmatpush3.bf16.msra.mxu1 %v14978_v49  ;;  %11881 = vmatprep.mubr.msk.f32.mxu1 %vm14667_vm0, %v16549_v34 }
 0x4b3   : > { %13665 = vmatprep.subr.bf16.mxu1 %v16550_v4 }
 0x4b4   : > { %13631 = vmatpush3.bf16.msra.mxu0 %v15311_v57 }
 0x4b5   : > { %13638 = vmatprep.subr.bf16.mxu0 %v16550_v4 }
 0x4b6   : > { %13667 = vmatpush3.bf16.msra.mxu1 %v14993_v60 }
 0x4b7   : > { %11801 = vmatmul.mubr.f32.vlgmr.msra.gmra.mrb[46].mxu0 %v4492_v36  ;;  %13668 = vmatprep.subr.bf16.mxu1 %v16550_v4 }
 0x4b8   : > { %13640 = vmatpush3.bf16.msra.mxu0 %v14931_v14  ;;  %11846 = vmatprep.mubr.msk.f32.mxu0 %vm14667_vm0, %v16549_v34 }
 0x4b9   : > { %13641 = vmatprep.subr.bf16.mxu0 %v16550_v4 }
 0x4ba   : > { %13670 = vmatpush3.bf16.msra.mxu1 %v15011_v10 }
 0x4bb   : > { %13671 = vmatprep.subr.bf16.mxu1 %v16550_v4 }
 0x4bc   : > { %13643 = vmatpush3.bf16.msra.mxu0 %v14940_v21 }
 0x4bd   : > { %13644 = vmatprep.subr.bf16.mxu0 %v16550_v4 }
 0x4be   : > { %13673 = vmatpush3.bf16.msra.mxu1 %v15049_v50 }
 0x4bf   : > { %13674 = vmatprep.subr.bf16.mxu1 %v16550_v4 }
 0x4c0   : > { %13646 = vmatpush3.bf16.msra.mxu0 %v14959_v35 }
 0x4c1   : > { %13647 = vmatprep.subr.bf16.mxu0 %v16550_v4 }
 0x4c2   : > { %13676 = vmatpush3.bf16.msra.mxu1 %v15064_v56 }
 0x4c3   : > { %13677 = vmatprep.subr.bf16.mxu1 %v16550_v4 }
 0x4c4   : > { %13649 = vmatpush3.bf16.msra.mxu0 %v14985_v54 }
 0x4c5   : > { %13650 = vmatprep.subr.bf16.mxu0 %v16550_v4 }
 0x4c6   : > { %13679 = vmatpush3.bf16.msra.mxu1 %v15086_v30 }
 0x4c7   : > { %13680 = vmatprep.subr.bf16.mxu1 %v16550_v4 }
 0x4c8   : > { %13652 = vmatpush3.bf16.msra.mxu0 %v15005_v6 }
 0x4c9   : > { %13653 = vmatprep.subr.bf16.mxu0 %v16550_v4 }
 0x4ca   : > { %13682 = vmatpush3.bf16.msra.mxu1 %v16551_v53 }
 0x4cb   : > { %13683 = vmatprep.subr.bf16.mxu1 %v16550_v4 }
 0x4cc   : > { %13655 = vmatpush3.bf16.msra.mxu0 %v15047_v47 }
 0x4cd   : > { %13656 = vmatprep.subr.bf16.mxu0 %v16550_v4 }
 0x4ce   : > { %13685 = vmatpush3.bf16.msra.mxu1 %v16552_v8 }
 0x4cf   : > { %13710 = vmatprep.subr.bf16.mxu1 %v16550_v4 }
 0x4d0   : > { %13658 = vmatpush3.bf16.msra.mxu0 %v15060_v58 }
 0x4d1   : > { %13659 = vmatprep.subr.bf16.mxu0 %v16550_v4 }
 0x4d4   : > { %13661 = vmatpush3.bf16.msra.mxu0 %v15079_v15 }
 0x4d5   : > { %13686 = vmatprep.subr.bf16.mxu0 %v16550_v4 }
 0x52a   : > { %v4017_v62 = vpop.f32.mrb[36].mxu1 }
 0x52b   : > { %v11607_v1 = vpop.f32.mrb[37].mxu1 }
 0x532   : > { %v3866_v32 = vpop.f32.mrb[36].mxu0 }
 0x533   : > { %v4018_v23 = vadd.f32 %v4017_v62, %v3866_v32  ;;  %v11572_v22 = vpop.f32.mrb[37].mxu0 }
 0x54a   : > { %v4210_v63 = vpop.f32.mrb[38].mxu1 }
 0x54b   : > { %v11677_v13 = vpop.f32.mrb[39].mxu1 }
 0x552   : > { %v4121_v52 = vpop.f32.mrb[38].mxu0 }
 0x553   : > { %v4122_v3 = vadd.f32 %v4121_v52, %v4018_v23  ;;  %v11642_v2 = vpop.f32.mrb[39].mxu0 }
 0x555   : > { %v4211_v18 = vadd.f32 %v4210_v63, %v4122_v3 }
 0x56a   : > { %v4416_v33 = vpop.f32.mrb[40].mxu1 }
 0x56b   : > { %v11747_v5 = vpop.f32.mrb[41].mxu1 }
 0x572   : > { %v4329_v44 = vpop.f32.mrb[40].mxu0  ;;  %v4589_v41 = vpop.f32.mrb[42].mxu1 }
 0x573   : > { %v4330_v12 = vadd.f32 %v4329_v44, %v4211_v18  ;;  %v11712_v26 = vpop.f32.mrb[41].mxu0  ;;  %v11769_v36 = vpop.f32.mrb[43].mxu1 }
 0x575   : > { %v4417_v46 = vadd.f32 %v4416_v33, %v4330_v12  ;;  %v15837_v33 = vld [vmem:[%s16512_s3] ss:$0 sm:$0xff] }
 0x57a   : > { %v4498_v55 = vpop.f32.mrb[42].mxu0 }
 0x57b   : > { %v4499_v0 = vadd.f32 %v4498_v55, %v4417_v46  ;;  %v11758_v40 = vpop.f32.mrb[43].mxu0  ;;  %v9637_v55 = vld [vmem:[%s14909_s20 + $0x20] sm:$0xff] }
 0x57c   : > { %v4746_v1 = vpop.f32.mrb[44].mxu1 }
 0x57d   : > { %v4590_v62 = vadd.f32 %v4589_v41, %v4499_v0  ;;  %v11791_v32 = vpop.f32.mrb[45].mxu1  ;;  %v5556_v0 = vsel %vm1009_vm1, %v9637_v55, 0 }
 0x57e   : > { %v5627_v40 = vand.u32 4294901760, %v5556_v0 }
 0x582   : > { %v4669_v22 = vpop.f32.mrb[44].mxu0 }
 0x583   : > { %v4670_v13 = vadd.f32 %v4669_v22, %v4590_v62  ;;  %v11780_v23 = vpop.f32.mrb[45].mxu0 }
 0x584   : > { %v4904_v52 = vpop.f32.mrb[46].mxu1 }
 0x585   : > { %v4747_v63 = vadd.f32 %v4746_v1, %v4670_v13  ;;  %v11813_v3 = vpop.f32.mrb[47].mxu1  ;;  %v5628_v1 = vsub.f32 %v5556_v0, %v5627_v40  ;;  %v16553_v13 = vld [vmem:[#allocation18_spill] sm:$0xff] }
 0x587   : > { %v5629_v62 = vand.u32 4294901760, %v5628_v1 }
 0x589   : > { %v5630_v32 = vsub.f32 %v5628_v1, %v5629_v62 }
 0x58a   : > { %v4829_v2 = vpop.f32.mrb[46].mxu0 }
 0x58b   : > { %v4830_v5 = vadd.f32 %v4829_v2, %v4747_v63  ;;  %v11802_v8 = vpop.f32.mrb[47].mxu0  ;;  %v5631_v22 = vand.u32 4294901760, %v5630_v32 }
 0x58d   : > { %v4905_v18 = vadd.f32 %v4904_v52, %v4830_v5 }
 0x58f   : > { %v4908_v44 = vadd.f32 %v15837_v33, %v4905_v18 }
 0x591   : > { %v4909_v12 = vmax.f32 %v4908_v44, 0.0 }
 0x593   : > { %9636 = vst [vmem:[%s14919_s9 + $0x18] sm:$0xff] %v4909_v12  ;;  %v15841_v41 = vand.u32 4294901760, %v4909_v12 }
 0x595   : > { %v4996_v26 = vsub.f32 %v4909_v12, %v15841_v41  ;;  %11882 = vmatmul.mubr.f32.vlgmr.msra.gmra.mrb[48].mxu1 %v15841_v41 }
 0x596   : > { %13712 = vmatpush3.bf16.msra.mxu1 %v14931_v14  ;;  %11951 = vmatprep.mubr.msk.f32.mxu1 %vm14667_vm0, %v16549_v34 }
 0x597   : > { %13713 = vmatprep.subr.bf16.mxu1 %v16550_v4  ;;  %v4997_v8 = vand.u32 4294901760, %v4996_v26 }
 0x599   : > { %v4998_v36 = vsub.f32 %v4996_v26, %v4997_v8 }
 0x59a   : > { %13715 = vmatpush3.bf16.msra.mxu1 %v14940_v21 }
 0x59b   : > { %13716 = vmatprep.subr.bf16.mxu1 %v16550_v4  ;;  %v4999_v46 = vand.u32 4294901760, %v4998_v36 }
 0x59d   : > { %11847 = vmatmul.mubr.f32.vlgmr.msra.gmra.mrb[48].mxu0 %v4999_v46 }
 0x59e   : > { %13688 = vmatpush3.bf16.msra.mxu0 %v15102_v45  ;;  %13718 = vmatpush3.bf16.msra.mxu1 %v14959_v35 }
 0x59f   : > { %13689 = vmatprep.subr.bf16.mxu0 %v16550_v4  ;;  %13719 = vmatprep.subr.bf16.mxu1 %v16550_v4 }
 0x5a0   : > { %11916 = vmatprep.mubr.msk.f32.mxu0 %vm14667_vm0, %v16549_v34 }
 0x5a2   : > { %13691 = vmatpush3.bf16.msra.mxu0 %v15112_v7  ;;  %13721 = vmatpush3.bf16.msra.mxu1 %v14985_v54 }
 0x5a3   : > { %13692 = vmatprep.subr.bf16.mxu0 %v16550_v4  ;;  %13722 = vmatprep.subr.bf16.mxu1 %v16550_v4 }
 0x5a6   : > { %13694 = vmatpush3.bf16.msra.mxu0 %v15122_v59  ;;  %13724 = vmatpush3.bf16.msra.mxu1 %v15005_v6 }
 0x5a7   : > { %13695 = vmatprep.subr.bf16.mxu0 %v16550_v4  ;;  %13725 = vmatprep.subr.bf16.mxu1 %v16550_v4 }
 0x5aa   : > { %13697 = vmatpush3.bf16.msra.mxu0 %v15131_v19  ;;  %13727 = vmatpush3.bf16.msra.mxu1 %v15047_v47 }
 0x5ab   : > { %13698 = vmatprep.subr.bf16.mxu0 %v16550_v4  ;;  %13728 = vmatprep.subr.bf16.mxu1 %v16550_v4 }
 0x5ae   : > { %13700 = vmatpush3.bf16.msra.mxu0 %v15141_v25  ;;  %13730 = vmatpush3.bf16.msra.mxu1 %v15060_v58 }
 0x5af   : > { %13701 = vmatprep.subr.bf16.mxu0 %v16550_v4  ;;  %13731 = vmatprep.subr.bf16.mxu1 %v16550_v4 }
 0x5b2   : > { %13703 = vmatpush3.bf16.msra.mxu0 %v15149_v31  ;;  %13733 = vmatpush3.bf16.msra.mxu1 %v15079_v15 }
 0x5b3   : > { %13704 = vmatprep.subr.bf16.mxu0 %v16550_v4  ;;  %13758 = vmatprep.subr.bf16.mxu1 %v16550_v4 }
 0x5b5   : > { %11952 = vmatmul.mubr.f32.vlgmr.msra.gmra.mrb[50].mxu1 %v4997_v8 }
 0x5b6   : > { %13706 = vmatpush3.bf16.msra.mxu0 %v15157_v43  ;;  %13760 = vmatpush3.bf16.msra.mxu1 %v14931_v14 }
 0x5b7   : > { %13707 = vmatprep.subr.bf16.mxu0 %v16550_v4  ;;  %13761 = vmatprep.subr.bf16.mxu1 %v16550_v4 }
 0x5b8   : > { %12021 = vmatprep.mubr.msk.f32.mxu1 %vm14667_vm0, %v16549_v34 }
 0x5ba   : > { %13709 = vmatpush3.bf16.msra.mxu0 %v15165_v9  ;;  %13763 = vmatpush3.bf16.msra.mxu1 %v14940_v21 }
 0x5bb   : > { %13734 = vmatprep.subr.bf16.mxu0 %v16550_v4  ;;  %13764 = vmatprep.subr.bf16.mxu1 %v16550_v4 }
 0x5bd   : > { %11917 = vmatmul.mubr.f32.vlgmr.msra.gmra.mrb[50].mxu0 %v4996_v26 }
 0x5be   : > { %13736 = vmatpush3.bf16.msra.mxu0 %v15175_v37  ;;  %13766 = vmatpush3.bf16.msra.mxu1 %v14959_v35 }
 0x5bf   : > { %13737 = vmatprep.subr.bf16.mxu0 %v16550_v4  ;;  %13767 = vmatprep.subr.bf16.mxu1 %v16550_v4 }
 0x5c0   : > { %11986 = vmatprep.mubr.msk.f32.mxu0 %vm14667_vm0, %v16549_v34 }
 0x5c2   : > { %13739 = vmatpush3.bf16.msra.mxu0 %v15186_v51  ;;  %13769 = vmatpush3.bf16.msra.mxu1 %v14985_v54 }
 0x5c3   : > { %13740 = vmatprep.subr.bf16.mxu0 %v16550_v4  ;;  %13770 = vmatprep.subr.bf16.mxu1 %v16550_v4 }
 0x5c6   : > { %13742 = vmatpush3.bf16.msra.mxu0 %v15198_v16  ;;  %13772 = vmatpush3.bf16.msra.mxu1 %v15005_v6 }
 0x5c7   : > { %13743 = vmatprep.subr.bf16.mxu0 %v16550_v4  ;;  %13773 = vmatprep.subr.bf16.mxu1 %v16550_v4 }
 0x5ca   : > { %13745 = vmatpush3.bf16.msra.mxu0 %v15210_v17  ;;  %13775 = vmatpush3.bf16.msra.mxu1 %v15047_v47 }
 0x5cb   : > { %13746 = vmatprep.subr.bf16.mxu0 %v16550_v4  ;;  %13776 = vmatprep.subr.bf16.mxu1 %v16550_v4 }
 0x5ce   : > { %13748 = vmatpush3.bf16.msra.mxu0 %v15222_v20  ;;  %13778 = vmatpush3.bf16.msra.mxu1 %v15060_v58 }
 0x5cf   : > { %13749 = vmatprep.subr.bf16.mxu0 %v16550_v4  ;;  %13779 = vmatprep.subr.bf16.mxu1 %v16550_v4 }
 0x5d2   : > { %13751 = vmatpush3.bf16.msra.mxu0 %v15233_v28  ;;  %13781 = vmatpush3.bf16.msra.mxu1 %v15079_v15 }
 0x5d3   : > { %13752 = vmatprep.subr.bf16.mxu0 %v16550_v4  ;;  %13788 = vmatprep.subr.bf16.mxu1 %v16550_v4 }
 0x5d5   : > { %12022 = vmatmul.mubr.f32.vlgmr.msra.gmra.mrb[52].mxu1 %v15841_v41 }
 0x5d6   : > { %13754 = vmatpush3.bf16.msra.mxu0 %v15242_v48  ;;  %13790 = vmatpush3.bf16.msra.mxu1 %v15282_v24 }
 0x5d7   : > { %13755 = vmatprep.subr.bf16.mxu0 %v16550_v4  ;;  %13791 = vmatprep.subr.bf16.mxu1 %v16550_v4 }
 0x5d8   : > { %12043 = vmatprep.mubr.msk.f32.mxu1 %vm14667_vm0, %v16549_v34 }
 0x5da   : > { %13757 = vmatpush3.bf16.msra.mxu0 %v15254_v11  ;;  %13793 = vmatpush3.bf16.msra.mxu1 %v15291_v38 }
 0x5db   : > { %13782 = vmatprep.subr.bf16.mxu0 %v16550_v4  ;;  %13800 = vmatprep.subr.bf16.mxu1 %v16550_v4 }
 0x5dd   : > { %11987 = vmatmul.mubr.f32.vlgmr.msra.gmra.mrb[52].mxu0 %v15841_v41  ;;  %12044 = vmatmul.mubr.f32.vlgmr.msra.gmra.mrb[54].mxu1 %v5627_v40 }
 0x5de   : > { %13784 = vmatpush3.bf16.msra.mxu0 %v15263_v39  ;;  %12032 = vmatprep.mubr.msk.f32.mxu0 %vm14667_vm0, %v16549_v34 }
 0x5df   : > { %13785 = vmatprep.subr.bf16.mxu0 %v16550_v4  ;;  %13802 = vmatpush3.bf16.msra.mxu1 %v15263_v39 }
 0x5e0   : > { %13803 = vmatprep.subr.bf16.mxu1 %v16550_v4  ;;  %12065 = vmatprep.mubr.msk.f32.mxu1 %vm14667_vm0, %v16549_v34 }
 0x5e2   : > { %13787 = vmatpush3.bf16.msra.mxu0 %v15271_v61 }
 0x5e3   : > { %13794 = vmatprep.subr.bf16.mxu0 %v16550_v4  ;;  %13805 = vmatpush3.bf16.msra.mxu1 %v15271_v61 }
 0x5e4   : > { %13812 = vmatprep.subr.bf16.mxu1 %v16550_v4 }
 0x5e5   : > { %12033 = vmatmul.mubr.f32.vlgmr.msra.gmra.mrb[54].mxu0 %v5631_v22 }
 0x5e6   : > { %13796 = vmatpush3.bf16.msra.mxu0 %v15284_v29  ;;  %12054 = vmatprep.mubr.msk.f32.mxu0 %vm14667_vm0, %v16549_v34 }
 0x5e7   : > { %13797 = vmatprep.subr.bf16.mxu0 %v16550_v4  ;;  %12066 = vmatmul.mubr.f32.vlgmr.msra.gmra.mrb[56].mxu1 %v5629_v62 }
 0x5e8   : > { %13814 = vmatpush3.bf16.msra.mxu1 %v15263_v39  ;;  %12087 = vmatprep.mubr.msk.f32.mxu1 %vm14667_vm0, %v16549_v34 }
 0x5e9   : > { %13815 = vmatprep.subr.bf16.mxu1 %v16550_v4 }
 0x5ea   : > { %13799 = vmatpush3.bf16.msra.mxu0 %v15293_v42 }
 0x5eb   : > { %13806 = vmatprep.subr.bf16.mxu0 %v16550_v4 }
 0x5ec   : > { %13817 = vmatpush3.bf16.msra.mxu1 %v15271_v61 }
 0x5ed   : > { %12055 = vmatmul.mubr.f32.vlgmr.msra.gmra.mrb[56].mxu0 %v5628_v1  ;;  %13842 = vmatprep.subr.bf16.mxu1 %v16550_v4 }
 0x5ee   : > { %13808 = vmatpush3.bf16.msra.mxu0 %v15303_v27  ;;  %12076 = vmatprep.mubr.msk.f32.mxu0 %vm14667_vm0, %v16549_v34 }
 0x5ef   : > { %13809 = vmatprep.subr.bf16.mxu0 %v16550_v4  ;;  %12088 = vmatmul.mubr.f32.vlgmr.msra.gmra.mrb[58].mxu1 %v5627_v40 }
 0x5f0   : > { %13844 = vmatpush3.bf16.msra.mxu1 %v14978_v49  ;;  %12157 = vmatprep.mubr.msk.f32.mxu1 %vm14667_vm0, %v16549_v34 }
 0x5f1   : > { %13845 = vmatprep.subr.bf16.mxu1 %v16550_v4 }
 0x5f2   : > { %13811 = vmatpush3.bf16.msra.mxu0 %v15311_v57 }
 0x5f3   : > { %13818 = vmatprep.subr.bf16.mxu0 %v16550_v4 }
 0x5f4   : > { %13847 = vmatpush3.bf16.msra.mxu1 %v14993_v60 }
 0x5f5   : > { %12077 = vmatmul.mubr.f32.vlgmr.msra.gmra.mrb[58].mxu0 %v5627_v40  ;;  %13848 = vmatprep.subr.bf16.mxu1 %v16550_v4 }
 0x5f6   : > { %13820 = vmatpush3.bf16.msra.mxu0 %v14931_v14  ;;  %12122 = vmatprep.mubr.msk.f32.mxu0 %vm14667_vm0, %v16549_v34 }
 0x5f7   : > { %13821 = vmatprep.subr.bf16.mxu0 %v16550_v4 }
 0x5f8   : > { %13850 = vmatpush3.bf16.msra.mxu1 %v15011_v10 }
 0x5f9   : > { %13851 = vmatprep.subr.bf16.mxu1 %v16550_v4 }
 0x5fa   : > { %13823 = vmatpush3.bf16.msra.mxu0 %v14940_v21 }
 0x5fb   : > { %13824 = vmatprep.subr.bf16.mxu0 %v16550_v4 }
 0x5fc   : > { %13853 = vmatpush3.bf16.msra.mxu1 %v15049_v50 }
 0x5fd   : > { %13854 = vmatprep.subr.bf16.mxu1 %v16550_v4 }
 0x5fe   : > { %13826 = vmatpush3.bf16.msra.mxu0 %v14959_v35 }
 0x5ff   : > { %13827 = vmatprep.subr.bf16.mxu0 %v16550_v4 }
 0x600   : > { %13856 = vmatpush3.bf16.msra.mxu1 %v15064_v56 }
 0x601   : > { %13857 = vmatprep.subr.bf16.mxu1 %v16550_v4 }
 0x602   : > { %13829 = vmatpush3.bf16.msra.mxu0 %v14985_v54 }
 0x603   : > { %13830 = vmatprep.subr.bf16.mxu0 %v16550_v4 }
 0x604   : > { %13859 = vmatpush3.bf16.msra.mxu1 %v15086_v30 }
 0x605   : > { %13860 = vmatprep.subr.bf16.mxu1 %v16550_v4 }
 0x606   : > { %13832 = vmatpush3.bf16.msra.mxu0 %v15005_v6 }
 0x607   : > { %13833 = vmatprep.subr.bf16.mxu0 %v16550_v4 }
 0x608   : > { %13862 = vmatpush3.bf16.msra.mxu1 %v16551_v53 }
 0x609   : > { %13863 = vmatprep.subr.bf16.mxu1 %v16550_v4 }
 0x60a   : > { %13835 = vmatpush3.bf16.msra.mxu0 %v15047_v47 }
 0x60b   : > { %13836 = vmatprep.subr.bf16.mxu0 %v16550_v4 }
 0x60c   : > { %13865 = vmatpush3.bf16.msra.mxu1 %v16553_v13 }
 0x60d   : > { %13890 = vmatprep.subr.bf16.mxu1 %v16550_v4 }
 0x60e   : > { %13838 = vmatpush3.bf16.msra.mxu0 %v15060_v58 }
 0x60f   : > { %13839 = vmatprep.subr.bf16.mxu0 %v16550_v4 }
 0x612   : > { %13841 = vmatpush3.bf16.msra.mxu0 %v15079_v15 }
 0x613   : > { %13866 = vmatprep.subr.bf16.mxu0 %v16550_v4 }
 0x668   : > { %v5152_v23 = vpop.f32.mrb[48].mxu1 }
 0x669   : > { %v11883_v52 = vpop.f32.mrb[49].mxu1 }
 0x670   : > { %v5001_v63 = vpop.f32.mrb[48].mxu0 }
 0x671   : > { %v5153_v3 = vadd.f32 %v5152_v23, %v5001_v63  ;;  %v11848_v2 = vpop.f32.mrb[49].mxu0 }
 0x688   : > { %v5345_v5 = vpop.f32.mrb[50].mxu1 }
 0x689   : > { %v11953_v18 = vpop.f32.mrb[51].mxu1 }
 0x690   : > { %v5256_v44 = vpop.f32.mrb[50].mxu0 }
 0x691   : > { %v5257_v12 = vadd.f32 %v5256_v44, %v5153_v3  ;;  %v11918_v41 = vpop.f32.mrb[51].mxu0 }
 0x693   : > { %v5346_v26 = vadd.f32 %v5345_v5, %v5257_v12 }
 0x6a8   : > { %v5551_v8 = vpop.f32.mrb[52].mxu1 }
 0x6a9   : > { %v12023_v36 = vpop.f32.mrb[53].mxu1 }
 0x6b0   : > { %v5464_v46 = vpop.f32.mrb[52].mxu0  ;;  %v5724_v55 = vpop.f32.mrb[54].mxu1 }
 0x6b1   : > { %v5465_v0 = vadd.f32 %v5464_v46, %v5346_v26  ;;  %v11988_v40 = vpop.f32.mrb[53].mxu0  ;;  %v12045_v1 = vpop.f32.mrb[55].mxu1 }
 0x6b2   : > { %v9639_v1 = vld [vmem:[%s14909_s20 + $0x28] sm:$0xff] }
 0x6b3   : > { %v5552_v62 = vadd.f32 %v5551_v8, %v5465_v0 }
 0x6b8   : > { %v5633_v32 = vpop.f32.mrb[54].mxu0 }
 0x6b9   : > { %v5634_v22 = vadd.f32 %v5633_v32, %v5552_v62  ;;  %v12034_v52 = vpop.f32.mrb[55].mxu0  ;;  %v6691_v62 = vsel %vm1009_vm1, %v9639_v1, 0 }
 0x6ba   : > { %v5881_v23 = vpop.f32.mrb[56].mxu1  ;;  %v6762_v32 = vand.u32 4294901760, %v6691_v62 }
 0x6bb   : > { %v5725_v63 = vadd.f32 %v5724_v55, %v5634_v22  ;;  %v12067_v2 = vpop.f32.mrb[57].mxu1 }
 0x6bc   : > { %v6763_v22 = vsub.f32 %v6691_v62, %v6762_v32  ;;  %v16554_v2 = vld [vmem:[#allocation17_spill] sm:$0xff] }
 0x6be   : > { %v6764_v52 = vand.u32 4294901760, %v6763_v22 }
 0x6c0   : > { %v5804_v18 = vpop.f32.mrb[56].mxu0 }
 0x6c1   : > { %v5805_v13 = vadd.f32 %v5804_v18, %v5725_v63  ;;  %v12056_v3 = vpop.f32.mrb[57].mxu0  ;;  %v16555_v18 = vld [vmem:[#allocation18_spill] sm:$0xff] }
 0x6c2   : > { %v6039_v44 = vpop.f32.mrb[58].mxu1 }
 0x6c3   : > { %v5882_v5 = vadd.f32 %v5881_v23, %v5805_v13  ;;  %v12089_v12 = vpop.f32.mrb[59].mxu1  ;;  %v6765_v23 = vsub.f32 %v6763_v22, %v6764_v52 }
 0x6c5   : > { %v6766_v63 = vand.u32 4294901760, %v6765_v23 }
 0x6c8   : > { %v5964_v41 = vpop.f32.mrb[58].mxu0 }
 0x6c9   : > { %v5965_v36 = vadd.f32 %v5964_v41, %v5882_v5  ;;  %v12078_v53 = vpop.f32.mrb[59].mxu0 }
 0x6cb   : > { %v6040_v26 = vadd.f32 %v6039_v44, %v5965_v36 }
 0x6cd   : > { %v6043_v46 = vadd.f32 %v15837_v33, %v6040_v26 }
 0x6cf   : > { %v6044_v8 = vmax.f32 %v6043_v46, 0.0 }
 0x6d1   : > { %9638 = vst [vmem:[%s14919_s9 + $0x20] sm:$0xff] %v6044_v8  ;;  %v15995_v0 = vand.u32 4294901760, %v6044_v8 }
 0x6d3   : > { %v6131_v40 = vsub.f32 %v6044_v8, %v15995_v0  ;;  %12158 = vmatmul.mubr.f32.vlgmr.msra.gmra.mrb[60].mxu1 %v15995_v0 }
 0x6d4   : > { %13892 = vmatpush3.bf16.msra.mxu1 %v14931_v14  ;;  %12227 = vmatprep.mubr.msk.f32.mxu1 %vm14667_vm0, %v16549_v34 }
 0x6d5   : > { %13893 = vmatprep.subr.bf16.mxu1 %v16550_v4  ;;  %v6132_v13 = vand.u32 4294901760, %v6131_v40 }
 0x6d7   : > { %v6133_v53 = vsub.f32 %v6131_v40, %v6132_v13 }
 0x6d8   : > { %13895 = vmatpush3.bf16.msra.mxu1 %v14940_v21 }
 0x6d9   : > { %13896 = vmatprep.subr.bf16.mxu1 %v16550_v4  ;;  %v6134_v55 = vand.u32 4294901760, %v6133_v53 }
 0x6db   : > { %12123 = vmatmul.mubr.f32.vlgmr.msra.gmra.mrb[60].mxu0 %v6134_v55 }
 0x6dc   : > { %13868 = vmatpush3.bf16.msra.mxu0 %v15102_v45  ;;  %13898 = vmatpush3.bf16.msra.mxu1 %v14959_v35 }
 0x6dd   : > { %13869 = vmatprep.subr.bf16.mxu0 %v16550_v4  ;;  %13899 = vmatprep.subr.bf16.mxu1 %v16550_v4 }
 0x6de   : > { %12192 = vmatprep.mubr.msk.f32.mxu0 %vm14667_vm0, %v16549_v34 }
 0x6e0   : > { %13871 = vmatpush3.bf16.msra.mxu0 %v15112_v7  ;;  %13901 = vmatpush3.bf16.msra.mxu1 %v14985_v54 }
 0x6e1   : > { %13872 = vmatprep.subr.bf16.mxu0 %v16550_v4  ;;  %13902 = vmatprep.subr.bf16.mxu1 %v16550_v4 }
 0x6e4   : > { %13874 = vmatpush3.bf16.msra.mxu0 %v15122_v59  ;;  %13904 = vmatpush3.bf16.msra.mxu1 %v15005_v6 }
 0x6e5   : > { %13875 = vmatprep.subr.bf16.mxu0 %v16550_v4  ;;  %13905 = vmatprep.subr.bf16.mxu1 %v16550_v4 }
 0x6e8   : > { %13877 = vmatpush3.bf16.msra.mxu0 %v15131_v19  ;;  %13907 = vmatpush3.bf16.msra.mxu1 %v15047_v47 }
 0x6e9   : > { %13878 = vmatprep.subr.bf16.mxu0 %v16550_v4  ;;  %13908 = vmatprep.subr.bf16.mxu1 %v16550_v4 }
 0x6ec   : > { %13880 = vmatpush3.bf16.msra.mxu0 %v15141_v25  ;;  %13910 = vmatpush3.bf16.msra.mxu1 %v15060_v58 }
 0x6ed   : > { %13881 = vmatprep.subr.bf16.mxu0 %v16550_v4  ;;  %13911 = vmatprep.subr.bf16.mxu1 %v16550_v4 }
 0x6f0   : > { %13883 = vmatpush3.bf16.msra.mxu0 %v15149_v31  ;;  %13913 = vmatpush3.bf16.msra.mxu1 %v15079_v15 }
 0x6f1   : > { %13884 = vmatprep.subr.bf16.mxu0 %v16550_v4  ;;  %13938 = vmatprep.subr.bf16.mxu1 %v16550_v4 }
 0x6f3   : > { %12228 = vmatmul.mubr.f32.vlgmr.msra.gmra.mrb[62].mxu1 %v6132_v13 }
 0x6f4   : > { %13886 = vmatpush3.bf16.msra.mxu0 %v15157_v43  ;;  %13940 = vmatpush3.bf16.msra.mxu1 %v14931_v14 }
 0x6f5   : > { %13887 = vmatprep.subr.bf16.mxu0 %v16550_v4  ;;  %13941 = vmatprep.subr.bf16.mxu1 %v16550_v4 }
 0x6f6   : > { %12297 = vmatprep.mubr.msk.f32.mxu1 %vm14667_vm0, %v16549_v34 }
 0x6f8   : > { %13889 = vmatpush3.bf16.msra.mxu0 %v15165_v9  ;;  %13943 = vmatpush3.bf16.msra.mxu1 %v14940_v21 }
 0x6f9   : > { %13914 = vmatprep.subr.bf16.mxu0 %v16550_v4  ;;  %13944 = vmatprep.subr.bf16.mxu1 %v16550_v4 }
 0x6fb   : > { %12193 = vmatmul.mubr.f32.vlgmr.msra.gmra.mrb[62].mxu0 %v6131_v40 }
 0x6fc   : > { %13916 = vmatpush3.bf16.msra.mxu0 %v15175_v37  ;;  %13946 = vmatpush3.bf16.msra.mxu1 %v14959_v35 }
 0x6fd   : > { %13917 = vmatprep.subr.bf16.mxu0 %v16550_v4  ;;  %13947 = vmatprep.subr.bf16.mxu1 %v16550_v4 }
 0x6fe   : > { %12262 = vmatprep.mubr.msk.f32.mxu0 %vm14667_vm0, %v16549_v34 }
 0x700   : > { %13919 = vmatpush3.bf16.msra.mxu0 %v15186_v51  ;;  %13949 = vmatpush3.bf16.msra.mxu1 %v14985_v54 }
 0x701   : > { %13920 = vmatprep.subr.bf16.mxu0 %v16550_v4  ;;  %13950 = vmatprep.subr.bf16.mxu1 %v16550_v4 }
 0x704   : > { %13922 = vmatpush3.bf16.msra.mxu0 %v15198_v16  ;;  %13952 = vmatpush3.bf16.msra.mxu1 %v15005_v6 }
 0x705   : > { %13923 = vmatprep.subr.bf16.mxu0 %v16550_v4  ;;  %13953 = vmatprep.subr.bf16.mxu1 %v16550_v4 }
 0x708   : > { %13925 = vmatpush3.bf16.msra.mxu0 %v15210_v17  ;;  %13955 = vmatpush3.bf16.msra.mxu1 %v15047_v47 }
 0x709   : > { %13926 = vmatprep.subr.bf16.mxu0 %v16550_v4  ;;  %13956 = vmatprep.subr.bf16.mxu1 %v16550_v4 }
 0x70c   : > { %13928 = vmatpush3.bf16.msra.mxu0 %v15222_v20  ;;  %13958 = vmatpush3.bf16.msra.mxu1 %v15060_v58 }
 0x70d   : > { %13929 = vmatprep.subr.bf16.mxu0 %v16550_v4  ;;  %13959 = vmatprep.subr.bf16.mxu1 %v16550_v4 }
 0x710   : > { %13931 = vmatpush3.bf16.msra.mxu0 %v15233_v28  ;;  %13961 = vmatpush3.bf16.msra.mxu1 %v15079_v15 }
 0x711   : > { %13932 = vmatprep.subr.bf16.mxu0 %v16550_v4  ;;  %13968 = vmatprep.subr.bf16.mxu1 %v16550_v4 }
 0x713   : > { %12298 = vmatmul.mubr.f32.vlgmr.msra.gmra.mrb[64].mxu1 %v15995_v0 }
 0x714   : > { %13934 = vmatpush3.bf16.msra.mxu0 %v15242_v48  ;;  %13970 = vmatpush3.bf16.msra.mxu1 %v15282_v24 }
 0x715   : > { %13935 = vmatprep.subr.bf16.mxu0 %v16550_v4  ;;  %13971 = vmatprep.subr.bf16.mxu1 %v16550_v4 }
 0x716   : > { %12319 = vmatprep.mubr.msk.f32.mxu1 %vm14667_vm0, %v16549_v34 }
 0x718   : > { %13937 = vmatpush3.bf16.msra.mxu0 %v15254_v11  ;;  %13973 = vmatpush3.bf16.msra.mxu1 %v15291_v38 }
 0x719   : > { %13962 = vmatprep.subr.bf16.mxu0 %v16550_v4  ;;  %13980 = vmatprep.subr.bf16.mxu1 %v16550_v4 }
 0x71b   : > { %12263 = vmatmul.mubr.f32.vlgmr.msra.gmra.mrb[64].mxu0 %v15995_v0  ;;  %12320 = vmatmul.mubr.f32.vlgmr.msra.gmra.mrb[66].mxu1 %v6762_v32 }
 0x71c   : > { %13964 = vmatpush3.bf16.msra.mxu0 %v15263_v39  ;;  %12308 = vmatprep.mubr.msk.f32.mxu0 %vm14667_vm0, %v16549_v34 }
 0x71d   : > { %13965 = vmatprep.subr.bf16.mxu0 %v16550_v4  ;;  %13982 = vmatpush3.bf16.msra.mxu1 %v15263_v39 }
 0x71e   : > { %13983 = vmatprep.subr.bf16.mxu1 %v16550_v4  ;;  %12341 = vmatprep.mubr.msk.f32.mxu1 %vm14667_vm0, %v16549_v34 }
 0x720   : > { %13967 = vmatpush3.bf16.msra.mxu0 %v15271_v61 }
 0x721   : > { %13974 = vmatprep.subr.bf16.mxu0 %v16550_v4  ;;  %13985 = vmatpush3.bf16.msra.mxu1 %v15271_v61 }
 0x722   : > { %13992 = vmatprep.subr.bf16.mxu1 %v16550_v4 }
 0x723   : > { %12309 = vmatmul.mubr.f32.vlgmr.msra.gmra.mrb[66].mxu0 %v6766_v63 }
 0x724   : > { %13976 = vmatpush3.bf16.msra.mxu0 %v15284_v29  ;;  %12330 = vmatprep.mubr.msk.f32.mxu0 %vm14667_vm0, %v16549_v34 }
 0x725   : > { %13977 = vmatprep.subr.bf16.mxu0 %v16550_v4  ;;  %12342 = vmatmul.mubr.f32.vlgmr.msra.gmra.mrb[68].mxu1 %v6764_v52 }
 0x726   : > { %13994 = vmatpush3.bf16.msra.mxu1 %v15263_v39  ;;  %12363 = vmatprep.mubr.msk.f32.mxu1 %vm14667_vm0, %v16549_v34 }
 0x727   : > { %13995 = vmatprep.subr.bf16.mxu1 %v16550_v4 }
 0x728   : > { %13979 = vmatpush3.bf16.msra.mxu0 %v15293_v42 }
 0x729   : > { %13986 = vmatprep.subr.bf16.mxu0 %v16550_v4 }
 0x72a   : > { %13997 = vmatpush3.bf16.msra.mxu1 %v15271_v61 }
 0x72b   : > { %12331 = vmatmul.mubr.f32.vlgmr.msra.gmra.mrb[68].mxu0 %v6763_v22  ;;  %14022 = vmatprep.subr.bf16.mxu1 %v16550_v4 }
 0x72c   : > { %13988 = vmatpush3.bf16.msra.mxu0 %v15303_v27  ;;  %12352 = vmatprep.mubr.msk.f32.mxu0 %vm14667_vm0, %v16549_v34 }
 0x72d   : > { %13989 = vmatprep.subr.bf16.mxu0 %v16550_v4  ;;  %12364 = vmatmul.mubr.f32.vlgmr.msra.gmra.mrb[70].mxu1 %v6762_v32 }
 0x72e   : > { %14024 = vmatpush3.bf16.msra.mxu1 %v14978_v49  ;;  %12433 = vmatprep.mubr.msk.f32.mxu1 %vm14667_vm0, %v16549_v34 }
 0x72f   : > { %14025 = vmatprep.subr.bf16.mxu1 %v16550_v4 }
 0x730   : > { %13991 = vmatpush3.bf16.msra.mxu0 %v15311_v57 }
 0x731   : > { %13998 = vmatprep.subr.bf16.mxu0 %v16550_v4 }
 0x732   : > { %14027 = vmatpush3.bf16.msra.mxu1 %v14993_v60 }
 0x733   : > { %12353 = vmatmul.mubr.f32.vlgmr.msra.gmra.mrb[70].mxu0 %v6762_v32  ;;  %14028 = vmatprep.subr.bf16.mxu1 %v16550_v4 }
 0x734   : > { %14000 = vmatpush3.bf16.msra.mxu0 %v14931_v14  ;;  %12398 = vmatprep.mubr.msk.f32.mxu0 %vm14667_vm0, %v16549_v34 }
 0x735   : > { %14001 = vmatprep.subr.bf16.mxu0 %v16550_v4 }
 0x736   : > { %14030 = vmatpush3.bf16.msra.mxu1 %v15011_v10 }
 0x737   : > { %14031 = vmatprep.subr.bf16.mxu1 %v16550_v4 }
 0x738   : > { %14003 = vmatpush3.bf16.msra.mxu0 %v14940_v21 }
 0x739   : > { %14004 = vmatprep.subr.bf16.mxu0 %v16550_v4 }
 0x73a   : > { %14033 = vmatpush3.bf16.msra.mxu1 %v15049_v50 }
 0x73b   : > { %14034 = vmatprep.subr.bf16.mxu1 %v16550_v4 }
 0x73c   : > { %14006 = vmatpush3.bf16.msra.mxu0 %v14959_v35 }
 0x73d   : > { %14007 = vmatprep.subr.bf16.mxu0 %v16550_v4 }
 0x73e   : > { %14036 = vmatpush3.bf16.msra.mxu1 %v15064_v56 }
 0x73f   : > { %14037 = vmatprep.subr.bf16.mxu1 %v16550_v4 }
 0x740   : > { %14009 = vmatpush3.bf16.msra.mxu0 %v14985_v54 }
 0x741   : > { %14010 = vmatprep.subr.bf16.mxu0 %v16550_v4 }
 0x742   : > { %14039 = vmatpush3.bf16.msra.mxu1 %v15086_v30 }
 0x743   : > { %14040 = vmatprep.subr.bf16.mxu1 %v16550_v4 }
 0x744   : > { %14012 = vmatpush3.bf16.msra.mxu0 %v15005_v6 }
 0x745   : > { %14013 = vmatprep.subr.bf16.mxu0 %v16550_v4 }
 0x746   : > { %14042 = vmatpush3.bf16.msra.mxu1 %v16554_v2 }
 0x747   : > { %14043 = vmatprep.subr.bf16.mxu1 %v16550_v4 }
 0x748   : > { %14015 = vmatpush3.bf16.msra.mxu0 %v15047_v47 }
 0x749   : > { %14016 = vmatprep.subr.bf16.mxu0 %v16550_v4 }
 0x74a   : > { %14045 = vmatpush3.bf16.msra.mxu1 %v16555_v18 }
 0x74b   : > { %14070 = vmatprep.subr.bf16.mxu1 %v16550_v4 }
 0x74c   : > { %14018 = vmatpush3.bf16.msra.mxu0 %v15060_v58 }
 0x74d   : > { %14019 = vmatprep.subr.bf16.mxu0 %v16550_v4 }
 0x750   : > { %14021 = vmatpush3.bf16.msra.mxu0 %v15079_v15 }
 0x751   : > { %14046 = vmatprep.subr.bf16.mxu0 %v16550_v4 }
 0x7a6   : > { %v6287_v3 = vpop.f32.mrb[60].mxu1 }
 0x7a7   : > { %v12159_v44 = vpop.f32.mrb[61].mxu1 }
 0x7ae   : > { %v6136_v5 = vpop.f32.mrb[60].mxu0 }
 0x7af   : > { %v6288_v12 = vadd.f32 %v6287_v3, %v6136_v5  ;;  %v12124_v41 = vpop.f32.mrb[61].mxu0 }
 0x7c6   : > { %v6480_v36 = vpop.f32.mrb[62].mxu1 }
 0x7c7   : > { %v12229_v26 = vpop.f32.mrb[63].mxu1 }
 0x7ce   : > { %v6391_v46 = vpop.f32.mrb[62].mxu0 }
 0x7cf   : > { %v6392_v8 = vadd.f32 %v6391_v46, %v6288_v12  ;;  %v12194_v0 = vpop.f32.mrb[63].mxu0 }
 0x7d1   : > { %v6481_v40 = vadd.f32 %v6480_v36, %v6392_v8 }
 0x7e6   : > { %v6686_v13 = vpop.f32.mrb[64].mxu1 }
 0x7e7   : > { %v12299_v53 = vpop.f32.mrb[65].mxu1 }
 0x7ee   : > { %v6599_v55 = vpop.f32.mrb[64].mxu0  ;;  %v6859_v1 = vpop.f32.mrb[66].mxu1 }
 0x7ef   : > { %v6600_v62 = vadd.f32 %v6599_v55, %v6481_v40  ;;  %v12264_v32 = vpop.f32.mrb[65].mxu0  ;;  %v12321_v22 = vpop.f32.mrb[67].mxu1 }
 0x7f1   : > { %v6687_v52 = vadd.f32 %v6686_v13, %v6600_v62 }
 0x7f6   : > { %v6768_v23 = vpop.f32.mrb[66].mxu0 }
 0x7f7   : > { %v6769_v63 = vadd.f32 %v6768_v23, %v6687_v52  ;;  %v12310_v44 = vpop.f32.mrb[67].mxu0 }
 0x7f8   : > { %v7016_v3 = vpop.f32.mrb[68].mxu1 }
 0x7f9   : > { %v6860_v5 = vadd.f32 %v6859_v1, %v6769_v63  ;;  %v12343_v41 = vpop.f32.mrb[69].mxu1  ;;  %v9641_v1 = vld [vmem:[%s14909_s20 + $0x30] sm:$0xff] }
 0x7fa   : > { %v7826_v22 = vsel %vm1009_vm1, %v9641_v1, 0 }
 0x7fb   : > { %v7897_v52 = vand.u32 4294901760, %v7826_v22 }
 0x7fd   : > { %v7898_v23 = vsub.f32 %v7826_v22, %v7897_v52 }
 0x7fe   : > { %v6939_v26 = vpop.f32.mrb[68].mxu0 }
 0x7ff   : > { %v6940_v18 = vadd.f32 %v6939_v26, %v6860_v5  ;;  %v12332_v12 = vpop.f32.mrb[69].mxu0  ;;  %v7899_v63 = vand.u32 4294901760, %v7898_v23 }
 0x800   : > { %v7174_v46 = vpop.f32.mrb[70].mxu1 }
 0x801   : > { %v7017_v36 = vadd.f32 %v7016_v3, %v6940_v18  ;;  %v12365_v8 = vpop.f32.mrb[71].mxu1  ;;  %v7900_v44 = vsub.f32 %v7898_v23, %v7899_v63 }
 0x803   : > { %v7901_v3 = vand.u32 4294901760, %v7900_v44 }
 0x806   : > { %v7099_v0 = vpop.f32.mrb[70].mxu0 }
 0x807   : > { %v7100_v53 = vadd.f32 %v7099_v0, %v7017_v36  ;;  %v12354_v2 = vpop.f32.mrb[71].mxu0 }
 0x809   : > { %v7175_v40 = vadd.f32 %v7174_v46, %v7100_v53 }
 0x80b   : > { %v7178_v55 = vadd.f32 %v15837_v33, %v7175_v40 }
 0x80d   : > { %v7179_v13 = vmax.f32 %v7178_v55, 0.0 }
 0x80f   : > { %9640 = vst [vmem:[%s14919_s9 + $0x28] sm:$0xff] %v7179_v13  ;;  %v16149_v62 = vand.u32 4294901760, %v7179_v13 }
 0x811   : > { %v7266_v32 = vsub.f32 %v7179_v13, %v16149_v62  ;;  %12434 = vmatmul.mubr.f32.vlgmr.msra.gmra.mrb[72].mxu1 %v16149_v62 }
 0x812   : > { %14072 = vmatpush3.bf16.msra.mxu1 %v14931_v14  ;;  %12503 = vmatprep.mubr.msk.f32.mxu1 %vm14667_vm0, %v16549_v34 }
 0x813   : > { %14073 = vmatprep.subr.bf16.mxu1 %v16550_v4  ;;  %v7267_v18 = vand.u32 4294901760, %v7266_v32 }
 0x815   : > { %v7268_v2 = vsub.f32 %v7266_v32, %v7267_v18 }
 0x816   : > { %14075 = vmatpush3.bf16.msra.mxu1 %v14940_v21 }
 0x817   : > { %14076 = vmatprep.subr.bf16.mxu1 %v16550_v4  ;;  %v7269_v33 = vand.u32 4294901760, %v7268_v2 }
 0x819   : > { %12399 = vmatmul.mubr.f32.vlgmr.msra.gmra.mrb[72].mxu0 %v7269_v33 }
 0x81a   : > { %14048 = vmatpush3.bf16.msra.mxu0 %v15102_v45  ;;  %14078 = vmatpush3.bf16.msra.mxu1 %v14959_v35 }
 0x81b   : > { %14049 = vmatprep.subr.bf16.mxu0 %v16550_v4  ;;  %14079 = vmatprep.subr.bf16.mxu1 %v16550_v4 }
 0x81c   : > { %12468 = vmatprep.mubr.msk.f32.mxu0 %vm14667_vm0, %v16549_v34 }
 0x81e   : > { %14051 = vmatpush3.bf16.msra.mxu0 %v15112_v7  ;;  %14081 = vmatpush3.bf16.msra.mxu1 %v14985_v54 }
 0x81f   : > { %14052 = vmatprep.subr.bf16.mxu0 %v16550_v4  ;;  %14082 = vmatprep.subr.bf16.mxu1 %v16550_v4 }
 0x822   : > { %14054 = vmatpush3.bf16.msra.mxu0 %v15122_v59  ;;  %14084 = vmatpush3.bf16.msra.mxu1 %v15005_v6 }
 0x823   : > { %14055 = vmatprep.subr.bf16.mxu0 %v16550_v4  ;;  %14085 = vmatprep.subr.bf16.mxu1 %v16550_v4 }
 0x826   : > { %14057 = vmatpush3.bf16.msra.mxu0 %v15131_v19  ;;  %14087 = vmatpush3.bf16.msra.mxu1 %v15047_v47 }
 0x827   : > { %14058 = vmatprep.subr.bf16.mxu0 %v16550_v4  ;;  %14088 = vmatprep.subr.bf16.mxu1 %v16550_v4 }
 0x82a   : > { %14060 = vmatpush3.bf16.msra.mxu0 %v15141_v25  ;;  %14090 = vmatpush3.bf16.msra.mxu1 %v15060_v58 }
 0x82b   : > { %14061 = vmatprep.subr.bf16.mxu0 %v16550_v4  ;;  %14091 = vmatprep.subr.bf16.mxu1 %v16550_v4 }
 0x82e   : > { %14063 = vmatpush3.bf16.msra.mxu0 %v15149_v31  ;;  %14093 = vmatpush3.bf16.msra.mxu1 %v15079_v15 }
 0x82f   : > { %14064 = vmatprep.subr.bf16.mxu0 %v16550_v4  ;;  %14118 = vmatprep.subr.bf16.mxu1 %v16550_v4 }
 0x831   : > { %12504 = vmatmul.mubr.f32.vlgmr.msra.gmra.mrb[74].mxu1 %v7267_v18 }
 0x832   : > { %14066 = vmatpush3.bf16.msra.mxu0 %v15157_v43  ;;  %14120 = vmatpush3.bf16.msra.mxu1 %v14931_v14 }
 0x833   : > { %14067 = vmatprep.subr.bf16.mxu0 %v16550_v4  ;;  %14121 = vmatprep.subr.bf16.mxu1 %v16550_v4 }
 0x834   : > { %12573 = vmatprep.mubr.msk.f32.mxu1 %vm14667_vm0, %v16549_v34 }
 0x836   : > { %14069 = vmatpush3.bf16.msra.mxu0 %v15165_v9  ;;  %14123 = vmatpush3.bf16.msra.mxu1 %v14940_v21 }
 0x837   : > { %14094 = vmatprep.subr.bf16.mxu0 %v16550_v4  ;;  %14124 = vmatprep.subr.bf16.mxu1 %v16550_v4 }
 0x839   : > { %12469 = vmatmul.mubr.f32.vlgmr.msra.gmra.mrb[74].mxu0 %v7266_v32 }
 0x83a   : > { %14096 = vmatpush3.bf16.msra.mxu0 %v15175_v37  ;;  %14126 = vmatpush3.bf16.msra.mxu1 %v14959_v35 }
 0x83b   : > { %14097 = vmatprep.subr.bf16.mxu0 %v16550_v4  ;;  %14127 = vmatprep.subr.bf16.mxu1 %v16550_v4 }
 0x83c   : > { %12538 = vmatprep.mubr.msk.f32.mxu0 %vm14667_vm0, %v16549_v34 }
 0x83e   : > { %14099 = vmatpush3.bf16.msra.mxu0 %v15186_v51  ;;  %14129 = vmatpush3.bf16.msra.mxu1 %v14985_v54 }
 0x83f   : > { %14100 = vmatprep.subr.bf16.mxu0 %v16550_v4  ;;  %14130 = vmatprep.subr.bf16.mxu1 %v16550_v4 }
 0x842   : > { %14102 = vmatpush3.bf16.msra.mxu0 %v15198_v16  ;;  %14132 = vmatpush3.bf16.msra.mxu1 %v15005_v6 }
 0x843   : > { %14103 = vmatprep.subr.bf16.mxu0 %v16550_v4  ;;  %14133 = vmatprep.subr.bf16.mxu1 %v16550_v4 }
 0x846   : > { %14105 = vmatpush3.bf16.msra.mxu0 %v15210_v17  ;;  %14135 = vmatpush3.bf16.msra.mxu1 %v15047_v47 }
 0x847   : > { %14106 = vmatprep.subr.bf16.mxu0 %v16550_v4  ;;  %14136 = vmatprep.subr.bf16.mxu1 %v16550_v4 }
 0x84a   : > { %14108 = vmatpush3.bf16.msra.mxu0 %v15222_v20  ;;  %14138 = vmatpush3.bf16.msra.mxu1 %v15060_v58 }
 0x84b   : > { %14109 = vmatprep.subr.bf16.mxu0 %v16550_v4  ;;  %14139 = vmatprep.subr.bf16.mxu1 %v16550_v4 }
 0x84e   : > { %14111 = vmatpush3.bf16.msra.mxu0 %v15233_v28  ;;  %14141 = vmatpush3.bf16.msra.mxu1 %v15079_v15 }
 0x84f   : > { %14112 = vmatprep.subr.bf16.mxu0 %v16550_v4  ;;  %14148 = vmatprep.subr.bf16.mxu1 %v16550_v4 }
 0x851   : > { %12574 = vmatmul.mubr.f32.vlgmr.msra.gmra.mrb[76].mxu1 %v16149_v62 }
 0x852   : > { %14114 = vmatpush3.bf16.msra.mxu0 %v15242_v48  ;;  %14150 = vmatpush3.bf16.msra.mxu1 %v15282_v24 }
 0x853   : > { %14115 = vmatprep.subr.bf16.mxu0 %v16550_v4  ;;  %14151 = vmatprep.subr.bf16.mxu1 %v16550_v4 }
 0x854   : > { %12595 = vmatprep.mubr.msk.f32.mxu1 %vm14667_vm0, %v16549_v34 }
 0x856   : > { %14117 = vmatpush3.bf16.msra.mxu0 %v15254_v11  ;;  %14153 = vmatpush3.bf16.msra.mxu1 %v15291_v38 }
 0x857   : > { %14142 = vmatprep.subr.bf16.mxu0 %v16550_v4  ;;  %14160 = vmatprep.subr.bf16.mxu1 %v16550_v4 }
 0x859   : > { %12539 = vmatmul.mubr.f32.vlgmr.msra.gmra.mrb[76].mxu0 %v16149_v62  ;;  %12596 = vmatmul.mubr.f32.vlgmr.msra.gmra.mrb[78].mxu1 %v7897_v52 }
 0x85a   : > { %14144 = vmatpush3.bf16.msra.mxu0 %v15263_v39  ;;  %12584 = vmatprep.mubr.msk.f32.mxu0 %vm14667_vm0, %v16549_v34 }
 0x85b   : > { %14145 = vmatprep.subr.bf16.mxu0 %v16550_v4  ;;  %14162 = vmatpush3.bf16.msra.mxu1 %v15263_v39 }
 0x85c   : > { %14163 = vmatprep.subr.bf16.mxu1 %v16550_v4  ;;  %12617 = vmatprep.mubr.msk.f32.mxu1 %vm14667_vm0, %v16549_v34 }
 0x85e   : > { %14147 = vmatpush3.bf16.msra.mxu0 %v15271_v61 }
 0x85f   : > { %14154 = vmatprep.subr.bf16.mxu0 %v16550_v4  ;;  %14165 = vmatpush3.bf16.msra.mxu1 %v15271_v61 }
 0x860   : > { %14172 = vmatprep.subr.bf16.mxu1 %v16550_v4 }
 0x861   : > { %12585 = vmatmul.mubr.f32.vlgmr.msra.gmra.mrb[78].mxu0 %v7901_v3 }
 0x862   : > { %14156 = vmatpush3.bf16.msra.mxu0 %v15284_v29  ;;  %12606 = vmatprep.mubr.msk.f32.mxu0 %vm14667_vm0, %v16549_v34 }
 0x863   : > { %14157 = vmatprep.subr.bf16.mxu0 %v16550_v4  ;;  %12618 = vmatmul.mubr.f32.vlgmr.msra.gmra.mrb[80].mxu1 %v7899_v63 }
 0x864   : > { %14174 = vmatpush3.bf16.msra.mxu1 %v15263_v39  ;;  %12639 = vmatprep.mubr.msk.f32.mxu1 %vm14667_vm0, %v16549_v34 }
 0x865   : > { %14175 = vmatprep.subr.bf16.mxu1 %v16550_v4 }
 0x866   : > { %14159 = vmatpush3.bf16.msra.mxu0 %v15293_v42 }
 0x867   : > { %14166 = vmatprep.subr.bf16.mxu0 %v16550_v4 }
 0x868   : > { %14177 = vmatpush3.bf16.msra.mxu1 %v15271_v61 }
 0x869   : > { %12607 = vmatmul.mubr.f32.vlgmr.msra.gmra.mrb[80].mxu0 %v7898_v23  ;;  %14202 = vmatprep.subr.bf16.mxu1 %v16550_v4 }
 0x86a   : > { %14168 = vmatpush3.bf16.msra.mxu0 %v15303_v27  ;;  %12628 = vmatprep.mubr.msk.f32.mxu0 %vm14667_vm0, %v16549_v34 }
 0x86b   : > { %14169 = vmatprep.subr.bf16.mxu0 %v16550_v4  ;;  %12640 = vmatmul.mubr.f32.vlgmr.msra.gmra.mrb[82].mxu1 %v7897_v52 }
 0x86c   : > { %14204 = vmatpush3.bf16.msra.mxu1 %v14978_v49  ;;  %12709 = vmatprep.mubr.msk.f32.mxu1 %vm14667_vm0, %v16549_v34  ;;  %v16556_v49 = vld [vmem:[#allocation17_spill] sm:$0xff] }
 0x86d   : > { %14205 = vmatprep.subr.bf16.mxu1 %v16550_v4 }
 0x86e   : > { %14171 = vmatpush3.bf16.msra.mxu0 %v15311_v57 }
 0x86f   : > { %14178 = vmatprep.subr.bf16.mxu0 %v16550_v4 }
 0x870   : > { %14207 = vmatpush3.bf16.msra.mxu1 %v14993_v60  ;;  %v16557_v60 = vld [vmem:[#allocation18_spill] sm:$0xff] }
 0x871   : > { %12629 = vmatmul.mubr.f32.vlgmr.msra.gmra.mrb[82].mxu0 %v7897_v52  ;;  %14208 = vmatprep.subr.bf16.mxu1 %v16550_v4 }
 0x872   : > { %14180 = vmatpush3.bf16.msra.mxu0 %v14931_v14  ;;  %12674 = vmatprep.mubr.msk.f32.mxu0 %vm14667_vm0, %v16549_v34 }
 0x873   : > { %14181 = vmatprep.subr.bf16.mxu0 %v16550_v4 }
 0x874   : > { %14210 = vmatpush3.bf16.msra.mxu1 %v15011_v10 }
 0x875   : > { %14211 = vmatprep.subr.bf16.mxu1 %v16550_v4 }
 0x876   : > { %14183 = vmatpush3.bf16.msra.mxu0 %v14940_v21 }
 0x877   : > { %14184 = vmatprep.subr.bf16.mxu0 %v16550_v4 }
 0x878   : > { %14213 = vmatpush3.bf16.msra.mxu1 %v15049_v50 }
 0x879   : > { %14214 = vmatprep.subr.bf16.mxu1 %v16550_v4 }
 0x87a   : > { %14186 = vmatpush3.bf16.msra.mxu0 %v14959_v35 }
 0x87b   : > { %14187 = vmatprep.subr.bf16.mxu0 %v16550_v4 }
 0x87c   : > { %14216 = vmatpush3.bf16.msra.mxu1 %v15064_v56 }
 0x87d   : > { %14217 = vmatprep.subr.bf16.mxu1 %v16550_v4 }
 0x87e   : > { %14189 = vmatpush3.bf16.msra.mxu0 %v14985_v54 }
 0x87f   : > { %14190 = vmatprep.subr.bf16.mxu0 %v16550_v4 }
 0x880   : > { %14219 = vmatpush3.bf16.msra.mxu1 %v15086_v30 }
 0x881   : > { %14220 = vmatprep.subr.bf16.mxu1 %v16550_v4 }
 0x882   : > { %14192 = vmatpush3.bf16.msra.mxu0 %v15005_v6 }
 0x883   : > { %14193 = vmatprep.subr.bf16.mxu0 %v16550_v4 }
 0x884   : > { %14222 = vmatpush3.bf16.msra.mxu1 %v16556_v49 }
 0x885   : > { %14223 = vmatprep.subr.bf16.mxu1 %v16550_v4 }
 0x886   : > { %14195 = vmatpush3.bf16.msra.mxu0 %v15047_v47 }
 0x887   : > { %14196 = vmatprep.subr.bf16.mxu0 %v16550_v4 }
 0x888   : > { %14225 = vmatpush3.bf16.msra.mxu1 %v16557_v60 }
 0x889   : > { %14250 = vmatprep.subr.bf16.mxu1 %v16550_v4 }
 0x88a   : > { %14198 = vmatpush3.bf16.msra.mxu0 %v15060_v58 }
 0x88b   : > { %14199 = vmatprep.subr.bf16.mxu0 %v16550_v4 }
 0x88e   : > { %14201 = vmatpush3.bf16.msra.mxu0 %v15079_v15 }
 0x88f   : > { %14226 = vmatprep.subr.bf16.mxu0 %v16550_v4 }
 0x8e4   : > { %v7422_v10 = vpop.f32.mrb[72].mxu1 }
 0x8e5   : > { %v12435_v50 = vpop.f32.mrb[73].mxu1 }
 0x8ec   : > { %v7271_v56 = vpop.f32.mrb[72].mxu0 }
 0x8ed   : > { %v7423_v30 = vadd.f32 %v7422_v10, %v7271_v56  ;;  %v12400_v5 = vpop.f32.mrb[73].mxu0 }
 0x904   : > { %v7615_v41 = vpop.f32.mrb[74].mxu1 }
 0x905   : > { %v12505_v26 = vpop.f32.mrb[75].mxu1 }
 0x90c   : > { %v7526_v12 = vpop.f32.mrb[74].mxu0 }
 0x90d   : > { %v7527_v46 = vadd.f32 %v7526_v12, %v7423_v30  ;;  %v12470_v36 = vpop.f32.mrb[75].mxu0 }
 0x90f   : > { %v7616_v8 = vadd.f32 %v7615_v41, %v7527_v46  ;;  %v16304_v41 = vld [vmem:[%s16512_s3] ss:$0 sm:$0xff] }
 0x924   : > { %v7821_v0 = vpop.f32.mrb[76].mxu1 }
 0x925   : > { %v12575_v53 = vpop.f32.mrb[77].mxu1 }
 0x92c   : > { %v7734_v40 = vpop.f32.mrb[76].mxu0  ;;  %v7994_v55 = vpop.f32.mrb[78].mxu1 }
 0x92d   : > { %v7735_v13 = vadd.f32 %v7734_v40, %v7616_v8  ;;  %v12540_v62 = vpop.f32.mrb[77].mxu0  ;;  %v12597_v32 = vpop.f32.mrb[79].mxu1 }
 0x92f   : > { %v7822_v18 = vadd.f32 %v7821_v0, %v7735_v13 }
 0x934   : > { %v7903_v2 = vpop.f32.mrb[78].mxu0 }
 0x935   : > { %v7904_v33 = vadd.f32 %v7903_v2, %v7822_v18  ;;  %v12586_v1 = vpop.f32.mrb[79].mxu0 }
 0x936   : > { %v8151_v22 = vpop.f32.mrb[80].mxu1 }
 0x937   : > { %v7995_v52 = vadd.f32 %v7994_v55, %v7904_v33  ;;  %v12619_v23 = vpop.f32.mrb[81].mxu1 }
 0x93c   : > { %v8074_v63 = vpop.f32.mrb[80].mxu0 }
 0x93d   : > { %v8075_v44 = vadd.f32 %v8074_v63, %v7995_v52  ;;  %v12608_v3 = vpop.f32.mrb[81].mxu0 }
 0x93e   : > { %v8309_v49 = vpop.f32.mrb[82].mxu1 }
 0x93f   : > { %v8152_v60 = vadd.f32 %v8151_v22, %v8075_v44  ;;  %v12641_v10 = vpop.f32.mrb[83].mxu1 }
 0x944   : > { %v8234_v50 = vpop.f32.mrb[82].mxu0 }
 0x945   : > { %v8235_v56 = vadd.f32 %v8234_v50, %v8152_v60  ;;  %v12630_v30 = vpop.f32.mrb[83].mxu0 }
 0x947   : > { %v8310_v5 = vadd.f32 %v8309_v49, %v8235_v56 }
 0x949   : > { %v8313_v26 = vadd.f32 %v16304_v41, %v8310_v5 }
 0x94b   : > { %v8314_v12 = vmax.f32 %v8313_v26, 0.0 }
 0x94d   : > { %9642 = vst [vmem:[%s14919_s9 + $0x30] sm:$0xff] %v8314_v12  ;;  %v16308_v46 = vand.u32 4294901760, %v8314_v12 }
 0x94f   : > { %v8401_v36 = vsub.f32 %v8314_v12, %v16308_v46  ;;  %12710 = vmatmul.mubr.f32.vlgmr.msra.gmra.mrb[84].mxu1 %v16308_v46 }
 0x950   : > { %14252 = vmatpush3.bf16.msra.mxu1 %v14931_v14  ;;  %12779 = vmatprep.mubr.msk.f32.mxu1 %vm14667_vm0, %v16549_v34 }
 0x951   : > { %14253 = vmatprep.subr.bf16.mxu1 %v16550_v4  ;;  %v8402_v8 = vand.u32 4294901760, %v8401_v36 }
 0x953   : > { %v8403_v0 = vsub.f32 %v8401_v36, %v8402_v8 }
 0x954   : > { %14255 = vmatpush3.bf16.msra.mxu1 %v14940_v21 }
 0x955   : > { %14256 = vmatprep.subr.bf16.mxu1 %v16550_v4  ;;  %v8404_v53 = vand.u32 4294901760, %v8403_v0 }
 0x957   : > { %12675 = vmatmul.mubr.f32.vlgmr.msra.gmra.mrb[84].mxu0 %v8404_v53 }
 0x958   : > { %14228 = vmatpush3.bf16.msra.mxu0 %v15102_v45  ;;  %14258 = vmatpush3.bf16.msra.mxu1 %v14959_v35 }
 0x959   : > { %14229 = vmatprep.subr.bf16.mxu0 %v16550_v4  ;;  %14259 = vmatprep.subr.bf16.mxu1 %v16550_v4 }
 0x95a   : > { %12744 = vmatprep.mubr.msk.f32.mxu0 %vm14667_vm0, %v16549_v34 }
 0x95c   : > { %14231 = vmatpush3.bf16.msra.mxu0 %v15112_v7  ;;  %14261 = vmatpush3.bf16.msra.mxu1 %v14985_v54 }
 0x95d   : > { %14232 = vmatprep.subr.bf16.mxu0 %v16550_v4  ;;  %14262 = vmatprep.subr.bf16.mxu1 %v16550_v4 }
 0x960   : > { %14234 = vmatpush3.bf16.msra.mxu0 %v15122_v59  ;;  %14264 = vmatpush3.bf16.msra.mxu1 %v15005_v6 }
 0x961   : > { %14235 = vmatprep.subr.bf16.mxu0 %v16550_v4  ;;  %14265 = vmatprep.subr.bf16.mxu1 %v16550_v4 }
 0x964   : > { %14237 = vmatpush3.bf16.msra.mxu0 %v15131_v19  ;;  %14267 = vmatpush3.bf16.msra.mxu1 %v15047_v47 }
 0x965   : > { %14238 = vmatprep.subr.bf16.mxu0 %v16550_v4  ;;  %14268 = vmatprep.subr.bf16.mxu1 %v16550_v4 }
 0x968   : > { %14240 = vmatpush3.bf16.msra.mxu0 %v15141_v25  ;;  %14270 = vmatpush3.bf16.msra.mxu1 %v15060_v58 }
 0x969   : > { %14241 = vmatprep.subr.bf16.mxu0 %v16550_v4  ;;  %14271 = vmatprep.subr.bf16.mxu1 %v16550_v4 }
 0x96c   : > { %14243 = vmatpush3.bf16.msra.mxu0 %v15149_v31  ;;  %14273 = vmatpush3.bf16.msra.mxu1 %v15079_v15 }
 0x96d   : > { %14244 = vmatprep.subr.bf16.mxu0 %v16550_v4  ;;  %14298 = vmatprep.subr.bf16.mxu1 %v16550_v4 }
 0x96f   : > { %12780 = vmatmul.mubr.f32.vlgmr.msra.gmra.mrb[86].mxu1 %v8402_v8 }
 0x970   : > { %14246 = vmatpush3.bf16.msra.mxu0 %v15157_v43  ;;  %14300 = vmatpush3.bf16.msra.mxu1 %v14931_v14  ;;  %v9643_v14 = vld [vmem:[%s14909_s20 + $0x38] sm:$0xff]  ;;  %s9485_s20 = sshll.u32 %s14669_s14, 4  ;;  %s16432_s20 = int_to_ptr.vmem [resolvable:$true] %s9485_s20 }
 0x971   : > { %14247 = vmatprep.subr.bf16.mxu0 %v16550_v4  ;;  %14301 = vmatprep.subr.bf16.mxu1 %v16550_v4 }
 0x972   : > { %12849 = vmatprep.mubr.msk.f32.mxu1 %vm14667_vm0, %v16549_v34 }
 0x974   : > { %14249 = vmatpush3.bf16.msra.mxu0 %v15165_v9  ;;  %14303 = vmatpush3.bf16.msra.mxu1 %v14940_v21  ;;  %v8961_v21 = vsel %vm1009_vm1, %v9643_v14, 0 }
 0x975   : > { %14274 = vmatprep.subr.bf16.mxu0 %v16550_v4  ;;  %14304 = vmatprep.subr.bf16.mxu1 %v16550_v4 }
 0x977   : > { %12745 = vmatmul.mubr.f32.vlgmr.msra.gmra.mrb[86].mxu0 %v8401_v36 }
 0x978   : > { %14276 = vmatpush3.bf16.msra.mxu0 %v15175_v37  ;;  %14306 = vmatpush3.bf16.msra.mxu1 %v14959_v35  ;;  %v9032_v35 = vand.u32 4294901760, %v8961_v21 }
 0x979   : > { %14277 = vmatprep.subr.bf16.mxu0 %v16550_v4  ;;  %14307 = vmatprep.subr.bf16.mxu1 %v16550_v4 }
 0x97a   : > { %12814 = vmatprep.mubr.msk.f32.mxu0 %vm14667_vm0, %v16549_v34 }
 0x97c   : > { %14279 = vmatpush3.bf16.msra.mxu0 %v15186_v51  ;;  %14309 = vmatpush3.bf16.msra.mxu1 %v14985_v54  ;;  %v9033_v54 = vsub.f32 %v8961_v21, %v9032_v35 }
 0x97d   : > { %14280 = vmatprep.subr.bf16.mxu0 %v16550_v4  ;;  %14310 = vmatprep.subr.bf16.mxu1 %v16550_v4 }
 0x980   : > { %14282 = vmatpush3.bf16.msra.mxu0 %v15198_v16  ;;  %14312 = vmatpush3.bf16.msra.mxu1 %v15005_v6  ;;  %v9034_v6 = vand.u32 4294901760, %v9033_v54 }
 0x981   : > { %14283 = vmatprep.subr.bf16.mxu0 %v16550_v4  ;;  %14313 = vmatprep.subr.bf16.mxu1 %v16550_v4 }
 0x984   : > { %14285 = vmatpush3.bf16.msra.mxu0 %v15210_v17  ;;  %14315 = vmatpush3.bf16.msra.mxu1 %v15047_v47  ;;  %v9035_v47 = vsub.f32 %v9033_v54, %v9034_v6 }
 0x985   : > { %14286 = vmatprep.subr.bf16.mxu0 %v16550_v4  ;;  %14316 = vmatprep.subr.bf16.mxu1 %v16550_v4 }
 0x988   : > { %14288 = vmatpush3.bf16.msra.mxu0 %v15222_v20  ;;  %14318 = vmatpush3.bf16.msra.mxu1 %v15060_v58  ;;  %v9036_v58 = vand.u32 4294901760, %v9035_v47 }
 0x989   : > { %14289 = vmatprep.subr.bf16.mxu0 %v16550_v4  ;;  %14319 = vmatprep.subr.bf16.mxu1 %v16550_v4 }
 0x98c   : > { %14291 = vmatpush3.bf16.msra.mxu0 %v15233_v28  ;;  %14321 = vmatpush3.bf16.msra.mxu1 %v15079_v15 }
 0x98d   : > { %14292 = vmatprep.subr.bf16.mxu0 %v16550_v4  ;;  %14328 = vmatprep.subr.bf16.mxu1 %v16550_v4 }
 0x98f   : > { %12850 = vmatmul.mubr.f32.vlgmr.msra.gmra.mrb[88].mxu1 %v16308_v46 }
 0x990   : > { %14294 = vmatpush3.bf16.msra.mxu0 %v15242_v48  ;;  %14330 = vmatpush3.bf16.msra.mxu1 %v15282_v24 }
 0x991   : > { %14295 = vmatprep.subr.bf16.mxu0 %v16550_v4  ;;  %14331 = vmatprep.subr.bf16.mxu1 %v16550_v4 }
 0x992   : > { %12871 = vmatprep.mubr.msk.f32.mxu1 %vm14667_vm0, %v16549_v34 }
 0x994   : > { %14297 = vmatpush3.bf16.msra.mxu0 %v15254_v11  ;;  %14333 = vmatpush3.bf16.msra.mxu1 %v15291_v38 }
 0x995   : > { %14322 = vmatprep.subr.bf16.mxu0 %v16550_v4  ;;  %14340 = vmatprep.subr.bf16.mxu1 %v16550_v4 }
 0x997   : > { %12815 = vmatmul.mubr.f32.vlgmr.msra.gmra.mrb[88].mxu0 %v16308_v46  ;;  %12872 = vmatmul.mubr.f32.vlgmr.msra.gmra.mrb[90].mxu1 %v9032_v35 }
 0x998   : > { %14324 = vmatpush3.bf16.msra.mxu0 %v15263_v39  ;;  %12860 = vmatprep.mubr.msk.f32.mxu0 %vm14667_vm0, %v16549_v34 }
 0x999   : > { %14325 = vmatprep.subr.bf16.mxu0 %v16550_v4  ;;  %14342 = vmatpush3.bf16.msra.mxu1 %v15263_v39 }
 0x99a   : > { %14343 = vmatprep.subr.bf16.mxu1 %v16550_v4  ;;  %12893 = vmatprep.mubr.msk.f32.mxu1 %vm14667_vm0, %v16549_v34 }
 0x99c   : > { %14327 = vmatpush3.bf16.msra.mxu0 %v15271_v61 }
 0x99d   : > { %14334 = vmatprep.subr.bf16.mxu0 %v16550_v4  ;;  %14345 = vmatpush3.bf16.msra.mxu1 %v15271_v61 }
 0x99e   : > { %14352 = vmatprep.subr.bf16.mxu1 %v16550_v4 }
 0x99f   : > { %12861 = vmatmul.mubr.f32.vlgmr.msra.gmra.mrb[90].mxu0 %v9036_v58 }
 0x9a0   : > { %14336 = vmatpush3.bf16.msra.mxu0 %v15284_v29  ;;  %12882 = vmatprep.mubr.msk.f32.mxu0 %vm14667_vm0, %v16549_v34 }
 0x9a1   : > { %14337 = vmatprep.subr.bf16.mxu0 %v16550_v4  ;;  %12894 = vmatmul.mubr.f32.vlgmr.msra.gmra.mrb[92].mxu1 %v9034_v6 }
 0x9a2   : > { %14354 = vmatpush3.bf16.msra.mxu1 %v15263_v39  ;;  %12915 = vmatprep.mubr.msk.f32.mxu1 %vm14667_vm0, %v16549_v34 }
 0x9a3   : > { %14355 = vmatprep.subr.bf16.mxu1 %v16550_v4 }
 0x9a4   : > { %14339 = vmatpush3.bf16.msra.mxu0 %v15293_v42 }
 0x9a5   : > { %14346 = vmatprep.subr.bf16.mxu0 %v16550_v4 }
 0x9a6   : > { %14357 = vmatpush3.bf16.msra.mxu1 %v15271_v61 }
 0x9a7   : > { %12883 = vmatmul.mubr.f32.vlgmr.msra.gmra.mrb[92].mxu0 %v9033_v54 }
 0x9a8   : > { %14348 = vmatpush3.bf16.msra.mxu0 %v15303_v27  ;;  %12904 = vmatprep.mubr.msk.f32.mxu0 %vm14667_vm0, %v16549_v34 }
 0x9a9   : > { %14349 = vmatprep.subr.bf16.mxu0 %v16550_v4  ;;  %12916 = vmatmul.mubr.f32.vlgmr.msra.gmra.mrb[94].mxu1 %v9032_v35 }
 0x9ac   : > { %14351 = vmatpush3.bf16.msra.mxu0 %v15311_v57 }
 0x9af   : > { %12905 = vmatmul.mubr.f32.vlgmr.msra.gmra.mrb[94].mxu0 %v9032_v35 }
 0xa22   : > { %v8557_v15 = vpop.f32.mrb[84].mxu1 }
 0xa23   : > { %v12711_v45 = vpop.f32.mrb[85].mxu1 }
 0xa2a   : > { %v8406_v7 = vpop.f32.mrb[84].mxu0 }
 0xa2b   : > { %v8558_v59 = vadd.f32 %v8557_v15, %v8406_v7  ;;  %v12676_v19 = vpop.f32.mrb[85].mxu0 }
 0xa42   : > { %v8750_v25 = vpop.f32.mrb[86].mxu1 }
 0xa43   : > { %v12781_v31 = vpop.f32.mrb[87].mxu1 }
 0xa4a   : > { %v8661_v43 = vpop.f32.mrb[86].mxu0 }
 0xa4b   : > { %v8662_v9 = vadd.f32 %v8661_v43, %v8558_v59  ;;  %v12746_v37 = vpop.f32.mrb[87].mxu0 }
 0xa4d   : > { %v8751_v51 = vadd.f32 %v8750_v25, %v8662_v9 }
 0xa62   : > { %v8956_v16 = vpop.f32.mrb[88].mxu1 }
 0xa63   : > { %v12851_v17 = vpop.f32.mrb[89].mxu1 }
 0xa6a   : > { %v8869_v20 = vpop.f32.mrb[88].mxu0  ;;  %v9129_v28 = vpop.f32.mrb[90].mxu1 }
 0xa6b   : > { %v8870_v48 = vadd.f32 %v8869_v20, %v8751_v51  ;;  %v12816_v11 = vpop.f32.mrb[89].mxu0  ;;  %v12873_v39 = vpop.f32.mrb[91].mxu1 }
 0xa6d   : > { %v8957_v61 = vadd.f32 %v8956_v16, %v8870_v48 }
 0xa72   : > { %v9038_v24 = vpop.f32.mrb[90].mxu0 }
 0xa73   : > { %v9039_v29 = vadd.f32 %v9038_v24, %v8957_v61  ;;  %v12862_v38 = vpop.f32.mrb[91].mxu0 }
 0xa74   : > { %v9286_v42 = vpop.f32.mrb[92].mxu1 }
 0xa75   : > { %v9130_v27 = vadd.f32 %v9129_v28, %v9039_v29  ;;  %v12895_v57 = vpop.f32.mrb[93].mxu1 }
 0xa7a   : > { %v9209_v34 = vpop.f32.mrb[92].mxu0 }
 0xa7b   : > { %v9210_v4 = vadd.f32 %v9209_v34, %v9130_v27  ;;  %v12884_v40 = vpop.f32.mrb[93].mxu0 }
 0xa7c   : > { %v9444_v55 = vpop.f32.mrb[94].mxu1 }
 0xa7d   : > { %v9287_v13 = vadd.f32 %v9286_v42, %v9210_v4  ;;  %v12917_v62 = vpop.f32.mrb[95].mxu1 }
 0xa82   : > { %v9369_v32 = vpop.f32.mrb[94].mxu0 }
 0xa83   : > { %v9370_v18 = vadd.f32 %v9369_v32, %v9287_v13  ;;  %v12906_v2 = vpop.f32.mrb[95].mxu0 }
 0xa85   : > { %v9445_v33 = vadd.f32 %v9444_v55, %v9370_v18 }
 0xa87   : > { %v9448_v1 = vadd.f32 %v16304_v41, %v9445_v33 }
 0xa89   : > { %v9449_v22 = vmax.f32 %v9448_v1, 0.0 }
 0xa8b   : > { %9644 = vst [vmem:[%s14919_s9 + $0x38] sm:$0xff] %v9449_v22  ;;  %9452 = vst [vmem:[#allocation2] sm:$0xff] %v9449_v22 }
 0xa8c   : > { %9453 = vst [vmem:[#allocation10] sm:$0xff] %v9449_v22 }
 0xa8d   : > { %14556 = shalt.err (!%p14553_p1)
}
 0xa8e   : > { %s14557_s9 = scalar_lea.hbm %s16428_s29, 1024  ;;  %s14561_s14 = scalar_lea.hbm %s16514_s5, 2048 }
 0xa8f   : > { %p14558_p13 = scmp.ne.s32.totalorder %s16428_s29, %s14557_s9  ;;  %p14562_p2 = scmp.lt.u32.totalorder %s16428_s29, %s16514_s5 }
 0xa90   : > { %p14563_p7 = scmp.lt.u32.totalorder %s14561_s14, %s14557_s9  ;;  %p14565_p11 = scmp.lt.u32.totalorder %s14557_s9, %s16428_s29 }
 0xa91   : > { %p14559_p6 = pnand %p14558_p13, %p16558_p0 }
 0xa92   : > { %p14564_p8 = por %p14563_p7, %p14562_p2 }
 0xa93   : > { %p14560_p10 = pneg %p14559_p6 }
 0xa94   : > { %p14566_p4 = por %p14565_p11, %p14564_p8 }
 0xa96   : > { %p14567_p3 = pnand %p14566_p4, %p14560_p10 }
 0xa98   : > { %14570 = shalt.err (!%p14567_p3)
}
 0xa99   : > { %s14671_s7 = smov 128   ;;  %s14672_s8 = smov 8  }
 0xa9a   : > { %14368 = dma.vmem_to_hbm [thread:$0]  (%p16558_p0), %s16430_s19, 1024, %s16428_s29, %s9455_s24, %s14671_s7, %s14671_s7, %s14672_s8  }
 0xa9b   : > { %s14571_s16 = scalar_lea.vmem %s16432_s20, 128  ;;  %p16559_p9 = scmp.ne.s32.totalorder %s16535_s30, 0 }
 0xa9c   : > { %p14572_p5 = scmp.ne.s32.totalorder %s16432_s20, %s14571_s16  ;;  %p14578_p13 = scmp.lt.s32.totalorder %s16432_s20, %s16432_s20 }
 0xa9d   : > { %p14579_p6 = scmp.lt.s32.totalorder %s14571_s16, %s14571_s16 }
 0xa9e   : > { %p14573_p12 = pnand %p14572_p5, %p16559_p9 }
 0xa9f   : > { %p14580_p10 = por %p14579_p6, %p14578_p13 }
 0xaa0   : > { %p14574_p1 = pneg %p14573_p12 }
 0xaa2   : > { %p14581_p2 = pnand %p14580_p10, %p14574_p1 }
 0xaa4   : > { %14584 = shalt.err (!%p14581_p2)
}
 0xaa5   : > { %s14585_s18 = scalar_lea.hbm %s16515_s6, 128 }
 0xaa6   : > { %p14586_p0 = scmp.ne.s32.totalorder %s16515_s6, %s14585_s18  ;;  %p14591_p11 = scmp.lt.u32.totalorder %s14585_s18, %s16515_s6 }
 0xaa8   : > { %p14587_p7 = pnand %p14586_p0, %p16559_p9 }
 0xaaa   : > { %p14588_p8 = pneg %p14587_p7 }
 0xaac   : > { %p14593_p4 = pnand %p14591_p11, %p14588_p8 }
 0xaae   : > { %14596 = shalt.err (!%p14593_p4)
}
 0xaaf   : > { %14370 = dma.vmem_to_hbm [thread:$0]  (%p16559_p9), %s16432_s20, 128, %s16515_s6, [#allocation11]  }
 0xab0   : > { %14630 = dma.done.wait (%p16559_p9), [#allocation11], 128  }
 0xab1   : > { %14632 = vsyncadd (%p16559_p9), [#allocation11], 4294967168 }
 0xab2 PF: > { %s16560_s14 = sld [smem:[#allocation16_spill]]  ;;  %s9501_s10 = sand.u32 1, %s14639_s21  }
 0xab3   : > { %p16562_p5 = scmp.ge.s32.totalorder %s14659_s26, 2  ;;  %s9502_s13 = scalar_lea.sflag [#allocation5], %s9501_s10 }
 0xab8   : > { %p16561_p3 = scmp.ne.s32.totalorder %s16560_s14, 0 }
 0xaba   : > { %p14386_p12 = pnand %p16562_p5, %p16561_p3 }
 0xabc   : > { %14634 = dma.done.wait (!%p14386_p12), %s9502_s13, 1024  }
 0xabd   : > { %14636 = vsyncadd (!%p14386_p12), %s9502_s13, 4294966272  ;;  %s25_s26 = sadd.s32 1, %s14659_s26   ;;  %s16563_s21 = smov %s14643_s22 }
 0xabe   : > { %p22_p1 = scmp.ge.s32.totalorder %s25_s26, 4   ;;  %s16564_s22 = smov %s14647_s23 }
 0xabf   : > { %s16565_s23 = smov %s14856_s27  ;;  %s16566_s24 = smov %s14655_s25 }
 0xac0   : > { %s16567_s25 = smov %s16569_s12  ;;  %24 = sbr.rel (!%p22_p1) target bundleno = 8 (0x8), region = 123 }
 0xac7   :  { %9507 = vsyncpa [#allocation4], 1 }
 0xac8   :  { %9509 = vsyncpa [#allocation4 + $0x1], 1 }
 0xac9   :  { %9510 = vsyncpa [#allocation7], 1 }
 0xaca   :  { %9511 = vsyncpa [#allocation5], 1 }
 0xacb   :  { %9513 = vsyncpa [#allocation5 + $0x1], 1 }
 0xacc   :  { %9514 = vsyncpa [#allocation11], 1 }

</bundles_post_ra>
